<compile_context>
chip_gen: v7x
topology: tpu7x:2x2x1
jax: 0.10.0
libtpu: 0.0.40
codegen_flags: <defaults>
</compile_context>

<pallas_src>
import functools
import math

import jax
import jax.numpy as jnp
from jax.experimental import pallas as pl
from jax.experimental.pallas import tpu as pltpu


def critic_kernel(
    x_ref,       # (S, Bt, Emb) f32   embedded inputs (one batch tile)
    w_ih_ref,    # (4, Emb, H)  bf16  per-gate input->hidden weights (i, f, g, o)
    w_hh_ref,    # (4, H, H)    bf16  per-gate hidden->hidden weights
    b_lstm_ref,  # (4, 1, H)    f32   per-gate (b_ih + b_hh)
    w_q_ref,     # (H, H)       bf16  Attention.project_query weight^T
    b_q_ref,     # (1, H)       f32
    w_c_ref,     # (H, H)       bf16  Attention.project_ref (Conv1d k=1) weight^T
    b_c_ref,     # (1, H)       f32
    v_ref,       # (H, 1)       bf16  Attention.v as a column (MXU reduction)
    w_d1_ref,    # (H, H)       bf16  decoder Linear1 weight^T
    b_d1_ref,    # (1, H)       f32
    w_d2_ref,    # (H, 1)       bf16  decoder Linear2 weight^T
    b_d2_ref,    # (1, 1)       f32   (SMEM scalar)
    out_ref,     # (Bt, 1)      f32
    xg_scr,      # VMEM (4, S*Bt, H) f32  precomputed x->gate pre-activations
    e_scr,       # VMEM (S*Bt, H)    f32  encoder outputs, reused in place for e_proj
    *,
    n_process_block_iters,
    use_tanh,
    C,
):
    S, B, _ = x_ref.shape
    H = w_hh_ref.shape[-1]
    f32 = jnp.float32
    bf16 = jnp.bfloat16

    # ----- Hoisted input->gates projection: one well-shaped matmul per gate -------
    x2d = x_ref[...].reshape(S * B, -1).astype(bf16)                     # (S*B, Emb)
    for g in range(4):
        xg_scr[g] = (
            jnp.dot(x2d, w_ih_ref[g], preferred_element_type=f32)
            + b_lstm_ref[g]
        )                                                                # (S*B, H)

    # Loop-invariant recurrent weights (loaded once).
    w_hh_i = w_hh_ref[0]
    w_hh_f = w_hh_ref[1]
    w_hh_g = w_hh_ref[2]
    w_hh_o = w_hh_ref[3]

    # ----- Encoder LSTM recurrence, statically unrolled (S is small & static) -----
    h = jnp.zeros((B, H), f32)
    c = jnp.zeros((B, H), f32)
    for t in range(S):
        lo = t * B                                                       # static
        hb = h.astype(bf16)
        i_g = jax.nn.sigmoid(
            xg_scr[0, lo:lo + B, :] + jnp.dot(hb, w_hh_i, preferred_element_type=f32))
        f_g = jax.nn.sigmoid(
            xg_scr[1, lo:lo + B, :] + jnp.dot(hb, w_hh_f, preferred_element_type=f32))
        g_g = jnp.tanh(
            xg_scr[2, lo:lo + B, :] + jnp.dot(hb, w_hh_g, preferred_element_type=f32))
        o_g = jax.nn.sigmoid(
            xg_scr[3, lo:lo + B, :] + jnp.dot(hb, w_hh_o, preferred_element_type=f32))
        c = f_g * c + i_g * g_g
        h = o_g * jnp.tanh(c)
        e_scr[lo:lo + B, :] = h                                          # encoder output t

    # ----- Attention "ref" projection (Conv1d k=1), overwriting enc scratch -------
    e_scr[...] = (
        jnp.dot(e_scr[...].astype(bf16), w_c_ref[...], preferred_element_type=f32)
        + b_c_ref[...]
    )                                                                    # (S*B, H)

    # Loop-invariant attention parameters.
    w_q = w_q_ref[...]
    b_q = b_q_ref[...]
    v_col = v_ref[...]                                                   # (H, 1) bf16

    # ------------------------------ Process block ---------------------------------
    state = h                                                            # (B, H) final hidden
    for _ in range(n_process_block_iters):
        e2d = e_scr[...]                                                 # (S*B, H) f32
        e3 = e2d.reshape(S, B, H)                                        # layout-preserving (B==8)
        q = jnp.dot(state.astype(bf16), w_q, preferred_element_type=f32) + b_q   # (B, H)
        t3 = jnp.tanh(q[None, :, :] + e3)                                # (S, B, H) f32
        # v-reduction on the MXU instead of an XLU lane reduction.
        u = jnp.dot(t3.reshape(S * B, H).astype(bf16), v_col,
                    preferred_element_type=f32)                          # (S*B, 1)
        logits = u.reshape(S, B, 1)
        if use_tanh:
            logits = C * jnp.tanh(logits)
        # softmax over the sequence axis (nn.Softmax over dim 1 of (B, S) logits)
        m = jnp.max(logits, axis=0, keepdims=True)
        ex = jnp.exp(logits - m)
        alpha = ex / jnp.sum(ex, axis=0, keepdims=True)                  # (S, B, 1)
        # bmm(e, alpha): new_state[b, h] = sum_s e[s, b, h] * alpha[s, b]
        state = jnp.sum(e3 * alpha, axis=0)                              # (B, H)

    # --------------------------- Decoder MLP: H -> H -> 1 --------------------------
    hdec = jnp.maximum(
        jnp.dot(state.astype(bf16), w_d1_ref[...], preferred_element_type=f32)
        + b_d1_ref[...],
        0.0,
    )
    out = (jnp.dot(hdec.astype(bf16), w_d2_ref[...], preferred_element_type=f32)
           + b_d2_ref[0, 0])                                             # (B, 1)
    out_ref[...] = out


def make_params(key, embedding_dim, hidden_dim):
    """Deterministic synthetic parameters with PyTorch-default-like uniform init."""
    H = hidden_dim
    Emb = embedding_dim
    ks = jax.random.split(key, 13)

    def unif(k, shape, fan_in):
        bound = 1.0 / math.sqrt(fan_in)
        return jax.random.uniform(k, shape, jnp.float32, -bound, bound)

    return dict(
        # Encoder LSTM (PyTorch shapes)
        w_ih=unif(ks[0], (4 * H, Emb), H),
        w_hh=unif(ks[1], (4 * H, H), H),
        b_ih=unif(ks[2], (4 * H,), H),
        b_hh=unif(ks[3], (4 * H,), H),
        # Attention (process block)
        w_q=unif(ks[4], (H, H), H),       # project_query: Linear(H, H)
        b_q=unif(ks[5], (H,), H),
        w_c=unif(ks[6], (H, H), H),       # project_ref: Conv1d(H, H, 1) weight squeezed
        b_c=unif(ks[7], (H,), H),
        v=unif(ks[8], (H,), H),
        # Decoder MLP
        w_d1=unif(ks[9], (H, H), H),
        b_d1=unif(ks[10], (H,), H),
        w_d2=unif(ks[11], (1, H), H),
        b_d2=unif(ks[12], (1,), H),
    )


def prepare_params(params, hidden_dim):
    """One-time weight prep: transpose, split per LSTM gate, fold biases, cast bf16.

    Done once outside the forward so no per-call transpose/add ops surround the kernel.
    """
    H = hidden_dim
    f32 = jnp.float32
    bf16 = jnp.bfloat16

    w_ih = params["w_ih"]                               # (4H, Emb)
    w_hh = params["w_hh"]                               # (4H, H)
    b = (params["b_ih"] + params["b_hh"]).astype(f32)   # (4H,)

    w_ih4 = jnp.stack([w_ih[g * H:(g + 1) * H, :].T for g in range(4)]).astype(bf16)  # (4,Emb,H)
    w_hh4 = jnp.stack([w_hh[g * H:(g + 1) * H, :].T for g in range(4)]).astype(bf16)  # (4,H,H)
    b4 = jnp.stack([b[g * H:(g + 1) * H].reshape(1, H) for g in range(4)])            # (4,1,H)

    return (
        w_ih4, w_hh4, b4,
        params["w_q"].T.astype(bf16), params["b_q"].reshape(1, H).astype(f32),
        params["w_c"].T.astype(bf16), params["b_c"].reshape(1, H).astype(f32),
        params["v"].reshape(H, 1).astype(bf16),
        params["w_d1"].T.astype(bf16), params["b_d1"].reshape(1, H).astype(f32),
        params["w_d2"].T.astype(bf16), params["b_d2"].reshape(1, 1).astype(f32),
    )


def critic_network_forward(inputs, prepped, *, n_process_block_iters,
                           use_tanh, tanh_exploration, batch_tile=8):
    S, B, Emb = inputs.shape
    H = prepped[1].shape[-1]

    # Pad the batch to a multiple of 8 sublanes (vreg / MXU row occupancy).
    B_pad = ((B + batch_tile - 1) // batch_tile) * batch_tile
    x = inputs.astype(jnp.float32)
    if B_pad != B:
        x = jnp.pad(x, ((0, 0), (0, B_pad - B), (0, 0)))

    kernel = functools.partial(
        critic_kernel,
        n_process_block_iters=n_process_block_iters,
        use_tanh=use_tanh,
        C=tanh_exploration,
    )

    vmem_full = pl.BlockSpec(memory_space=pltpu.MemorySpace.VMEM)
    smem_full = pl.BlockSpec(memory_space=pltpu.MemorySpace.SMEM)
    in_specs = (
        [pl.BlockSpec((S, batch_tile, Emb), lambda i: (0, i, 0))]  # x, tiled over batch
        + [vmem_full] * 11                                         # weights / biases
        + [smem_full]                                              # b_d2 scalar
    )

    out = pl.pallas_call(
        kernel,
        out_shape=jax.ShapeDtypeStruct((B_pad, 1), jnp.float32),
        grid=(B_pad // batch_tile,),
        in_specs=in_specs,
        out_specs=pl.BlockSpec((batch_tile, 1), lambda i: (i, 0)),
        scratch_shapes=[
            pltpu.VMEM((4, S * batch_tile, H), jnp.float32),   # x->gate pre-activations
            pltpu.VMEM((S * batch_tile, H), jnp.float32),      # encoder outputs / e_proj
        ],
        compiler_params=pltpu.CompilerParams(
            dimension_semantics=("parallel",),   # batch tiles shard across v7x's 2 TCs
        ),
    )(x, *prepped)
    return out[:B]


if __name__ == "__main__":
    # Small shapes consistent with the module's forward.
    embedding_dim = 8
    hidden_dim = 32
    sourceL = 8
    batch = 2
    n_process_block_iters = 3
    tanh_exploration = 10.0
    use_tanh = False

    key = jax.random.PRNGKey(0)
    k_params, k_inputs = jax.random.split(key)
    params = make_params(k_params, embedding_dim, hidden_dim)
    prepped = prepare_params(params, hidden_dim)   # one-time weight prep
    inputs = jax.random.normal(k_inputs, (sourceL, batch, embedding_dim), jnp.float32)

    out = critic_network_forward(
        inputs, prepped,
        n_process_block_iters=n_process_block_iters,
        use_tanh=use_tanh,
        tanh_exploration=tanh_exploration,
    )
    jax.block_until_ready(out)
    assert out.shape == (batch, 1) and out.dtype == jnp.float32
    print("KERNEL_OK")
</pallas_src>

<mosaic_0001>
module attributes {stable_mosaic.version = 11 : i64} {
  func.func @critic_kernel(%arg0: i32, %arg1: memref<8x8x8xf32, #tpu.memory_space<vmem>>, %arg2: memref<4x8x32xbf16, #tpu.memory_space<vmem>>, %arg3: memref<4x32x32xbf16, #tpu.memory_space<vmem>>, %arg4: memref<4x1x32xf32, #tpu.memory_space<vmem>>, %arg5: memref<32x32xbf16, #tpu.memory_space<vmem>>, %arg6: memref<1x32xf32, #tpu.memory_space<vmem>>, %arg7: memref<32x32xbf16, #tpu.memory_space<vmem>>, %arg8: memref<1x32xf32, #tpu.memory_space<vmem>>, %arg9: memref<32x1xbf16, #tpu.memory_space<vmem>>, %arg10: memref<32x32xbf16, #tpu.memory_space<vmem>>, %arg11: memref<1x32xf32, #tpu.memory_space<vmem>>, %arg12: memref<32x1xbf16, #tpu.memory_space<vmem>>, %arg13: memref<1x1xf32, #tpu.memory_space<smem>>, %arg14: memref<8x1xf32, #tpu.memory_space<vmem>>, %arg15: memref<4x64x32xf32, #tpu.memory_space<vmem>>, %arg16: memref<64x32xf32, #tpu.memory_space<vmem>>) attributes {dimension_semantics = [#tpu.dimension_semantics<parallel>], iteration_bounds = array<i64: 1>, scalar_prefetch = 0 : i64, scratch_operands = 2 : i64, tpu.core_type = #tpu.core_type<tc>, window_params = [{transform_indices = @transform_0, window_bounds = array<i64: 8, 8, 8>}, {pipeline_mode = #tpu.pipeline_mode<synchronous>, transform_indices = @transform_1, window_bounds = array<i64: 4, 8, 32>}, {pipeline_mode = #tpu.pipeline_mode<synchronous>, transform_indices = @transform_2, window_bounds = array<i64: 4, 32, 32>}, {pipeline_mode = #tpu.pipeline_mode<synchronous>, transform_indices = @transform_3, window_bounds = array<i64: 4, 1, 32>}, {pipeline_mode = #tpu.pipeline_mode<synchronous>, transform_indices = @transform_4, window_bounds = array<i64: 32, 32>}, {pipeline_mode = #tpu.pipeline_mode<synchronous>, transform_indices = @transform_5, window_bounds = array<i64: 1, 32>}, {pipeline_mode = #tpu.pipeline_mode<synchronous>, transform_indices = @transform_6, window_bounds = array<i64: 32, 32>}, {pipeline_mode = #tpu.pipeline_mode<synchronous>, transform_indices = @transform_7, window_bounds = array<i64: 1, 32>}, {pipeline_mode = #tpu.pipeline_mode<synchronous>, transform_indices = @transform_8, window_bounds = array<i64: 32, 1>}, {pipeline_mode = #tpu.pipeline_mode<synchronous>, transform_indices = @transform_9, window_bounds = array<i64: 32, 32>}, {pipeline_mode = #tpu.pipeline_mode<synchronous>, transform_indices = @transform_10, window_bounds = array<i64: 1, 32>}, {pipeline_mode = #tpu.pipeline_mode<synchronous>, transform_indices = @transform_11, window_bounds = array<i64: 32, 1>}, {transform_indices = @transform_12, window_bounds = array<i64: 1, 1>}, {transform_indices = @transform_13, window_bounds = array<i64: 8, 1>}]} {
    %c0 = arith.constant 0 : index
    %c0_0 = arith.constant 0 : index
    %c0_1 = arith.constant 0 : index
    %0 = vector.load %arg1[%c0, %c0_0, %c0_1] : memref<8x8x8xf32, #tpu.memory_space<vmem>>, vector<8x8x8xf32>
    %1 = vector.shape_cast %0 : vector<8x8x8xf32> to vector<64x8xf32>
    %2 = arith.truncf %1 : vector<64x8xf32> to vector<64x8xbf16>
    %c0_2 = arith.constant 0 : index
    %c0_3 = arith.constant 0 : index
    %c0_4 = arith.constant 0 : index
    %3 = vector.load %arg2[%c0_2, %c0_3, %c0_4] : memref<4x8x32xbf16, #tpu.memory_space<vmem>>, vector<1x8x32xbf16>
    %4 = vector.shape_cast %3 : vector<1x8x32xbf16> to vector<8x32xbf16>
    %cst = arith.constant dense<0.000000e+00> : vector<64x32xf32>
    %5 = tpu.matmul %2, %4, %cst {dimension_numbers = #tpu.dot_dimension_numbers<[1], [0], [0], [1], [0, 0, 1, 1], [], []>} : vector<64x8xbf16>, vector<8x32xbf16>, vector<64x32xf32> -> vector<64x32xf32>
    %c0_5 = arith.constant 0 : index
    %c0_6 = arith.constant 0 : index
    %c0_7 = arith.constant 0 : index
    %6 = vector.load %arg4[%c0_5, %c0_6, %c0_7] : memref<4x1x32xf32, #tpu.memory_space<vmem>>, vector<1x1x32xf32>
    %7 = vector.shape_cast %6 : vector<1x1x32xf32> to vector<1x32xf32>
    %8 = vector.broadcast %7 : vector<1x32xf32> to vector<64x32xf32>
    %9 = arith.addf %5, %8 : vector<64x32xf32>
    %c0_8 = arith.constant 0 : index
    %c0_9 = arith.constant 0 : index
    %c0_10 = arith.constant 0 : index
    %10 = vector.load %arg15[%c0_8, %c0_9, %c0_10] : memref<4x64x32xf32, #tpu.memory_space<vmem>>, vector<1x64x32xf32>
    %11 = vector.shape_cast %10 : vector<1x64x32xf32> to vector<64x32xf32>
    %12 = vector.shape_cast %9 : vector<64x32xf32> to vector<1x64x32xf32>
    tpu.vector_store %arg15[%c0_8, %c0_9, %c0_10], %12 {strides = array<i32>} : memref<4x64x32xf32, #tpu.memory_space<vmem>>, vector<1x64x32xf32>,
    %c1 = arith.constant 1 : index
    %c0_11 = arith.constant 0 : index
    %c0_12 = arith.constant 0 : index
    %13 = vector.load %arg2[%c1, %c0_11, %c0_12] : memref<4x8x32xbf16, #tpu.memory_space<vmem>>, vector<1x8x32xbf16>
    %14 = vector.shape_cast %13 : vector<1x8x32xbf16> to vector<8x32xbf16>
    %cst_13 = arith.constant dense<0.000000e+00> : vector<64x32xf32>
    %15 = tpu.matmul %2, %14, %cst_13 {dimension_numbers = #tpu.dot_dimension_numbers<[1], [0], [0], [1], [0, 0, 1, 1], [], []>} : vector<64x8xbf16>, vector<8x32xbf16>, vector<64x32xf32> -> vector<64x32xf32>
    %c1_14 = arith.constant 1 : index
    %c0_15 = arith.constant 0 : index
    %c0_16 = arith.constant 0 : index
    %16 = vector.load %arg4[%c1_14, %c0_15, %c0_16] : memref<4x1x32xf32, #tpu.memory_space<vmem>>, vector<1x1x32xf32>
    %17 = vector.shape_cast %16 : vector<1x1x32xf32> to vector<1x32xf32>
    %18 = vector.broadcast %17 : vector<1x32xf32> to vector<64x32xf32>
    %19 = arith.addf %15, %18 : vector<64x32xf32>
    %c1_17 = arith.constant 1 : index
    %c0_18 = arith.constant 0 : index
    %c0_19 = arith.constant 0 : index
    %20 = vector.load %arg15[%c1_17, %c0_18, %c0_19] : memref<4x64x32xf32, #tpu.memory_space<vmem>>, vector<1x64x32xf32>
    %21 = vector.shape_cast %20 : vector<1x64x32xf32> to vector<64x32xf32>
    %22 = vector.shape_cast %19 : vector<64x32xf32> to vector<1x64x32xf32>
    tpu.vector_store %arg15[%c1_17, %c0_18, %c0_19], %22 {strides = array<i32>} : memref<4x64x32xf32, #tpu.memory_space<vmem>>, vector<1x64x32xf32>,
    %c2 = arith.constant 2 : index
    %c0_20 = arith.constant 0 : index
    %c0_21 = arith.constant 0 : index
    %23 = vector.load %arg2[%c2, %c0_20, %c0_21] : memref<4x8x32xbf16, #tpu.memory_space<vmem>>, vector<1x8x32xbf16>
    %24 = vector.shape_cast %23 : vector<1x8x32xbf16> to vector<8x32xbf16>
    %cst_22 = arith.constant dense<0.000000e+00> : vector<64x32xf32>
    %25 = tpu.matmul %2, %24, %cst_22 {dimension_numbers = #tpu.dot_dimension_numbers<[1], [0], [0], [1], [0, 0, 1, 1], [], []>} : vector<64x8xbf16>, vector<8x32xbf16>, vector<64x32xf32> -> vector<64x32xf32>
    %c2_23 = arith.constant 2 : index
    %c0_24 = arith.constant 0 : index
    %c0_25 = arith.constant 0 : index
    %26 = vector.load %arg4[%c2_23, %c0_24, %c0_25] : memref<4x1x32xf32, #tpu.memory_space<vmem>>, vector<1x1x32xf32>
    %27 = vector.shape_cast %26 : vector<1x1x32xf32> to vector<1x32xf32>
    %28 = vector.broadcast %27 : vector<1x32xf32> to vector<64x32xf32>
    %29 = arith.addf %25, %28 : vector<64x32xf32>
    %c2_26 = arith.constant 2 : index
    %c0_27 = arith.constant 0 : index
    %c0_28 = arith.constant 0 : index
    %30 = vector.load %arg15[%c2_26, %c0_27, %c0_28] : memref<4x64x32xf32, #tpu.memory_space<vmem>>, vector<1x64x32xf32>
    %31 = vector.shape_cast %30 : vector<1x64x32xf32> to vector<64x32xf32>
    %32 = vector.shape_cast %29 : vector<64x32xf32> to vector<1x64x32xf32>
    tpu.vector_store %arg15[%c2_26, %c0_27, %c0_28], %32 {strides = array<i32>} : memref<4x64x32xf32, #tpu.memory_space<vmem>>, vector<1x64x32xf32>,
    %c3 = arith.constant 3 : index
    %c0_29 = arith.constant 0 : index
    %c0_30 = arith.constant 0 : index
    %33 = vector.load %arg2[%c3, %c0_29, %c0_30] : memref<4x8x32xbf16, #tpu.memory_space<vmem>>, vector<1x8x32xbf16>
    %34 = vector.shape_cast %33 : vector<1x8x32xbf16> to vector<8x32xbf16>
    %cst_31 = arith.constant dense<0.000000e+00> : vector<64x32xf32>
    %35 = tpu.matmul %2, %34, %cst_31 {dimension_numbers = #tpu.dot_dimension_numbers<[1], [0], [0], [1], [0, 0, 1, 1], [], []>} : vector<64x8xbf16>, vector<8x32xbf16>, vector<64x32xf32> -> vector<64x32xf32>
    %c3_32 = arith.constant 3 : index
    %c0_33 = arith.constant 0 : index
    %c0_34 = arith.constant 0 : index
    %36 = vector.load %arg4[%c3_32, %c0_33, %c0_34] : memref<4x1x32xf32, #tpu.memory_space<vmem>>, vector<1x1x32xf32>
    %37 = vector.shape_cast %36 : vector<1x1x32xf32> to vector<1x32xf32>
    %38 = vector.broadcast %37 : vector<1x32xf32> to vector<64x32xf32>
    %39 = arith.addf %35, %38 : vector<64x32xf32>
    %c3_35 = arith.constant 3 : index
    %c0_36 = arith.constant 0 : index
    %c0_37 = arith.constant 0 : index
    %40 = vector.load %arg15[%c3_35, %c0_36, %c0_37] : memref<4x64x32xf32, #tpu.memory_space<vmem>>, vector<1x64x32xf32>
    %41 = vector.shape_cast %40 : vector<1x64x32xf32> to vector<64x32xf32>
    %42 = vector.shape_cast %39 : vector<64x32xf32> to vector<1x64x32xf32>
    tpu.vector_store %arg15[%c3_35, %c0_36, %c0_37], %42 {strides = array<i32>} : memref<4x64x32xf32, #tpu.memory_space<vmem>>, vector<1x64x32xf32>,
    %c0_38 = arith.constant 0 : index
    %c0_39 = arith.constant 0 : index
    %c0_40 = arith.constant 0 : index
    %43 = vector.load %arg3[%c0_38, %c0_39, %c0_40] : memref<4x32x32xbf16, #tpu.memory_space<vmem>>, vector<1x32x32xbf16>
    %44 = vector.shape_cast %43 : vector<1x32x32xbf16> to vector<32x32xbf16>
    %c1_41 = arith.constant 1 : index
    %c0_42 = arith.constant 0 : index
    %c0_43 = arith.constant 0 : index
    %45 = vector.load %arg3[%c1_41, %c0_42, %c0_43] : memref<4x32x32xbf16, #tpu.memory_space<vmem>>, vector<1x32x32xbf16>
    %46 = vector.shape_cast %45 : vector<1x32x32xbf16> to vector<32x32xbf16>
    %c2_44 = arith.constant 2 : index
    %c0_45 = arith.constant 0 : index
    %c0_46 = arith.constant 0 : index
    %47 = vector.load %arg3[%c2_44, %c0_45, %c0_46] : memref<4x32x32xbf16, #tpu.memory_space<vmem>>, vector<1x32x32xbf16>
    %48 = vector.shape_cast %47 : vector<1x32x32xbf16> to vector<32x32xbf16>
    %c3_47 = arith.constant 3 : index
    %c0_48 = arith.constant 0 : index
    %c0_49 = arith.constant 0 : index
    %49 = vector.load %arg3[%c3_47, %c0_48, %c0_49] : memref<4x32x32xbf16, #tpu.memory_space<vmem>>, vector<1x32x32xbf16>
    %50 = vector.shape_cast %49 : vector<1x32x32xbf16> to vector<32x32xbf16>
    %cst_50 = arith.constant 0.000000e+00 : f32
    %51 = vector.broadcast %cst_50 : f32 to vector<8x32xf32>
    %cst_51 = arith.constant 0.000000e+00 : f32
    %52 = vector.broadcast %cst_51 : f32 to vector<8x32xf32>
    %53 = arith.truncf %51 : vector<8x32xf32> to vector<8x32xbf16>
    %c0_52 = arith.constant 0 : index
    %c0_53 = arith.constant 0 : index
    %c0_54 = arith.constant 0 : index
    %54 = vector.load %arg15[%c0_52, %c0_53, %c0_54] : memref<4x64x32xf32, #tpu.memory_space<vmem>>, vector<1x8x32xf32>
    %55 = vector.shape_cast %54 : vector<1x8x32xf32> to vector<8x32xf32>
    %cst_55 = arith.constant dense<0.000000e+00> : vector<8x32xf32>
    %56 = tpu.matmul %53, %44, %cst_55 {dimension_numbers = #tpu.dot_dimension_numbers<[1], [0], [0], [1], [0, 0, 1, 1], [], []>} : vector<8x32xbf16>, vector<32x32xbf16>, vector<8x32xf32> -> vector<8x32xf32>
    %57 = arith.addf %55, %56 : vector<8x32xf32>
    %58 = arith.negf %57 : vector<8x32xf32>
    %59 = math.exp %58 : vector<8x32xf32>
    %cst_56 = arith.constant 1.000000e+00 : f32
    %60 = vector.broadcast %cst_56 : f32 to vector<8x32xf32>
    %61 = arith.addf %60, %59 : vector<8x32xf32>
    %62 = arith.divf %60, %61 : vector<8x32xf32>
    %c1_57 = arith.constant 1 : index
    %c0_58 = arith.constant 0 : index
    %c0_59 = arith.constant 0 : index
    %63 = vector.load %arg15[%c1_57, %c0_58, %c0_59] : memref<4x64x32xf32, #tpu.memory_space<vmem>>, vector<1x8x32xf32>
    %64 = vector.shape_cast %63 : vector<1x8x32xf32> to vector<8x32xf32>
    %cst_60 = arith.constant dense<0.000000e+00> : vector<8x32xf32>
    %65 = tpu.matmul %53, %46, %cst_60 {dimension_numbers = #tpu.dot_dimension_numbers<[1], [0], [0], [1], [0, 0, 1, 1], [], []>} : vector<8x32xbf16>, vector<32x32xbf16>, vector<8x32xf32> -> vector<8x32xf32>
    %66 = arith.addf %64, %65 : vector<8x32xf32>
    %67 = arith.negf %66 : vector<8x32xf32>
    %68 = math.exp %67 : vector<8x32xf32>
    %cst_61 = arith.constant 1.000000e+00 : f32
    %69 = vector.broadcast %cst_61 : f32 to vector<8x32xf32>
    %70 = arith.addf %69, %68 : vector<8x32xf32>
    %71 = arith.divf %69, %70 : vector<8x32xf32>
    %c2_62 = arith.constant 2 : index
    %c0_63 = arith.constant 0 : index
    %c0_64 = arith.constant 0 : index
    %72 = vector.load %arg15[%c2_62, %c0_63, %c0_64] : memref<4x64x32xf32, #tpu.memory_space<vmem>>, vector<1x8x32xf32>
    %73 = vector.shape_cast %72 : vector<1x8x32xf32> to vector<8x32xf32>
    %cst_65 = arith.constant dense<0.000000e+00> : vector<8x32xf32>
    %74 = tpu.matmul %53, %48, %cst_65 {dimension_numbers = #tpu.dot_dimension_numbers<[1], [0], [0], [1], [0, 0, 1, 1], [], []>} : vector<8x32xbf16>, vector<32x32xbf16>, vector<8x32xf32> -> vector<8x32xf32>
    %75 = arith.addf %73, %74 : vector<8x32xf32>
    %76 = math.tanh %75 : vector<8x32xf32>
    %c3_66 = arith.constant 3 : index
    %c0_67 = arith.constant 0 : index
    %c0_68 = arith.constant 0 : index
    %77 = vector.load %arg15[%c3_66, %c0_67, %c0_68] : memref<4x64x32xf32, #tpu.memory_space<vmem>>, vector<1x8x32xf32>
    %78 = vector.shape_cast %77 : vector<1x8x32xf32> to vector<8x32xf32>
    %cst_69 = arith.constant dense<0.000000e+00> : vector<8x32xf32>
    %79 = tpu.matmul %53, %50, %cst_69 {dimension_numbers = #tpu.dot_dimension_numbers<[1], [0], [0], [1], [0, 0, 1, 1], [], []>} : vector<8x32xbf16>, vector<32x32xbf16>, vector<8x32xf32> -> vector<8x32xf32>
    %80 = arith.addf %78, %79 : vector<8x32xf32>
    %81 = arith.negf %80 : vector<8x32xf32>
    %82 = math.exp %81 : vector<8x32xf32>
    %cst_70 = arith.constant 1.000000e+00 : f32
    %83 = vector.broadcast %cst_70 : f32 to vector<8x32xf32>
    %84 = arith.addf %83, %82 : vector<8x32xf32>
    %85 = arith.divf %83, %84 : vector<8x32xf32>
    %86 = arith.mulf %71, %52 : vector<8x32xf32>
    %87 = arith.mulf %62, %76 : vector<8x32xf32>
    %88 = arith.addf %86, %87 : vector<8x32xf32>
    %89 = math.tanh %88 : vector<8x32xf32>
    %90 = arith.mulf %85, %89 : vector<8x32xf32>
    %c0_71 = arith.constant 0 : index
    %c0_72 = arith.constant 0 : index
    %91 = vector.load %arg16[%c0_71, %c0_72] : memref<64x32xf32, #tpu.memory_space<vmem>>, vector<8x32xf32>
    tpu.vector_store %arg16[%c0_71, %c0_72], %90 {strides = array<i32>} : memref<64x32xf32, #tpu.memory_space<vmem>>, vector<8x32xf32>,
    %92 = arith.truncf %90 : vector<8x32xf32> to vector<8x32xbf16>
    %c0_73 = arith.constant 0 : index
    %c8 = arith.constant 8 : index
    %c0_74 = arith.constant 0 : index
    %93 = vector.load %arg15[%c0_73, %c8, %c0_74] : memref<4x64x32xf32, #tpu.memory_space<vmem>>, vector<1x8x32xf32>
    %94 = vector.shape_cast %93 : vector<1x8x32xf32> to vector<8x32xf32>
    %cst_75 = arith.constant dense<0.000000e+00> : vector<8x32xf32>
    %95 = tpu.matmul %92, %44, %cst_75 {dimension_numbers = #tpu.dot_dimension_numbers<[1], [0], [0], [1], [0, 0, 1, 1], [], []>} : vector<8x32xbf16>, vector<32x32xbf16>, vector<8x32xf32> -> vector<8x32xf32>
    %96 = arith.addf %94, %95 : vector<8x32xf32>
    %97 = arith.negf %96 : vector<8x32xf32>
    %98 = math.exp %97 : vector<8x32xf32>
    %cst_76 = arith.constant 1.000000e+00 : f32
    %99 = vector.broadcast %cst_76 : f32 to vector<8x32xf32>
    %100 = arith.addf %99, %98 : vector<8x32xf32>
    %101 = arith.divf %99, %100 : vector<8x32xf32>
    %c1_77 = arith.constant 1 : index
    %c8_78 = arith.constant 8 : index
    %c0_79 = arith.constant 0 : index
    %102 = vector.load %arg15[%c1_77, %c8_78, %c0_79] : memref<4x64x32xf32, #tpu.memory_space<vmem>>, vector<1x8x32xf32>
    %103 = vector.shape_cast %102 : vector<1x8x32xf32> to vector<8x32xf32>
    %cst_80 = arith.constant dense<0.000000e+00> : vector<8x32xf32>
    %104 = tpu.matmul %92, %46, %cst_80 {dimension_numbers = #tpu.dot_dimension_numbers<[1], [0], [0], [1], [0, 0, 1, 1], [], []>} : vector<8x32xbf16>, vector<32x32xbf16>, vector<8x32xf32> -> vector<8x32xf32>
    %105 = arith.addf %103, %104 : vector<8x32xf32>
    %106 = arith.negf %105 : vector<8x32xf32>
    %107 = math.exp %106 : vector<8x32xf32>
    %cst_81 = arith.constant 1.000000e+00 : f32
    %108 = vector.broadcast %cst_81 : f32 to vector<8x32xf32>
    %109 = arith.addf %108, %107 : vector<8x32xf32>
    %110 = arith.divf %108, %109 : vector<8x32xf32>
    %c2_82 = arith.constant 2 : index
    %c8_83 = arith.constant 8 : index
    %c0_84 = arith.constant 0 : index
    %111 = vector.load %arg15[%c2_82, %c8_83, %c0_84] : memref<4x64x32xf32, #tpu.memory_space<vmem>>, vector<1x8x32xf32>
    %112 = vector.shape_cast %111 : vector<1x8x32xf32> to vector<8x32xf32>
    %cst_85 = arith.constant dense<0.000000e+00> : vector<8x32xf32>
    %113 = tpu.matmul %92, %48, %cst_85 {dimension_numbers = #tpu.dot_dimension_numbers<[1], [0], [0], [1], [0, 0, 1, 1], [], []>} : vector<8x32xbf16>, vector<32x32xbf16>, vector<8x32xf32> -> vector<8x32xf32>
    %114 = arith.addf %112, %113 : vector<8x32xf32>
    %115 = math.tanh %114 : vector<8x32xf32>
    %c3_86 = arith.constant 3 : index
    %c8_87 = arith.constant 8 : index
    %c0_88 = arith.constant 0 : index
    %116 = vector.load %arg15[%c3_86, %c8_87, %c0_88] : memref<4x64x32xf32, #tpu.memory_space<vmem>>, vector<1x8x32xf32>
    %117 = vector.shape_cast %116 : vector<1x8x32xf32> to vector<8x32xf32>
    %cst_89 = arith.constant dense<0.000000e+00> : vector<8x32xf32>
    %118 = tpu.matmul %92, %50, %cst_89 {dimension_numbers = #tpu.dot_dimension_numbers<[1], [0], [0], [1], [0, 0, 1, 1], [], []>} : vector<8x32xbf16>, vector<32x32xbf16>, vector<8x32xf32> -> vector<8x32xf32>
    %119 = arith.addf %117, %118 : vector<8x32xf32>
    %120 = arith.negf %119 : vector<8x32xf32>
    %121 = math.exp %120 : vector<8x32xf32>
    %cst_90 = arith.constant 1.000000e+00 : f32
    %122 = vector.broadcast %cst_90 : f32 to vector<8x32xf32>
    %123 = arith.addf %122, %121 : vector<8x32xf32>
    %124 = arith.divf %122, %123 : vector<8x32xf32>
    %125 = arith.mulf %110, %88 : vector<8x32xf32>
    %126 = arith.mulf %101, %115 : vector<8x32xf32>
    %127 = arith.addf %125, %126 : vector<8x32xf32>
    %128 = math.tanh %127 : vector<8x32xf32>
    %129 = arith.mulf %124, %128 : vector<8x32xf32>
    %c8_91 = arith.constant 8 : index
    %c0_92 = arith.constant 0 : index
    %130 = vector.load %arg16[%c8_91, %c0_92] : memref<64x32xf32, #tpu.memory_space<vmem>>, vector<8x32xf32>
    tpu.vector_store %arg16[%c8_91, %c0_92], %129 {strides = array<i32>} : memref<64x32xf32, #tpu.memory_space<vmem>>, vector<8x32xf32>,
    %131 = arith.truncf %129 : vector<8x32xf32> to vector<8x32xbf16>
    %c0_93 = arith.constant 0 : index
    %c16 = arith.constant 16 : index
    %c0_94 = arith.constant 0 : index
    %132 = vector.load %arg15[%c0_93, %c16, %c0_94] : memref<4x64x32xf32, #tpu.memory_space<vmem>>, vector<1x8x32xf32>
    %133 = vector.shape_cast %132 : vector<1x8x32xf32> to vector<8x32xf32>
    %cst_95 = arith.constant dense<0.000000e+00> : vector<8x32xf32>
    %134 = tpu.matmul %131, %44, %cst_95 {dimension_numbers = #tpu.dot_dimension_numbers<[1], [0], [0], [1], [0, 0, 1, 1], [], []>} : vector<8x32xbf16>, vector<32x32xbf16>, vector<8x32xf32> -> vector<8x32xf32>
    %135 = arith.addf %133, %134 : vector<8x32xf32>
    %136 = arith.negf %135 : vector<8x32xf32>
    %137 = math.exp %136 : vector<8x32xf32>
    %cst_96 = arith.constant 1.000000e+00 : f32
    %138 = vector.broadcast %cst_96 : f32 to vector<8x32xf32>
    %139 = arith.addf %138, %137 : vector<8x32xf32>
    %140 = arith.divf %138, %139 : vector<8x32xf32>
    %c1_97 = arith.constant 1 : index
    %c16_98 = arith.constant 16 : index
    %c0_99 = arith.constant 0 : index
    %141 = vector.load %arg15[%c1_97, %c16_98, %c0_99] : memref<4x64x32xf32, #tpu.memory_space<vmem>>, vector<1x8x32xf32>
    %142 = vector.shape_cast %141 : vector<1x8x32xf32> to vector<8x32xf32>
    %cst_100 = arith.constant dense<0.000000e+00> : vector<8x32xf32>
    %143 = tpu.matmul %131, %46, %cst_100 {dimension_numbers = #tpu.dot_dimension_numbers<[1], [0], [0], [1], [0, 0, 1, 1], [], []>} : vector<8x32xbf16>, vector<32x32xbf16>, vector<8x32xf32> -> vector<8x32xf32>
    %144 = arith.addf %142, %143 : vector<8x32xf32>
    %145 = arith.negf %144 : vector<8x32xf32>
    %146 = math.exp %145 : vector<8x32xf32>
    %cst_101 = arith.constant 1.000000e+00 : f32
    %147 = vector.broadcast %cst_101 : f32 to vector<8x32xf32>
    %148 = arith.addf %147, %146 : vector<8x32xf32>
    %149 = arith.divf %147, %148 : vector<8x32xf32>
    %c2_102 = arith.constant 2 : index
    %c16_103 = arith.constant 16 : index
    %c0_104 = arith.constant 0 : index
    %150 = vector.load %arg15[%c2_102, %c16_103, %c0_104] : memref<4x64x32xf32, #tpu.memory_space<vmem>>, vector<1x8x32xf32>
    %151 = vector.shape_cast %150 : vector<1x8x32xf32> to vector<8x32xf32>
    %cst_105 = arith.constant dense<0.000000e+00> : vector<8x32xf32>
    %152 = tpu.matmul %131, %48, %cst_105 {dimension_numbers = #tpu.dot_dimension_numbers<[1], [0], [0], [1], [0, 0, 1, 1], [], []>} : vector<8x32xbf16>, vector<32x32xbf16>, vector<8x32xf32> -> vector<8x32xf32>
    %153 = arith.addf %151, %152 : vector<8x32xf32>
    %154 = math.tanh %153 : vector<8x32xf32>
    %c3_106 = arith.constant 3 : index
    %c16_107 = arith.constant 16 : index
    %c0_108 = arith.constant 0 : index
    %155 = vector.load %arg15[%c3_106, %c16_107, %c0_108] : memref<4x64x32xf32, #tpu.memory_space<vmem>>, vector<1x8x32xf32>
    %156 = vector.shape_cast %155 : vector<1x8x32xf32> to vector<8x32xf32>
    %cst_109 = arith.constant dense<0.000000e+00> : vector<8x32xf32>
    %157 = tpu.matmul %131, %50, %cst_109 {dimension_numbers = #tpu.dot_dimension_numbers<[1], [0], [0], [1], [0, 0, 1, 1], [], []>} : vector<8x32xbf16>, vector<32x32xbf16>, vector<8x32xf32> -> vector<8x32xf32>
    %158 = arith.addf %156, %157 : vector<8x32xf32>
    %159 = arith.negf %158 : vector<8x32xf32>
    %160 = math.exp %159 : vector<8x32xf32>
    %cst_110 = arith.constant 1.000000e+00 : f32
    %161 = vector.broadcast %cst_110 : f32 to vector<8x32xf32>
    %162 = arith.addf %161, %160 : vector<8x32xf32>
    %163 = arith.divf %161, %162 : vector<8x32xf32>
    %164 = arith.mulf %149, %127 : vector<8x32xf32>
    %165 = arith.mulf %140, %154 : vector<8x32xf32>
    %166 = arith.addf %164, %165 : vector<8x32xf32>
    %167 = math.tanh %166 : vector<8x32xf32>
    %168 = arith.mulf %163, %167 : vector<8x32xf32>
    %c16_111 = arith.constant 16 : index
    %c0_112 = arith.constant 0 : index
    %169 = vector.load %arg16[%c16_111, %c0_112] : memref<64x32xf32, #tpu.memory_space<vmem>>, vector<8x32xf32>
    tpu.vector_store %arg16[%c16_111, %c0_112], %168 {strides = array<i32>} : memref<64x32xf32, #tpu.memory_space<vmem>>, vector<8x32xf32>,
    %170 = arith.truncf %168 : vector<8x32xf32> to vector<8x32xbf16>
    %c0_113 = arith.constant 0 : index
    %c24 = arith.constant 24 : index
    %c0_114 = arith.constant 0 : index
    %171 = vector.load %arg15[%c0_113, %c24, %c0_114] : memref<4x64x32xf32, #tpu.memory_space<vmem>>, vector<1x8x32xf32>
    %172 = vector.shape_cast %171 : vector<1x8x32xf32> to vector<8x32xf32>
    %cst_115 = arith.constant dense<0.000000e+00> : vector<8x32xf32>
    %173 = tpu.matmul %170, %44, %cst_115 {dimension_numbers = #tpu.dot_dimension_numbers<[1], [0], [0], [1], [0, 0, 1, 1], [], []>} : vector<8x32xbf16>, vector<32x32xbf16>, vector<8x32xf32> -> vector<8x32xf32>
    %174 = arith.addf %172, %173 : vector<8x32xf32>
    %175 = arith.negf %174 : vector<8x32xf32>
    %176 = math.exp %175 : vector<8x32xf32>
    %cst_116 = arith.constant 1.000000e+00 : f32
    %177 = vector.broadcast %cst_116 : f32 to vector<8x32xf32>
    %178 = arith.addf %177, %176 : vector<8x32xf32>
    %179 = arith.divf %177, %178 : vector<8x32xf32>
    %c1_117 = arith.constant 1 : index
    %c24_118 = arith.constant 24 : index
    %c0_119 = arith.constant 0 : index
    %180 = vector.load %arg15[%c1_117, %c24_118, %c0_119] : memref<4x64x32xf32, #tpu.memory_space<vmem>>, vector<1x8x32xf32>
    %181 = vector.shape_cast %180 : vector<1x8x32xf32> to vector<8x32xf32>
    %cst_120 = arith.constant dense<0.000000e+00> : vector<8x32xf32>
    %182 = tpu.matmul %170, %46, %cst_120 {dimension_numbers = #tpu.dot_dimension_numbers<[1], [0], [0], [1], [0, 0, 1, 1], [], []>} : vector<8x32xbf16>, vector<32x32xbf16>, vector<8x32xf32> -> vector<8x32xf32>
    %183 = arith.addf %181, %182 : vector<8x32xf32>
    %184 = arith.negf %183 : vector<8x32xf32>
    %185 = math.exp %184 : vector<8x32xf32>
    %cst_121 = arith.constant 1.000000e+00 : f32
    %186 = vector.broadcast %cst_121 : f32 to vector<8x32xf32>
    %187 = arith.addf %186, %185 : vector<8x32xf32>
    %188 = arith.divf %186, %187 : vector<8x32xf32>
    %c2_122 = arith.constant 2 : index
    %c24_123 = arith.constant 24 : index
    %c0_124 = arith.constant 0 : index
    %189 = vector.load %arg15[%c2_122, %c24_123, %c0_124] : memref<4x64x32xf32, #tpu.memory_space<vmem>>, vector<1x8x32xf32>
    %190 = vector.shape_cast %189 : vector<1x8x32xf32> to vector<8x32xf32>
    %cst_125 = arith.constant dense<0.000000e+00> : vector<8x32xf32>
    %191 = tpu.matmul %170, %48, %cst_125 {dimension_numbers = #tpu.dot_dimension_numbers<[1], [0], [0], [1], [0, 0, 1, 1], [], []>} : vector<8x32xbf16>, vector<32x32xbf16>, vector<8x32xf32> -> vector<8x32xf32>
    %192 = arith.addf %190, %191 : vector<8x32xf32>
    %193 = math.tanh %192 : vector<8x32xf32>
    %c3_126 = arith.constant 3 : index
    %c24_127 = arith.constant 24 : index
    %c0_128 = arith.constant 0 : index
    %194 = vector.load %arg15[%c3_126, %c24_127, %c0_128] : memref<4x64x32xf32, #tpu.memory_space<vmem>>, vector<1x8x32xf32>
    %195 = vector.shape_cast %194 : vector<1x8x32xf32> to vector<8x32xf32>
    %cst_129 = arith.constant dense<0.000000e+00> : vector<8x32xf32>
    %196 = tpu.matmul %170, %50, %cst_129 {dimension_numbers = #tpu.dot_dimension_numbers<[1], [0], [0], [1], [0, 0, 1, 1], [], []>} : vector<8x32xbf16>, vector<32x32xbf16>, vector<8x32xf32> -> vector<8x32xf32>
    %197 = arith.addf %195, %196 : vector<8x32xf32>
    %198 = arith.negf %197 : vector<8x32xf32>
    %199 = math.exp %198 : vector<8x32xf32>
    %cst_130 = arith.constant 1.000000e+00 : f32
    %200 = vector.broadcast %cst_130 : f32 to vector<8x32xf32>
    %201 = arith.addf %200, %199 : vector<8x32xf32>
    %202 = arith.divf %200, %201 : vector<8x32xf32>
    %203 = arith.mulf %188, %166 : vector<8x32xf32>
    %204 = arith.mulf %179, %193 : vector<8x32xf32>
    %205 = arith.addf %203, %204 : vector<8x32xf32>
    %206 = math.tanh %205 : vector<8x32xf32>
    %207 = arith.mulf %202, %206 : vector<8x32xf32>
    %c24_131 = arith.constant 24 : index
    %c0_132 = arith.constant 0 : index
    %208 = vector.load %arg16[%c24_131, %c0_132] : memref<64x32xf32, #tpu.memory_space<vmem>>, vector<8x32xf32>
    tpu.vector_store %arg16[%c24_131, %c0_132], %207 {strides = array<i32>} : memref<64x32xf32, #tpu.memory_space<vmem>>, vector<8x32xf32>,
    %209 = arith.truncf %207 : vector<8x32xf32> to vector<8x32xbf16>
    %c0_133 = arith.constant 0 : index
    %c32 = arith.constant 32 : index
    %c0_134 = arith.constant 0 : index
    %210 = vector.load %arg15[%c0_133, %c32, %c0_134] : memref<4x64x32xf32, #tpu.memory_space<vmem>>, vector<1x8x32xf32>
    %211 = vector.shape_cast %210 : vector<1x8x32xf32> to vector<8x32xf32>
    %cst_135 = arith.constant dense<0.000000e+00> : vector<8x32xf32>
    %212 = tpu.matmul %209, %44, %cst_135 {dimension_numbers = #tpu.dot_dimension_numbers<[1], [0], [0], [1], [0, 0, 1, 1], [], []>} : vector<8x32xbf16>, vector<32x32xbf16>, vector<8x32xf32> -> vector<8x32xf32>
    %213 = arith.addf %211, %212 : vector<8x32xf32>
    %214 = arith.negf %213 : vector<8x32xf32>
    %215 = math.exp %214 : vector<8x32xf32>
    %cst_136 = arith.constant 1.000000e+00 : f32
    %216 = vector.broadcast %cst_136 : f32 to vector<8x32xf32>
    %217 = arith.addf %216, %215 : vector<8x32xf32>
    %218 = arith.divf %216, %217 : vector<8x32xf32>
    %c1_137 = arith.constant 1 : index
    %c32_138 = arith.constant 32 : index
    %c0_139 = arith.constant 0 : index
    %219 = vector.load %arg15[%c1_137, %c32_138, %c0_139] : memref<4x64x32xf32, #tpu.memory_space<vmem>>, vector<1x8x32xf32>
    %220 = vector.shape_cast %219 : vector<1x8x32xf32> to vector<8x32xf32>
    %cst_140 = arith.constant dense<0.000000e+00> : vector<8x32xf32>
    %221 = tpu.matmul %209, %46, %cst_140 {dimension_numbers = #tpu.dot_dimension_numbers<[1], [0], [0], [1], [0, 0, 1, 1], [], []>} : vector<8x32xbf16>, vector<32x32xbf16>, vector<8x32xf32> -> vector<8x32xf32>
    %222 = arith.addf %220, %221 : vector<8x32xf32>
    %223 = arith.negf %222 : vector<8x32xf32>
    %224 = math.exp %223 : vector<8x32xf32>
    %cst_141 = arith.constant 1.000000e+00 : f32
    %225 = vector.broadcast %cst_141 : f32 to vector<8x32xf32>
    %226 = arith.addf %225, %224 : vector<8x32xf32>
    %227 = arith.divf %225, %226 : vector<8x32xf32>
    %c2_142 = arith.constant 2 : index
    %c32_143 = arith.constant 32 : index
    %c0_144 = arith.constant 0 : index
    %228 = vector.load %arg15[%c2_142, %c32_143, %c0_144] : memref<4x64x32xf32, #tpu.memory_space<vmem>>, vector<1x8x32xf32>
    %229 = vector.shape_cast %228 : vector<1x8x32xf32> to vector<8x32xf32>
    %cst_145 = arith.constant dense<0.000000e+00> : vector<8x32xf32>
    %230 = tpu.matmul %209, %48, %cst_145 {dimension_numbers = #tpu.dot_dimension_numbers<[1], [0], [0], [1], [0, 0, 1, 1], [], []>} : vector<8x32xbf16>, vector<32x32xbf16>, vector<8x32xf32> -> vector<8x32xf32>
    %231 = arith.addf %229, %230 : vector<8x32xf32>
    %232 = math.tanh %231 : vector<8x32xf32>
    %c3_146 = arith.constant 3 : index
    %c32_147 = arith.constant 32 : index
    %c0_148 = arith.constant 0 : index
    %233 = vector.load %arg15[%c3_146, %c32_147, %c0_148] : memref<4x64x32xf32, #tpu.memory_space<vmem>>, vector<1x8x32xf32>
    %234 = vector.shape_cast %233 : vector<1x8x32xf32> to vector<8x32xf32>
    %cst_149 = arith.constant dense<0.000000e+00> : vector<8x32xf32>
    %235 = tpu.matmul %209, %50, %cst_149 {dimension_numbers = #tpu.dot_dimension_numbers<[1], [0], [0], [1], [0, 0, 1, 1], [], []>} : vector<8x32xbf16>, vector<32x32xbf16>, vector<8x32xf32> -> vector<8x32xf32>
    %236 = arith.addf %234, %235 : vector<8x32xf32>
    %237 = arith.negf %236 : vector<8x32xf32>
    %238 = math.exp %237 : vector<8x32xf32>
    %cst_150 = arith.constant 1.000000e+00 : f32
    %239 = vector.broadcast %cst_150 : f32 to vector<8x32xf32>
    %240 = arith.addf %239, %238 : vector<8x32xf32>
    %241 = arith.divf %239, %240 : vector<8x32xf32>
    %242 = arith.mulf %227, %205 : vector<8x32xf32>
    %243 = arith.mulf %218, %232 : vector<8x32xf32>
    %244 = arith.addf %242, %243 : vector<8x32xf32>
    %245 = math.tanh %244 : vector<8x32xf32>
    %246 = arith.mulf %241, %245 : vector<8x32xf32>
    %c32_151 = arith.constant 32 : index
    %c0_152 = arith.constant 0 : index
    %247 = vector.load %arg16[%c32_151, %c0_152] : memref<64x32xf32, #tpu.memory_space<vmem>>, vector<8x32xf32>
    tpu.vector_store %arg16[%c32_151, %c0_152], %246 {strides = array<i32>} : memref<64x32xf32, #tpu.memory_space<vmem>>, vector<8x32xf32>,
    %248 = arith.truncf %246 : vector<8x32xf32> to vector<8x32xbf16>
    %c0_153 = arith.constant 0 : index
    %c40 = arith.constant 40 : index
    %c0_154 = arith.constant 0 : index
    %249 = vector.load %arg15[%c0_153, %c40, %c0_154] : memref<4x64x32xf32, #tpu.memory_space<vmem>>, vector<1x8x32xf32>
    %250 = vector.shape_cast %249 : vector<1x8x32xf32> to vector<8x32xf32>
    %cst_155 = arith.constant dense<0.000000e+00> : vector<8x32xf32>
    %251 = tpu.matmul %248, %44, %cst_155 {dimension_numbers = #tpu.dot_dimension_numbers<[1], [0], [0], [1], [0, 0, 1, 1], [], []>} : vector<8x32xbf16>, vector<32x32xbf16>, vector<8x32xf32> -> vector<8x32xf32>
    %252 = arith.addf %250, %251 : vector<8x32xf32>
    %253 = arith.negf %252 : vector<8x32xf32>
    %254 = math.exp %253 : vector<8x32xf32>
    %cst_156 = arith.constant 1.000000e+00 : f32
    %255 = vector.broadcast %cst_156 : f32 to vector<8x32xf32>
    %256 = arith.addf %255, %254 : vector<8x32xf32>
    %257 = arith.divf %255, %256 : vector<8x32xf32>
    %c1_157 = arith.constant 1 : index
    %c40_158 = arith.constant 40 : index
    %c0_159 = arith.constant 0 : index
    %258 = vector.load %arg15[%c1_157, %c40_158, %c0_159] : memref<4x64x32xf32, #tpu.memory_space<vmem>>, vector<1x8x32xf32>
    %259 = vector.shape_cast %258 : vector<1x8x32xf32> to vector<8x32xf32>
    %cst_160 = arith.constant dense<0.000000e+00> : vector<8x32xf32>
    %260 = tpu.matmul %248, %46, %cst_160 {dimension_numbers = #tpu.dot_dimension_numbers<[1], [0], [0], [1], [0, 0, 1, 1], [], []>} : vector<8x32xbf16>, vector<32x32xbf16>, vector<8x32xf32> -> vector<8x32xf32>
    %261 = arith.addf %259, %260 : vector<8x32xf32>
    %262 = arith.negf %261 : vector<8x32xf32>
    %263 = math.exp %262 : vector<8x32xf32>
    %cst_161 = arith.constant 1.000000e+00 : f32
    %264 = vector.broadcast %cst_161 : f32 to vector<8x32xf32>
    %265 = arith.addf %264, %263 : vector<8x32xf32>
    %266 = arith.divf %264, %265 : vector<8x32xf32>
    %c2_162 = arith.constant 2 : index
    %c40_163 = arith.constant 40 : index
    %c0_164 = arith.constant 0 : index
    %267 = vector.load %arg15[%c2_162, %c40_163, %c0_164] : memref<4x64x32xf32, #tpu.memory_space<vmem>>, vector<1x8x32xf32>
    %268 = vector.shape_cast %267 : vector<1x8x32xf32> to vector<8x32xf32>
    %cst_165 = arith.constant dense<0.000000e+00> : vector<8x32xf32>
    %269 = tpu.matmul %248, %48, %cst_165 {dimension_numbers = #tpu.dot_dimension_numbers<[1], [0], [0], [1], [0, 0, 1, 1], [], []>} : vector<8x32xbf16>, vector<32x32xbf16>, vector<8x32xf32> -> vector<8x32xf32>
    %270 = arith.addf %268, %269 : vector<8x32xf32>
    %271 = math.tanh %270 : vector<8x32xf32>
    %c3_166 = arith.constant 3 : index
    %c40_167 = arith.constant 40 : index
    %c0_168 = arith.constant 0 : index
    %272 = vector.load %arg15[%c3_166, %c40_167, %c0_168] : memref<4x64x32xf32, #tpu.memory_space<vmem>>, vector<1x8x32xf32>
    %273 = vector.shape_cast %272 : vector<1x8x32xf32> to vector<8x32xf32>
    %cst_169 = arith.constant dense<0.000000e+00> : vector<8x32xf32>
    %274 = tpu.matmul %248, %50, %cst_169 {dimension_numbers = #tpu.dot_dimension_numbers<[1], [0], [0], [1], [0, 0, 1, 1], [], []>} : vector<8x32xbf16>, vector<32x32xbf16>, vector<8x32xf32> -> vector<8x32xf32>
    %275 = arith.addf %273, %274 : vector<8x32xf32>
    %276 = arith.negf %275 : vector<8x32xf32>
    %277 = math.exp %276 : vector<8x32xf32>
    %cst_170 = arith.constant 1.000000e+00 : f32
    %278 = vector.broadcast %cst_170 : f32 to vector<8x32xf32>
    %279 = arith.addf %278, %277 : vector<8x32xf32>
    %280 = arith.divf %278, %279 : vector<8x32xf32>
    %281 = arith.mulf %266, %244 : vector<8x32xf32>
    %282 = arith.mulf %257, %271 : vector<8x32xf32>
    %283 = arith.addf %281, %282 : vector<8x32xf32>
    %284 = math.tanh %283 : vector<8x32xf32>
    %285 = arith.mulf %280, %284 : vector<8x32xf32>
    %c40_171 = arith.constant 40 : index
    %c0_172 = arith.constant 0 : index
    %286 = vector.load %arg16[%c40_171, %c0_172] : memref<64x32xf32, #tpu.memory_space<vmem>>, vector<8x32xf32>
    tpu.vector_store %arg16[%c40_171, %c0_172], %285 {strides = array<i32>} : memref<64x32xf32, #tpu.memory_space<vmem>>, vector<8x32xf32>,
    %287 = arith.truncf %285 : vector<8x32xf32> to vector<8x32xbf16>
    %c0_173 = arith.constant 0 : index
    %c48 = arith.constant 48 : index
    %c0_174 = arith.constant 0 : index
    %288 = vector.load %arg15[%c0_173, %c48, %c0_174] : memref<4x64x32xf32, #tpu.memory_space<vmem>>, vector<1x8x32xf32>
    %289 = vector.shape_cast %288 : vector<1x8x32xf32> to vector<8x32xf32>
    %cst_175 = arith.constant dense<0.000000e+00> : vector<8x32xf32>
    %290 = tpu.matmul %287, %44, %cst_175 {dimension_numbers = #tpu.dot_dimension_numbers<[1], [0], [0], [1], [0, 0, 1, 1], [], []>} : vector<8x32xbf16>, vector<32x32xbf16>, vector<8x32xf32> -> vector<8x32xf32>
    %291 = arith.addf %289, %290 : vector<8x32xf32>
    %292 = arith.negf %291 : vector<8x32xf32>
    %293 = math.exp %292 : vector<8x32xf32>
    %cst_176 = arith.constant 1.000000e+00 : f32
    %294 = vector.broadcast %cst_176 : f32 to vector<8x32xf32>
    %295 = arith.addf %294, %293 : vector<8x32xf32>
    %296 = arith.divf %294, %295 : vector<8x32xf32>
    %c1_177 = arith.constant 1 : index
    %c48_178 = arith.constant 48 : index
    %c0_179 = arith.constant 0 : index
    %297 = vector.load %arg15[%c1_177, %c48_178, %c0_179] : memref<4x64x32xf32, #tpu.memory_space<vmem>>, vector<1x8x32xf32>
    %298 = vector.shape_cast %297 : vector<1x8x32xf32> to vector<8x32xf32>
    %cst_180 = arith.constant dense<0.000000e+00> : vector<8x32xf32>
    %299 = tpu.matmul %287, %46, %cst_180 {dimension_numbers = #tpu.dot_dimension_numbers<[1], [0], [0], [1], [0, 0, 1, 1], [], []>} : vector<8x32xbf16>, vector<32x32xbf16>, vector<8x32xf32> -> vector<8x32xf32>
    %300 = arith.addf %298, %299 : vector<8x32xf32>
    %301 = arith.negf %300 : vector<8x32xf32>
    %302 = math.exp %301 : vector<8x32xf32>
    %cst_181 = arith.constant 1.000000e+00 : f32
    %303 = vector.broadcast %cst_181 : f32 to vector<8x32xf32>
    %304 = arith.addf %303, %302 : vector<8x32xf32>
    %305 = arith.divf %303, %304 : vector<8x32xf32>
    %c2_182 = arith.constant 2 : index
    %c48_183 = arith.constant 48 : index
    %c0_184 = arith.constant 0 : index
    %306 = vector.load %arg15[%c2_182, %c48_183, %c0_184] : memref<4x64x32xf32, #tpu.memory_space<vmem>>, vector<1x8x32xf32>
    %307 = vector.shape_cast %306 : vector<1x8x32xf32> to vector<8x32xf32>
    %cst_185 = arith.constant dense<0.000000e+00> : vector<8x32xf32>
    %308 = tpu.matmul %287, %48, %cst_185 {dimension_numbers = #tpu.dot_dimension_numbers<[1], [0], [0], [1], [0, 0, 1, 1], [], []>} : vector<8x32xbf16>, vector<32x32xbf16>, vector<8x32xf32> -> vector<8x32xf32>
    %309 = arith.addf %307, %308 : vector<8x32xf32>
    %310 = math.tanh %309 : vector<8x32xf32>
    %c3_186 = arith.constant 3 : index
    %c48_187 = arith.constant 48 : index
    %c0_188 = arith.constant 0 : index
    %311 = vector.load %arg15[%c3_186, %c48_187, %c0_188] : memref<4x64x32xf32, #tpu.memory_space<vmem>>, vector<1x8x32xf32>
    %312 = vector.shape_cast %311 : vector<1x8x32xf32> to vector<8x32xf32>
    %cst_189 = arith.constant dense<0.000000e+00> : vector<8x32xf32>
    %313 = tpu.matmul %287, %50, %cst_189 {dimension_numbers = #tpu.dot_dimension_numbers<[1], [0], [0], [1], [0, 0, 1, 1], [], []>} : vector<8x32xbf16>, vector<32x32xbf16>, vector<8x32xf32> -> vector<8x32xf32>
    %314 = arith.addf %312, %313 : vector<8x32xf32>
    %315 = arith.negf %314 : vector<8x32xf32>
    %316 = math.exp %315 : vector<8x32xf32>
    %cst_190 = arith.constant 1.000000e+00 : f32
    %317 = vector.broadcast %cst_190 : f32 to vector<8x32xf32>
    %318 = arith.addf %317, %316 : vector<8x32xf32>
    %319 = arith.divf %317, %318 : vector<8x32xf32>
    %320 = arith.mulf %305, %283 : vector<8x32xf32>
    %321 = arith.mulf %296, %310 : vector<8x32xf32>
    %322 = arith.addf %320, %321 : vector<8x32xf32>
    %323 = math.tanh %322 : vector<8x32xf32>
    %324 = arith.mulf %319, %323 : vector<8x32xf32>
    %c48_191 = arith.constant 48 : index
    %c0_192 = arith.constant 0 : index
    %325 = vector.load %arg16[%c48_191, %c0_192] : memref<64x32xf32, #tpu.memory_space<vmem>>, vector<8x32xf32>
    tpu.vector_store %arg16[%c48_191, %c0_192], %324 {strides = array<i32>} : memref<64x32xf32, #tpu.memory_space<vmem>>, vector<8x32xf32>,
    %326 = arith.truncf %324 : vector<8x32xf32> to vector<8x32xbf16>
    %c0_193 = arith.constant 0 : index
    %c56 = arith.constant 56 : index
    %c0_194 = arith.constant 0 : index
    %327 = vector.load %arg15[%c0_193, %c56, %c0_194] : memref<4x64x32xf32, #tpu.memory_space<vmem>>, vector<1x8x32xf32>
    %328 = vector.shape_cast %327 : vector<1x8x32xf32> to vector<8x32xf32>
    %cst_195 = arith.constant dense<0.000000e+00> : vector<8x32xf32>
    %329 = tpu.matmul %326, %44, %cst_195 {dimension_numbers = #tpu.dot_dimension_numbers<[1], [0], [0], [1], [0, 0, 1, 1], [], []>} : vector<8x32xbf16>, vector<32x32xbf16>, vector<8x32xf32> -> vector<8x32xf32>
    %330 = arith.addf %328, %329 : vector<8x32xf32>
    %331 = arith.negf %330 : vector<8x32xf32>
    %332 = math.exp %331 : vector<8x32xf32>
    %cst_196 = arith.constant 1.000000e+00 : f32
    %333 = vector.broadcast %cst_196 : f32 to vector<8x32xf32>
    %334 = arith.addf %333, %332 : vector<8x32xf32>
    %335 = arith.divf %333, %334 : vector<8x32xf32>
    %c1_197 = arith.constant 1 : index
    %c56_198 = arith.constant 56 : index
    %c0_199 = arith.constant 0 : index
    %336 = vector.load %arg15[%c1_197, %c56_198, %c0_199] : memref<4x64x32xf32, #tpu.memory_space<vmem>>, vector<1x8x32xf32>
    %337 = vector.shape_cast %336 : vector<1x8x32xf32> to vector<8x32xf32>
    %cst_200 = arith.constant dense<0.000000e+00> : vector<8x32xf32>
    %338 = tpu.matmul %326, %46, %cst_200 {dimension_numbers = #tpu.dot_dimension_numbers<[1], [0], [0], [1], [0, 0, 1, 1], [], []>} : vector<8x32xbf16>, vector<32x32xbf16>, vector<8x32xf32> -> vector<8x32xf32>
    %339 = arith.addf %337, %338 : vector<8x32xf32>
    %340 = arith.negf %339 : vector<8x32xf32>
    %341 = math.exp %340 : vector<8x32xf32>
    %cst_201 = arith.constant 1.000000e+00 : f32
    %342 = vector.broadcast %cst_201 : f32 to vector<8x32xf32>
    %343 = arith.addf %342, %341 : vector<8x32xf32>
    %344 = arith.divf %342, %343 : vector<8x32xf32>
    %c2_202 = arith.constant 2 : index
    %c56_203 = arith.constant 56 : index
    %c0_204 = arith.constant 0 : index
    %345 = vector.load %arg15[%c2_202, %c56_203, %c0_204] : memref<4x64x32xf32, #tpu.memory_space<vmem>>, vector<1x8x32xf32>
    %346 = vector.shape_cast %345 : vector<1x8x32xf32> to vector<8x32xf32>
    %cst_205 = arith.constant dense<0.000000e+00> : vector<8x32xf32>
    %347 = tpu.matmul %326, %48, %cst_205 {dimension_numbers = #tpu.dot_dimension_numbers<[1], [0], [0], [1], [0, 0, 1, 1], [], []>} : vector<8x32xbf16>, vector<32x32xbf16>, vector<8x32xf32> -> vector<8x32xf32>
    %348 = arith.addf %346, %347 : vector<8x32xf32>
    %349 = math.tanh %348 : vector<8x32xf32>
    %c3_206 = arith.constant 3 : index
    %c56_207 = arith.constant 56 : index
    %c0_208 = arith.constant 0 : index
    %350 = vector.load %arg15[%c3_206, %c56_207, %c0_208] : memref<4x64x32xf32, #tpu.memory_space<vmem>>, vector<1x8x32xf32>
    %351 = vector.shape_cast %350 : vector<1x8x32xf32> to vector<8x32xf32>
    %cst_209 = arith.constant dense<0.000000e+00> : vector<8x32xf32>
    %352 = tpu.matmul %326, %50, %cst_209 {dimension_numbers = #tpu.dot_dimension_numbers<[1], [0], [0], [1], [0, 0, 1, 1], [], []>} : vector<8x32xbf16>, vector<32x32xbf16>, vector<8x32xf32> -> vector<8x32xf32>
    %353 = arith.addf %351, %352 : vector<8x32xf32>
    %354 = arith.negf %353 : vector<8x32xf32>
    %355 = math.exp %354 : vector<8x32xf32>
    %cst_210 = arith.constant 1.000000e+00 : f32
    %356 = vector.broadcast %cst_210 : f32 to vector<8x32xf32>
    %357 = arith.addf %356, %355 : vector<8x32xf32>
    %358 = arith.divf %356, %357 : vector<8x32xf32>
    %359 = arith.mulf %344, %322 : vector<8x32xf32>
    %360 = arith.mulf %335, %349 : vector<8x32xf32>
    %361 = arith.addf %359, %360 : vector<8x32xf32>
    %362 = math.tanh %361 : vector<8x32xf32>
    %363 = arith.mulf %358, %362 : vector<8x32xf32>
    %c56_211 = arith.constant 56 : index
    %c0_212 = arith.constant 0 : index
    %364 = vector.load %arg16[%c56_211, %c0_212] : memref<64x32xf32, #tpu.memory_space<vmem>>, vector<8x32xf32>
    tpu.vector_store %arg16[%c56_211, %c0_212], %363 {strides = array<i32>} : memref<64x32xf32, #tpu.memory_space<vmem>>, vector<8x32xf32>,
    %c0_213 = arith.constant 0 : index
    %c0_214 = arith.constant 0 : index
    %365 = vector.load %arg16[%c0_213, %c0_214] : memref<64x32xf32, #tpu.memory_space<vmem>>, vector<64x32xf32>
    %366 = arith.truncf %365 : vector<64x32xf32> to vector<64x32xbf16>
    %c0_215 = arith.constant 0 : index
    %c0_216 = arith.constant 0 : index
    %367 = vector.load %arg7[%c0_215, %c0_216] : memref<32x32xbf16, #tpu.memory_space<vmem>>, vector<32x32xbf16>
    %cst_217 = arith.constant dense<0.000000e+00> : vector<64x32xf32>
    %368 = tpu.matmul %366, %367, %cst_217 {dimension_numbers = #tpu.dot_dimension_numbers<[1], [0], [0], [1], [0, 0, 1, 1], [], []>} : vector<64x32xbf16>, vector<32x32xbf16>, vector<64x32xf32> -> vector<64x32xf32>
    %c0_218 = arith.constant 0 : index
    %c0_219 = arith.constant 0 : index
    %369 = vector.load %arg8[%c0_218, %c0_219] : memref<1x32xf32, #tpu.memory_space<vmem>>, vector<1x32xf32>
    %370 = vector.broadcast %369 : vector<1x32xf32> to vector<64x32xf32>
    %371 = arith.addf %368, %370 : vector<64x32xf32>
    %c0_220 = arith.constant 0 : index
    %c0_221 = arith.constant 0 : index
    %372 = vector.load %arg16[%c0_220, %c0_221] : memref<64x32xf32, #tpu.memory_space<vmem>>, vector<64x32xf32>
    tpu.vector_store %arg16[%c0_220, %c0_221], %371 {strides = array<i32>} : memref<64x32xf32, #tpu.memory_space<vmem>>, vector<64x32xf32>,
    %c0_222 = arith.constant 0 : index
    %c0_223 = arith.constant 0 : index
    %373 = vector.load %arg5[%c0_222, %c0_223] : memref<32x32xbf16, #tpu.memory_space<vmem>>, vector<32x32xbf16>
    %c0_224 = arith.constant 0 : index
    %c0_225 = arith.constant 0 : index
    %374 = vector.load %arg6[%c0_224, %c0_225] : memref<1x32xf32, #tpu.memory_space<vmem>>, vector<1x32xf32>
    %c0_226 = arith.constant 0 : index
    %c0_227 = arith.constant 0 : index
    %375 = vector.load %arg9[%c0_226, %c0_227] : memref<32x1xbf16, #tpu.memory_space<vmem>>, vector<32x1xbf16>
    %c0_228 = arith.constant 0 : index
    %c0_229 = arith.constant 0 : index
    %376 = vector.load %arg16[%c0_228, %c0_229] : memref<64x32xf32, #tpu.memory_space<vmem>>, vector<64x32xf32>
    %377 = vector.shape_cast %376 : vector<64x32xf32> to vector<8x8x32xf32>
    %378 = arith.truncf %363 : vector<8x32xf32> to vector<8x32xbf16>
    %cst_230 = arith.constant dense<0.000000e+00> : vector<8x32xf32>
    %379 = tpu.matmul %378, %373, %cst_230 {dimension_numbers = #tpu.dot_dimension_numbers<[1], [0], [0], [1], [0, 0, 1, 1], [], []>} : vector<8x32xbf16>, vector<32x32xbf16>, vector<8x32xf32> -> vector<8x32xf32>
    %380 = vector.broadcast %374 : vector<1x32xf32> to vector<8x32xf32>
    %381 = arith.addf %379, %380 : vector<8x32xf32>
    %382 = vector.shape_cast %381 : vector<8x32xf32> to vector<1x8x32xf32>
    %383 = vector.broadcast %382 : vector<1x8x32xf32> to vector<8x8x32xf32>
    %384 = arith.addf %383, %377 : vector<8x8x32xf32>
    %385 = math.tanh %384 : vector<8x8x32xf32>
    %386 = vector.shape_cast %385 : vector<8x8x32xf32> to vector<64x32xf32>
    %387 = arith.truncf %386 : vector<64x32xf32> to vector<64x32xbf16>
    %cst_231 = arith.constant dense<0.000000e+00> : vector<64x1xf32>
    %388 = tpu.matmul %387, %375, %cst_231 {dimension_numbers = #tpu.dot_dimension_numbers<[1], [0], [0], [1], [0, 0, 1, 1], [], []>} : vector<64x32xbf16>, vector<32x1xbf16>, vector<64x1xf32> -> vector<64x1xf32>
    %389 = vector.shape_cast %388 : vector<64x1xf32> to vector<8x8x1xf32>
    %cst_232 = arith.constant dense<0xFF800000> : vector<8x1xf32>
    %390 = vector.multi_reduction <maximumf>, %389, %cst_232 [0] : vector<8x8x1xf32> to vector<8x1xf32>
    %391 = vector.shape_cast %390 : vector<8x1xf32> to vector<1x8x1xf32>
    %392 = vector.broadcast %391 : vector<1x8x1xf32> to vector<8x8x1xf32>
    %393 = arith.subf %389, %392 : vector<8x8x1xf32>
    %394 = math.exp %393 : vector<8x8x1xf32>
    %cst_233 = arith.constant dense<0.000000e+00> : vector<8x1xf32>
    %395 = vector.multi_reduction <add>, %394, %cst_233 [0] : vector<8x8x1xf32> to vector<8x1xf32>
    %396 = vector.shape_cast %395 : vector<8x1xf32> to vector<1x8x1xf32>
    %397 = vector.broadcast %396 : vector<1x8x1xf32> to vector<8x8x1xf32>
    %398 = arith.divf %394, %397 : vector<8x8x1xf32>
    %399 = vector.broadcast %398 : vector<8x8x1xf32> to vector<8x8x32xf32>
    %400 = arith.mulf %377, %399 : vector<8x8x32xf32>
    %cst_234 = arith.constant dense<0.000000e+00> : vector<8x32xf32>
    %401 = vector.multi_reduction <add>, %400, %cst_234 [0] : vector<8x8x32xf32> to vector<8x32xf32>
    %c0_235 = arith.constant 0 : index
    %c0_236 = arith.constant 0 : index
    %402 = vector.load %arg16[%c0_235, %c0_236] : memref<64x32xf32, #tpu.memory_space<vmem>>, vector<64x32xf32>
    %403 = vector.shape_cast %402 : vector<64x32xf32> to vector<8x8x32xf32>
    %404 = arith.truncf %401 : vector<8x32xf32> to vector<8x32xbf16>
    %cst_237 = arith.constant dense<0.000000e+00> : vector<8x32xf32>
    %405 = tpu.matmul %404, %373, %cst_237 {dimension_numbers = #tpu.dot_dimension_numbers<[1], [0], [0], [1], [0, 0, 1, 1], [], []>} : vector<8x32xbf16>, vector<32x32xbf16>, vector<8x32xf32> -> vector<8x32xf32>
    %406 = vector.broadcast %374 : vector<1x32xf32> to vector<8x32xf32>
    %407 = arith.addf %405, %406 : vector<8x32xf32>
    %408 = vector.shape_cast %407 : vector<8x32xf32> to vector<1x8x32xf32>
    %409 = vector.broadcast %408 : vector<1x8x32xf32> to vector<8x8x32xf32>
    %410 = arith.addf %409, %403 : vector<8x8x32xf32>
    %411 = math.tanh %410 : vector<8x8x32xf32>
    %412 = vector.shape_cast %411 : vector<8x8x32xf32> to vector<64x32xf32>
    %413 = arith.truncf %412 : vector<64x32xf32> to vector<64x32xbf16>
    %cst_238 = arith.constant dense<0.000000e+00> : vector<64x1xf32>
    %414 = tpu.matmul %413, %375, %cst_238 {dimension_numbers = #tpu.dot_dimension_numbers<[1], [0], [0], [1], [0, 0, 1, 1], [], []>} : vector<64x32xbf16>, vector<32x1xbf16>, vector<64x1xf32> -> vector<64x1xf32>
    %415 = vector.shape_cast %414 : vector<64x1xf32> to vector<8x8x1xf32>
    %cst_239 = arith.constant dense<0xFF800000> : vector<8x1xf32>
    %416 = vector.multi_reduction <maximumf>, %415, %cst_239 [0] : vector<8x8x1xf32> to vector<8x1xf32>
    %417 = vector.shape_cast %416 : vector<8x1xf32> to vector<1x8x1xf32>
    %418 = vector.broadcast %417 : vector<1x8x1xf32> to vector<8x8x1xf32>
    %419 = arith.subf %415, %418 : vector<8x8x1xf32>
    %420 = math.exp %419 : vector<8x8x1xf32>
    %cst_240 = arith.constant dense<0.000000e+00> : vector<8x1xf32>
    %421 = vector.multi_reduction <add>, %420, %cst_240 [0] : vector<8x8x1xf32> to vector<8x1xf32>
    %422 = vector.shape_cast %421 : vector<8x1xf32> to vector<1x8x1xf32>
    %423 = vector.broadcast %422 : vector<1x8x1xf32> to vector<8x8x1xf32>
    %424 = arith.divf %420, %423 : vector<8x8x1xf32>
    %425 = vector.broadcast %424 : vector<8x8x1xf32> to vector<8x8x32xf32>
    %426 = arith.mulf %403, %425 : vector<8x8x32xf32>
    %cst_241 = arith.constant dense<0.000000e+00> : vector<8x32xf32>
    %427 = vector.multi_reduction <add>, %426, %cst_241 [0] : vector<8x8x32xf32> to vector<8x32xf32>
    %c0_242 = arith.constant 0 : index
    %c0_243 = arith.constant 0 : index
    %428 = vector.load %arg16[%c0_242, %c0_243] : memref<64x32xf32, #tpu.memory_space<vmem>>, vector<64x32xf32>
    %429 = vector.shape_cast %428 : vector<64x32xf32> to vector<8x8x32xf32>
    %430 = arith.truncf %427 : vector<8x32xf32> to vector<8x32xbf16>
    %cst_244 = arith.constant dense<0.000000e+00> : vector<8x32xf32>
    %431 = tpu.matmul %430, %373, %cst_244 {dimension_numbers = #tpu.dot_dimension_numbers<[1], [0], [0], [1], [0, 0, 1, 1], [], []>} : vector<8x32xbf16>, vector<32x32xbf16>, vector<8x32xf32> -> vector<8x32xf32>
    %432 = vector.broadcast %374 : vector<1x32xf32> to vector<8x32xf32>
    %433 = arith.addf %431, %432 : vector<8x32xf32>
    %434 = vector.shape_cast %433 : vector<8x32xf32> to vector<1x8x32xf32>
    %435 = vector.broadcast %434 : vector<1x8x32xf32> to vector<8x8x32xf32>
    %436 = arith.addf %435, %429 : vector<8x8x32xf32>
    %437 = math.tanh %436 : vector<8x8x32xf32>
    %438 = vector.shape_cast %437 : vector<8x8x32xf32> to vector<64x32xf32>
    %439 = arith.truncf %438 : vector<64x32xf32> to vector<64x32xbf16>
    %cst_245 = arith.constant dense<0.000000e+00> : vector<64x1xf32>
    %440 = tpu.matmul %439, %375, %cst_245 {dimension_numbers = #tpu.dot_dimension_numbers<[1], [0], [0], [1], [0, 0, 1, 1], [], []>} : vector<64x32xbf16>, vector<32x1xbf16>, vector<64x1xf32> -> vector<64x1xf32>
    %441 = vector.shape_cast %440 : vector<64x1xf32> to vector<8x8x1xf32>
    %cst_246 = arith.constant dense<0xFF800000> : vector<8x1xf32>
    %442 = vector.multi_reduction <maximumf>, %441, %cst_246 [0] : vector<8x8x1xf32> to vector<8x1xf32>
    %443 = vector.shape_cast %442 : vector<8x1xf32> to vector<1x8x1xf32>
    %444 = vector.broadcast %443 : vector<1x8x1xf32> to vector<8x8x1xf32>
    %445 = arith.subf %441, %444 : vector<8x8x1xf32>
    %446 = math.exp %445 : vector<8x8x1xf32>
    %cst_247 = arith.constant dense<0.000000e+00> : vector<8x1xf32>
    %447 = vector.multi_reduction <add>, %446, %cst_247 [0] : vector<8x8x1xf32> to vector<8x1xf32>
    %448 = vector.shape_cast %447 : vector<8x1xf32> to vector<1x8x1xf32>
    %449 = vector.broadcast %448 : vector<1x8x1xf32> to vector<8x8x1xf32>
    %450 = arith.divf %446, %449 : vector<8x8x1xf32>
    %451 = vector.broadcast %450 : vector<8x8x1xf32> to vector<8x8x32xf32>
    %452 = arith.mulf %429, %451 : vector<8x8x32xf32>
    %cst_248 = arith.constant dense<0.000000e+00> : vector<8x32xf32>
    %453 = vector.multi_reduction <add>, %452, %cst_248 [0] : vector<8x8x32xf32> to vector<8x32xf32>
    %454 = arith.truncf %453 : vector<8x32xf32> to vector<8x32xbf16>
    %c0_249 = arith.constant 0 : index
    %c0_250 = arith.constant 0 : index
    %455 = vector.load %arg10[%c0_249, %c0_250] : memref<32x32xbf16, #tpu.memory_space<vmem>>, vector<32x32xbf16>
    %cst_251 = arith.constant dense<0.000000e+00> : vector<8x32xf32>
    %456 = tpu.matmul %454, %455, %cst_251 {dimension_numbers = #tpu.dot_dimension_numbers<[1], [0], [0], [1], [0, 0, 1, 1], [], []>} : vector<8x32xbf16>, vector<32x32xbf16>, vector<8x32xf32> -> vector<8x32xf32>
    %c0_252 = arith.constant 0 : index
    %c0_253 = arith.constant 0 : index
    %457 = vector.load %arg11[%c0_252, %c0_253] : memref<1x32xf32, #tpu.memory_space<vmem>>, vector<1x32xf32>
    %458 = vector.broadcast %457 : vector<1x32xf32> to vector<8x32xf32>
    %459 = arith.addf %456, %458 : vector<8x32xf32>
    %cst_254 = arith.constant 0.000000e+00 : f32
    %460 = vector.broadcast %cst_254 : f32 to vector<8x32xf32>
    %461 = arith.maximumf %459, %460 : vector<8x32xf32>
    %462 = arith.truncf %461 : vector<8x32xf32> to vector<8x32xbf16>
    %c0_255 = arith.constant 0 : index
    %c0_256 = arith.constant 0 : index
    %463 = vector.load %arg12[%c0_255, %c0_256] : memref<32x1xbf16, #tpu.memory_space<vmem>>, vector<32x1xbf16>
    %cst_257 = arith.constant dense<0.000000e+00> : vector<8x1xf32>
    %464 = tpu.matmul %462, %463, %cst_257 {dimension_numbers = #tpu.dot_dimension_numbers<[1], [0], [0], [1], [0, 0, 1, 1], [], []>} : vector<8x32xbf16>, vector<32x1xbf16>, vector<8x1xf32> -> vector<8x1xf32>
    %c0_258 = arith.constant 0 : index
    %c0_259 = arith.constant 0 : index
    %465 = memref.load %arg13[%c0_258, %c0_259] : memref<1x1xf32, #tpu.memory_space<smem>>
    %466 = vector.broadcast %465 : f32 to vector<8x1xf32>
    %467 = arith.addf %464, %466 : vector<8x1xf32>
    %c0_260 = arith.constant 0 : index
    %c0_261 = arith.constant 0 : index
    %468 = vector.load %arg14[%c0_260, %c0_261] : memref<8x1xf32, #tpu.memory_space<vmem>>, vector<8x1xf32>
    tpu.vector_store %arg14[%c0_260, %c0_261], %467 {strides = array<i32>} : memref<8x1xf32, #tpu.memory_space<vmem>>, vector<8x1xf32>,
    return
  }
  func.func @transform_0(%arg0: i32) -> (i32, i32, i32) {
    %c0_i32 = arith.constant 0 : i32
    %c0_i32_0 = arith.constant 0 : i32
    %c0_i32_1 = arith.constant 0 : i32
    return %c0_i32, %arg0, %c0_i32_0 : i32, i32, i32
  }
  func.func @transform_1(%arg0: i32) -> (i32, i32, i32) {
    %c0_i32 = arith.constant 0 : i32
    %c0_i32_0 = arith.constant 0 : i32
    %c0_i32_1 = arith.constant 0 : i32
    %c0_i32_2 = arith.constant 0 : i32
    return %c0_i32, %c0_i32_0, %c0_i32_1 : i32, i32, i32
  }
  func.func @transform_2(%arg0: i32) -> (i32, i32, i32) {
    %c0_i32 = arith.constant 0 : i32
    %c0_i32_0 = arith.constant 0 : i32
    %c0_i32_1 = arith.constant 0 : i32
    %c0_i32_2 = arith.constant 0 : i32
    return %c0_i32, %c0_i32_0, %c0_i32_1 : i32, i32, i32
  }
  func.func @transform_3(%arg0: i32) -> (i32, i32, i32) {
    %c0_i32 = arith.constant 0 : i32
    %c0_i32_0 = arith.constant 0 : i32
    %c0_i32_1 = arith.constant 0 : i32
    %c0_i32_2 = arith.constant 0 : i32
    return %c0_i32, %c0_i32_0, %c0_i32_1 : i32, i32, i32
  }
  func.func @transform_4(%arg0: i32) -> (i32, i32) {
    %c0_i32 = arith.constant 0 : i32
    %c0_i32_0 = arith.constant 0 : i32
    %c0_i32_1 = arith.constant 0 : i32
    return %c0_i32, %c0_i32_0 : i32, i32
  }
  func.func @transform_5(%arg0: i32) -> (i32, i32) {
    %c0_i32 = arith.constant 0 : i32
    %c0_i32_0 = arith.constant 0 : i32
    %c0_i32_1 = arith.constant 0 : i32
    return %c0_i32, %c0_i32_0 : i32, i32
  }
  func.func @transform_6(%arg0: i32) -> (i32, i32) {
    %c0_i32 = arith.constant 0 : i32
    %c0_i32_0 = arith.constant 0 : i32
    %c0_i32_1 = arith.constant 0 : i32
    return %c0_i32, %c0_i32_0 : i32, i32
  }
  func.func @transform_7(%arg0: i32) -> (i32, i32) {
    %c0_i32 = arith.constant 0 : i32
    %c0_i32_0 = arith.constant 0 : i32
    %c0_i32_1 = arith.constant 0 : i32
    return %c0_i32, %c0_i32_0 : i32, i32
  }
  func.func @transform_8(%arg0: i32) -> (i32, i32) {
    %c0_i32 = arith.constant 0 : i32
    %c0_i32_0 = arith.constant 0 : i32
    %c0_i32_1 = arith.constant 0 : i32
    return %c0_i32, %c0_i32_0 : i32, i32
  }
  func.func @transform_9(%arg0: i32) -> (i32, i32) {
    %c0_i32 = arith.constant 0 : i32
    %c0_i32_0 = arith.constant 0 : i32
    %c0_i32_1 = arith.constant 0 : i32
    return %c0_i32, %c0_i32_0 : i32, i32
  }
  func.func @transform_10(%arg0: i32) -> (i32, i32) {
    %c0_i32 = arith.constant 0 : i32
    %c0_i32_0 = arith.constant 0 : i32
    %c0_i32_1 = arith.constant 0 : i32
    return %c0_i32, %c0_i32_0 : i32, i32
  }
  func.func @transform_11(%arg0: i32) -> (i32, i32) {
    %c0_i32 = arith.constant 0 : i32
    %c0_i32_0 = arith.constant 0 : i32
    %c0_i32_1 = arith.constant 0 : i32
    return %c0_i32, %c0_i32_0 : i32, i32
  }
  func.func @transform_12(%arg0: i32) -> (i32, i32) {
    %c0_i32 = arith.constant 0 : i32
    %c0_i32_0 = arith.constant 0 : i32
    %c0_i32_1 = arith.constant 0 : i32
    return %c0_i32, %c0_i32_0 : i32, i32
  }
  func.func @transform_13(%arg0: i32) -> (i32, i32) {
    %c0_i32 = arith.constant 0 : i32
    %c0_i32_0 = arith.constant 0 : i32
    return %arg0, %c0_i32 : i32, i32
  }
}

</mosaic_0001>

<bundles_post_ra>
// kernel: tpu_custom_call.1
= control target key start
LH: loop header
LB: loop body
LE: loop exit
PB: predicated region body
PF: predicated region fallthrough
CT: control target
= control target key end

     0   :  { %19 = vsyncpa [#allocation6], 0  ;;  %s5051_s0 = inlined_call_operand.hbm [shape: f32[8,8,8], index: 0, kind: input, shape index: {}]   ;;  %s5052_s1 = inlined_call_operand.vmem [shape: bf16[4,8,32], index: 1, kind: input, shape index: {}]   ;;  %s5053_s2 = inlined_call_operand.hbm [shape: bf16[4,32,32], index: 2, kind: input, shape index: {}]   ;;  %s5054_s3 = inlined_call_operand.hbm [shape: f32[4,1,32], index: 3, kind: input, shape index: {}]   ;;  %s5055_s4 = inlined_call_operand.vmem [shape: bf16[32,32], index: 4, kind: input, shape index: {}]   ;;  %s5056_s5 = inlined_call_operand.hbm [shape: f32[1,32], index: 5, kind: input, shape index: {}]   ;;  %s5057_s6 = inlined_call_operand.vmem [shape: bf16[32,32], index: 6, kind: input, shape index: {}]   ;;  %s5058_s7 = inlined_call_operand.hbm [shape: f32[1,32], index: 7, kind: input, shape index: {}]   ;;  %s5059_s8 = inlined_call_operand.vmem [shape: bf16[32,1], index: 8, kind: input, shape index: {}]   ;;  %s5060_s9 = inlined_call_operand.vmem [shape: bf16[32,32], index: 9, kind: input, shape index: {}]   ;;  %s5061_s10 = inlined_call_operand.vmem [shape: f32[1,32], index: 10, kind: input, shape index: {}]   ;;  %s5062_s11 = inlined_call_operand.vmem [shape: bf16[32,1], index: 11, kind: input, shape index: {}]   ;;  %s5063_s12 = inlined_call_operand.<no memory space> [shape: f32[1,1], index: 12, kind: input, shape index: {}]   ;;  %s5064_s13 = inlined_call_operand.vmem [shape: f32[8,1], index: 13, kind: output, shape index: {}]  }
   0x1   :  { %20 = vsyncpa [#allocation8], 0 }
   0x2   :  { %21 = vsyncpa [#allocation11], 0  ;;  %s4279_s25 = smov [#allocation7]   ;;  %s4163_s29 = scalar_lea.hbm %s5053_s2, 1024 }
   0x3   :  { %s41_s26 = sshll.u32 %s4279_s25, 4  ;;  %p4164_p0 = scmp.ne.s32.totalorder %s5053_s2, %s4163_s29  ;;  %s42_s26 = int_to_ptr.vmem [resolvable:$true] %s41_s26 }
   0x4   :  { %p4167_p1 = scmp.lt.u32.totalorder %s4163_s29, %s5053_s2 }
   0x6   :  { %p4169_p2 = pnand %p4167_p1, %p4164_p0 }
   0x8   :  { %4172 = shalt.err (!%p4169_p2)
}
   0x9   :  { %s4173_s17 = scalar_lea.vmem %s42_s26, 1024  ;;  %p4178_p4 = scmp.lt.s32.totalorder %s42_s26, %s42_s26 }
   0xa   :  { %p4174_p3 = scmp.ne.s32.totalorder %s42_s26, %s4173_s17  ;;  %p4179_p5 = scmp.lt.s32.totalorder %s4173_s17, %s4173_s17 }
   0xc   :  { %p4180_p6 = por %p4179_p5, %p4178_p4 }
   0xe   :  { %p4181_p7 = pnand %p4180_p6, %p4174_p3 }
  0x10   :  { %4184 = shalt.err (!%p4181_p7)
}
  0x11   :  { %s4280_s18 = smov 64   ;;  %s4281_s19 = smov 4  }
  0x12   :  { %47 = dma.hbm_to_vmem [thread:$0]  %s5053_s2, 1024, %s42_s26, [#allocation8], %s4280_s18, %s4280_s18, %s4281_s19  }
  0x13   :  { %s4282_s22 = smov [#allocation10]   ;;  %s4283_s24 = smov [#allocation5]  }
  0x14   :  { %s68_s23 = sshll.u32 %s4282_s22, 4  ;;  %s27_s25 = sshll.u32 %s4283_s24, 4  ;;  %s69_s23 = int_to_ptr.vmem [resolvable:$true] %s68_s23  ;;  %s28_s25 = int_to_ptr.vmem [resolvable:$true] %s27_s25 }
  0x15   :  { %s4185_s29 = scalar_lea.hbm %s5056_s5, 16 }
  0x16   :  { %p4186_p8 = scmp.ne.s32.totalorder %s5056_s5, %s4185_s29  ;;  %p4189_p9 = scmp.lt.u32.totalorder %s4185_s29, %s5056_s5 }
  0x18   :  { %p4191_p10 = pnand %p4189_p9, %p4186_p8 }
  0x1a   :  { %4194 = shalt.err (!%p4191_p10)
}
  0x1b   :  { %s4195_s2 = scalar_lea.vmem %s69_s23, 16  ;;  %s4199_s26 = scalar_lea.vmem %s69_s23, 32 }
  0x1c   :  { %p4196_p11 = scmp.ne.s32.totalorder %s69_s23, %s4195_s2  ;;  %p4200_p12 = scmp.lt.s32.totalorder %s69_s23, %s69_s23 }
  0x1d   :  { %p4201_p13 = scmp.lt.s32.totalorder %s4199_s26, %s4195_s2 }
  0x1f   :  { %p4202_p0 = por %p4201_p13, %p4200_p12 }
  0x21   :  { %p4203_p1 = pnand %p4202_p0, %p4196_p11 }
  0x23   :  { %4206 = shalt.err (!%p4203_p1)
}
  0x24   :  { %71 = dma.hbm_to_vmem [thread:$0]  %s5056_s5, 16, %s69_s23, [#allocation11]  }
  0x25   :  { %s4207_s21 = scalar_lea.hbm %s5051_s0, 1024 }
  0x26   :  { %p4208_p2 = scmp.ne.s32.totalorder %s5051_s0, %s4207_s21  ;;  %p4211_p3 = scmp.lt.u32.totalorder %s4207_s21, %s5051_s0 }
  0x28   :  { %p4213_p4 = pnand %p4211_p3, %p4208_p2 }
  0x2a   :  { %4216 = shalt.err (!%p4213_p4)
}
  0x2b   :  { %s4217_s29 = scalar_lea.vmem %s28_s25, 1024  ;;  %p4222_p6 = scmp.lt.s32.totalorder %s28_s25, %s28_s25 }
  0x2c   :  { %p4218_p5 = scmp.ne.s32.totalorder %s28_s25, %s4217_s29  ;;  %p4223_p7 = scmp.lt.s32.totalorder %s4217_s29, %s4217_s29 }
  0x2e   :  { %p4224_p8 = por %p4223_p7, %p4222_p6 }
  0x30   :  { %p4225_p9 = pnand %p4224_p8, %p4218_p5 }
  0x32   :  { %4228 = shalt.err (!%p4225_p9)
}
  0x33   :  { %s4284_s5 = smov 128   ;;  %s4285_s23 = smov 8  }
  0x34   :  { %33 = dma.hbm_to_vmem [thread:$0]  %s5051_s0, 1024, %s28_s25, [#allocation6], %s4284_s5, %s4284_s5, %s4285_s23  }
  0x35   :  { %s4286_s15 = smov [#allocation9]   ;;  %s4229_s17 = scalar_lea.hbm %s5054_s3, 64 }
  0x36   :  { %s53_s16 = sshll.u32 %s4286_s15, 4  ;;  %p4230_p10 = scmp.ne.s32.totalorder %s5054_s3, %s4229_s17  ;;  %s54_s16 = int_to_ptr.vmem [resolvable:$true] %s53_s16 }
  0x37   :  { %p4233_p11 = scmp.lt.u32.totalorder %s4229_s17, %s5054_s3 }
  0x39   :  { %p4235_p12 = pnand %p4233_p11, %p4230_p10 }
  0x3b   :  { %4238 = shalt.err (!%p4235_p12)
}
  0x3c   :  { %s4239_s22 = scalar_lea.vmem %s54_s16, 64  ;;  %p4244_p0 = scmp.lt.s32.totalorder %s54_s16, %s54_s16 }
  0x3d   :  { %p4240_p13 = scmp.ne.s32.totalorder %s54_s16, %s4239_s22  ;;  %p4245_p1 = scmp.lt.s32.totalorder %s4239_s22, %s4239_s22 }
  0x3f   :  { %p4246_p2 = por %p4245_p1, %p4244_p0 }
  0x41   :  { %p4247_p3 = pnand %p4246_p2, %p4240_p13 }
  0x43   :  { %4250 = shalt.err (!%p4247_p3)
}
  0x44   :  { %s4287_s0 = smov 16   ;;  %s4288_s25 = smov 1  }
  0x45   :  { %59 = dma.hbm_to_vmem [thread:$0]  %s5054_s3, 64, %s54_s16, [#allocation8], %s4287_s0, %s4287_s0, %s4288_s25  }
  0x46   :  { %s4289_s28 = smov [#allocation12]   ;;  %s4251_s30 = scalar_lea.hbm %s5058_s7, 16 }
  0x47   :  { %s80_s29 = sshll.u32 %s4289_s28, 4  ;;  %p4252_p4 = scmp.ne.s32.totalorder %s5058_s7, %s4251_s30  ;;  %s81_s29 = int_to_ptr.vmem [resolvable:$true] %s80_s29 }
  0x48   :  { %p4255_p5 = scmp.lt.u32.totalorder %s4251_s30, %s5058_s7 }
  0x4a   :  { %p4257_p6 = pnand %p4255_p5, %p4252_p4 }
  0x4c   :  { %4260 = shalt.err (!%p4257_p6)
}
  0x4d   :  { %s4261_s17 = scalar_lea.vmem %s81_s29, 16  ;;  %s4265_s3 = scalar_lea.vmem %s81_s29, 32 }
  0x4e   :  { %p4262_p7 = scmp.ne.s32.totalorder %s81_s29, %s4261_s17  ;;  %p4266_p8 = scmp.lt.s32.totalorder %s81_s29, %s81_s29 }
  0x4f   :  { %p4267_p9 = scmp.lt.s32.totalorder %s4265_s3, %s4261_s17 }
  0x51   :  { %p4268_p10 = por %p4267_p9, %p4266_p8 }
  0x53   :  { %p4269_p11 = pnand %p4268_p10, %p4262_p7 }
  0x55   :  { %4272 = shalt.err (!%p4269_p11)
}
  0x56   :  { %83 = dma.hbm_to_vmem [thread:$0]  %s5058_s7, 16, %s81_s29, [#allocation11]  }
  0x57   :  { %4273 = dma.done.wait [#allocation6], 1024  }
  0x58   :  { %4274 = vsyncadd [#allocation6], 4294966272 }
  0x59   :  { %4275 = dma.done.wait [#allocation8], 1088  }
  0x5a   :  { %4276 = vsyncadd [#allocation8], 4294966208 }
  0x5b   :  { %4277 = dma.done.wait [#allocation11], 32  }
  0x5c   :  { %4278 = vsyncadd [#allocation11], 4294967264  ;;  %v4290_v0 = vmov 0   ;;  %vm143_vm0 = vcmask 1043456   ;;  %v122_v1 = vld [vmem:[%s5052_s1] sm:$0xf] }
  0x5d   :  { %3906 = vset.pattern.permute.xlu1 %v4290_v0  ;;  %3905 = vset.pattern.permute.xlu0 %v4290_v0  ;;  %v3236_v2 = vld [vmem:[%s5052_s1 + $0x4] sm:$0xf]  ;;  %v145_v4 = vsel %vm143_vm0, %v122_v1, 0  ;;  %v111_v6 = vld [vmem:[#allocation5 + $0x8] sm:$0xff]  ;;  %vm130_vm1 = vcmask 64512   ;;  %v112_v7 = vld [vmem:[#allocation5 + $0x10] sm:$0xff] }
  0x5e   :  { %v110_v3 = vld [vmem:[#allocation5] sm:$0xff]  ;;  %3887 = vmatprep.subr.msk.bf16.mxu0 %vm143_vm0, %v122_v1  ;;  %3888 = vmatprep.subr.msk.bf16.mxu1 %vm143_vm0, %v3236_v2  ;;  %v232_v5 = vsel %vm143_vm0, %v3236_v2, 0  ;;  %v113_v8 = vld [vmem:[#allocation5 + $0x18] sm:$0xff]  ;;  %v3242_v11 = vld [vmem:[%s5052_s1 + $0x8] sm:$0xf]  ;;  %v4291_v20 = vmov 0.0  }
  0x5f   :  { %3504 = vmatpush3.bf16.msra.mxu0 %v145_v4  ;;  %3514 = vmatpush3.bf16.msra.mxu1 %v232_v5  ;;  %v118_v9 = vpack.c.bf16 %v111_v6, %v110_v3  ;;  %v119_v10 = vpack.c.bf16 %v113_v8, %v112_v7  ;;  %v3248_v12 = vld [vmem:[%s5052_s1 + $0xc] sm:$0xf]  ;;  %v114_v13 = vld [vmem:[#allocation5 + $0x20] sm:$0xff]  ;;  %v319_v14 = vsel %vm143_vm0, %v3242_v11, 0  ;;  %v116_v18 = vld [vmem:[#allocation5 + $0x30] sm:$0xff]  ;;  %vm4292_vm2 = vmmov 0  }
  0x60   :  { %3889 = vmatprep.subr.msk.bf16.mxu0 %vm143_vm0, %v3242_v11  ;;  %3890 = vmatprep.subr.msk.bf16.mxu1 %vm143_vm0, %v3248_v12  ;;  %v406_v15 = vsel %vm143_vm0, %v3248_v12, 0  ;;  %v115_v16 = vld [vmem:[#allocation5 + $0x28] sm:$0xff]  ;;  %v117_v19 = vld [vmem:[#allocation5 + $0x38] sm:$0xff]  ;;  %v4457_v22 = vld [vmem:[#allocation7] sm:$0xff]   ;;  %vm212_vm3 = vcmask 261120   ;;  %vm2432_vm4 = vcmask 7168  }
  0x61   :  { %3505 = vmatprep.mubr.msk.bf16.mxu0 %vm130_vm1, %v118_v9  ;;  %3515 = vmatprep.mubr.msk.bf16.mxu1 %vm130_vm1, %v118_v9  ;;  %v120_v17 = vpack.c.bf16 %v115_v16, %v114_v13  ;;  %v121_v21 = vpack.c.bf16 %v117_v19, %v116_v18  ;;  %v4459_v23 = vld [vmem:[#allocation7 + $0x10] sm:$0xff]   ;;  %v4465_v24 = vld [vmem:[#allocation7 + $0x8] sm:$0xff]   ;;  %v4467_v25 = vld [vmem:[#allocation7 + $0x18] sm:$0xff]  }
  0x62   :  { %3506 = vmatmul.mubr.msk.bf16.vlgmr.msra.gmra.mrb[0].mxu0 %vm130_vm1, %v119_v10  ;;  %3516 = vmatmul.mubr.msk.bf16.vlgmr.msra.gmra.mrb[0].mxu1 %vm130_vm1, %v119_v10  ;;  %v4483_v26 = vld [vmem:[#allocation7 + $0x20] sm:$0xff]   ;;  %v4485_v27 = vld [vmem:[#allocation7 + $0x30] sm:$0xff]   ;;  %v4491_v28 = vld [vmem:[#allocation7 + $0x28] sm:$0xff]  }
  0x63   :  { %3524 = vmatpush3.bf16.msra.mxu0 %v319_v14  ;;  %3534 = vmatpush3.bf16.msra.mxu1 %v406_v15  ;;  %v4493_v29 = vld [vmem:[#allocation7 + $0x38] sm:$0xff]   ;;  %v3231_v30 = vld [vmem:[#allocation9] ss:$0 sm:$0xff]  ;;  %v3237_v31 = vld [vmem:[#allocation9 + $0x1] ss:$0 sm:$0xff] }
  0x64   :  { %3509 = vmatprep.mubr.msk.bf16.mxu0 %vm130_vm1, %v120_v17  ;;  %3519 = vmatprep.mubr.msk.bf16.mxu1 %vm130_vm1, %v120_v17  ;;  %v3249_v1 = vld [vmem:[#allocation9 + $0x3] ss:$0 sm:$0xff] }
  0x65   :  { %3543 = vmatprep.subr.bf16.mxu0 %v4291_v20  ;;  %3551 = vmatprep.subr.bf16.mxu1 %v4291_v20 }
  0x6a   :  { %3510 = vmatmul.mubr.msk.bf16.gmra.mrb[4].mxu0 %vm130_vm1, %v121_v21  ;;  %3520 = vmatmul.mubr.msk.bf16.gmra.mrb[4].mxu1 %vm130_vm1, %v121_v21 }
  0x6b   :  { %3525 = vmatprep.mubr.msk.bf16.mxu0 %vm130_vm1, %v118_v9  ;;  %3535 = vmatprep.mubr.msk.bf16.mxu1 %vm130_vm1, %v118_v9 }
  0x72   :  { %3526 = vmatmul.mubr.msk.bf16.vlgmr.msra.gmra.mrb[8].mxu0 %vm130_vm1, %v119_v10  ;;  %3536 = vmatmul.mubr.msk.bf16.vlgmr.msra.gmra.mrb[8].mxu1 %vm130_vm1, %v119_v10 }
  0x73   :  { %3544 = vmatpush3.bf16.msra.mxu0 %v4457_v22  ;;  %3552 = vmatpush3.bf16.msra.mxu1 %v4459_v23 }
  0x74   :  { %3529 = vmatprep.mubr.msk.bf16.mxu0 %vm130_vm1, %v120_v17  ;;  %3539 = vmatprep.mubr.msk.bf16.mxu1 %vm130_vm1, %v120_v17 }
  0x75   :  { %3545 = vmatprep.subr.bf16.mxu0 %v4291_v20  ;;  %3553 = vmatprep.subr.bf16.mxu1 %v4291_v20 }
  0x77   :  { %3546 = vmatpush3.bf16.msra.mxu0 %v4465_v24  ;;  %3554 = vmatpush3.bf16.msra.mxu1 %v4467_v25 }
  0x78   :  { %3559 = vmatprep.subr.bf16.mxu0 %v4291_v20  ;;  %3567 = vmatprep.subr.bf16.mxu1 %v4291_v20 }
  0x7a   :  { %3530 = vmatmul.mubr.msk.bf16.gmra.mrb[12].mxu0 %vm130_vm1, %v121_v21  ;;  %3540 = vmatmul.mubr.msk.bf16.gmra.mrb[12].mxu1 %vm130_vm1, %v121_v21 }
  0x7b   :  { %3547 = vmatprep.mubr.msk.bf16.mxu0 %vm4292_vm2, %v4291_v20  ;;  %3555 = vmatprep.mubr.msk.bf16.mxu1 %vm4292_vm2, %v4291_v20 }
  0x82   :  { %3548 = vmatmul.mubr.bf16.vlgmr.msra.gmra.mrb[16].mxu0 %v4290_v0  ;;  %3556 = vmatmul.mubr.bf16.vlgmr.msra.gmra.mrb[16].mxu1 %v4290_v0 }
  0x83   :  { %3560 = vmatpush3.bf16.msra.mxu0 %v4483_v26  ;;  %3568 = vmatpush3.bf16.msra.mxu1 %v4485_v27 }
  0x84   :  { %3561 = vmatprep.subr.bf16.mxu0 %v4291_v20  ;;  %3569 = vmatprep.subr.bf16.mxu1 %v4291_v20 }
  0x85   :  { %3563 = vmatprep.mubr.msk.bf16.mxu0 %vm4292_vm2, %v4291_v20  ;;  %3571 = vmatprep.mubr.msk.bf16.mxu1 %vm4292_vm2, %v4291_v20 }
  0x87   :  { %3562 = vmatpush3.bf16.msra.mxu0 %v4491_v28  ;;  %3570 = vmatpush3.bf16.msra.mxu1 %v4493_v29 }
  0x88   :  { %3575 = vmatprep.subr.bf16.mxu0 %v4291_v20  ;;  %3583 = vmatprep.subr.bf16.mxu1 %v4291_v20 }
  0x8a   :  { %3564 = vmatmul.mubr.bf16.vlgmr.msra.gmra.mrb[20].mxu0 %v4290_v0  ;;  %3572 = vmatmul.mubr.bf16.vlgmr.msra.gmra.mrb[20].mxu1 %v4290_v0  ;;  %v3243_v0 = vld [vmem:[#allocation9 + $0x2] ss:$0 sm:$0xff] }
  0x8b   :  { %3576 = vmatpush3.bf16.msra.mxu0 %v4457_v22  ;;  %3584 = vmatpush3.bf16.msra.mxu1 %v4459_v23 }
  0x8c   :  { %3577 = vmatprep.subr.bf16.mxu0 %v4291_v20  ;;  %3585 = vmatprep.subr.bf16.mxu1 %v4291_v20 }
  0x8d   :  { %3579 = vmatprep.mubr.msk.bf16.mxu0 %vm4292_vm2, %v4291_v20  ;;  %3587 = vmatprep.mubr.msk.bf16.mxu1 %vm4292_vm2, %v4291_v20 }
  0x8f   :  { %3578 = vmatpush3.bf16.msra.mxu0 %v4465_v24  ;;  %3586 = vmatpush3.bf16.msra.mxu1 %v4467_v25 }
  0x90   :  { %3591 = vmatprep.subr.bf16.mxu0 %v4291_v20  ;;  %3599 = vmatprep.subr.bf16.mxu1 %v4291_v20 }
 0x135   :  { %v3507_v32 = vpop.f32.mrb[0].mxu0  ;;  %v3517_v33 = vpop.f32.mrb[0].mxu1 }
 0x136   :  { %v190_v34 = vadd.f32 %v3507_v32, %v3231_v30  ;;  %v277_v35 = vadd.f32 %v3517_v33, %v3237_v31  ;;  %v181_v36 = vpop.f32.mrb[1].mxu0  ;;  %v268_v37 = vpop.f32.mrb[1].mxu1 }
 0x137   :  { %v182_v38 = vadd.f32 %v3231_v30, %v181_v36  ;;  %v269_v39 = vadd.f32 %v3237_v31, %v268_v37  ;;  %v3508_v40 = vpop.f32.mrb[2].mxu0  ;;  %v3518_v41 = vpop.f32.mrb[2].mxu1 }
 0x138   :  { %215 = vst.msk [vmem:[#allocation2 + $0x10] sm:$0xff] %vm212_vm3, %v190_v34  ;;  %302 = vst.msk [vmem:[#allocation2 + $0x50] sm:$0xff] %vm212_vm3, %v277_v35  ;;  %v193_v42 = vadd.f32 %v3508_v40, %v3231_v30  ;;  %v280_v43 = vadd.f32 %v3518_v41, %v3237_v31  ;;  %v184_v44 = vpop.f32.mrb[3].mxu0  ;;  %v271_v45 = vpop.f32.mrb[3].mxu1 }
 0x139   :  { %213 = vst.msk [vmem:[#allocation2] sm:$0xff] %vm212_vm3, %v182_v38  ;;  %300 = vst.msk [vmem:[#allocation2 + $0x40] sm:$0xff] %vm212_vm3, %v269_v39  ;;  %v185_v46 = vadd.f32 %v3231_v30, %v184_v44  ;;  %v272_v47 = vadd.f32 %v3237_v31, %v271_v45 }
 0x13a   :  { %216 = vst.msk [vmem:[#allocation2 + $0x18] sm:$0xff] %vm212_vm3, %v193_v42  ;;  %303 = vst.msk [vmem:[#allocation2 + $0x58] sm:$0xff] %vm212_vm3, %v280_v43 }
 0x13b   :  { %214 = vst.msk [vmem:[#allocation2 + $0x8] sm:$0xff] %vm212_vm3, %v185_v46  ;;  %301 = vst.msk [vmem:[#allocation2 + $0x48] sm:$0xff] %vm212_vm3, %v272_v47 }
 0x13d   :  { %v3511_v48 = vpop.f32.mrb[4].mxu0  ;;  %v3521_v49 = vpop.f32.mrb[4].mxu1 }
 0x13e   :  { %v206_v50 = vadd.f32 %v3511_v48, %v3231_v30  ;;  %v293_v51 = vadd.f32 %v3521_v49, %v3237_v31  ;;  %v197_v52 = vpop.f32.mrb[5].mxu0  ;;  %v284_v53 = vpop.f32.mrb[5].mxu1 }
 0x13f   :  { %v198_v54 = vadd.f32 %v3231_v30, %v197_v52  ;;  %v285_v55 = vadd.f32 %v3237_v31, %v284_v53  ;;  %v3512_v56 = vpop.f32.mrb[6].mxu0  ;;  %v3522_v57 = vpop.f32.mrb[6].mxu1 }
 0x140   :  { %219 = vst.msk [vmem:[#allocation2 + $0x30] sm:$0xff] %vm212_vm3, %v206_v50  ;;  %306 = vst.msk [vmem:[#allocation2 + $0x70] sm:$0xff] %vm212_vm3, %v293_v51  ;;  %v209_v58 = vadd.f32 %v3512_v56, %v3231_v30  ;;  %v296_v59 = vadd.f32 %v3522_v57, %v3237_v31  ;;  %v200_v60 = vpop.f32.mrb[7].mxu0  ;;  %v287_v61 = vpop.f32.mrb[7].mxu1  ;;  %v501_v43 = vld [vmem:[#allocation2] sm:$0xff] }
 0x141   :  { %217 = vst.msk [vmem:[#allocation2 + $0x20] sm:$0xff] %vm212_vm3, %v198_v54  ;;  %304 = vst.msk [vmem:[#allocation2 + $0x60] sm:$0xff] %vm212_vm3, %v285_v55  ;;  %v201_v62 = vadd.f32 %v3231_v30, %v200_v60  ;;  %v288_v63 = vadd.f32 %v3237_v31, %v287_v61  ;;  %v564_v45 = vld [vmem:[#allocation2 + $0x40] sm:$0xff] }
 0x142   :  { %220 = vst.msk [vmem:[#allocation2 + $0x38] sm:$0xff] %vm212_vm3, %v209_v58  ;;  %307 = vst.msk [vmem:[#allocation2 + $0x78] sm:$0xff] %vm212_vm3, %v296_v59 }
 0x143   :  { %218 = vst.msk [vmem:[#allocation2 + $0x28] sm:$0xff] %vm212_vm3, %v201_v62  ;;  %305 = vst.msk [vmem:[#allocation2 + $0x68] sm:$0xff] %vm212_vm3, %v288_v63 }
 0x145   :  { %v3527_v2 = vpop.f32.mrb[8].mxu0  ;;  %v3537_v3 = vpop.f32.mrb[8].mxu1 }
 0x146   :  { %v364_v4 = vadd.f32 %v3527_v2, %v3243_v0  ;;  %v451_v5 = vadd.f32 %v3537_v3, %v3249_v1  ;;  %v355_v6 = vpop.f32.mrb[9].mxu0  ;;  %v442_v7 = vpop.f32.mrb[9].mxu1 }
 0x147   :  { %v356_v8 = vadd.f32 %v3243_v0, %v355_v6  ;;  %v443_v9 = vadd.f32 %v3249_v1, %v442_v7  ;;  %v3528_v10 = vpop.f32.mrb[10].mxu0  ;;  %v3538_v11 = vpop.f32.mrb[10].mxu1 }
 0x148   :  { %389 = vst.msk [vmem:[#allocation2 + $0x90] sm:$0xff] %vm212_vm3, %v364_v4  ;;  %476 = vst.msk [vmem:[#allocation2 + $0xd0] sm:$0xff] %vm212_vm3, %v451_v5  ;;  %v367_v12 = vadd.f32 %v3528_v10, %v3243_v0  ;;  %v454_v13 = vadd.f32 %v3538_v11, %v3249_v1  ;;  %v358_v14 = vpop.f32.mrb[11].mxu0  ;;  %v445_v15 = vpop.f32.mrb[11].mxu1 }
 0x149   :  { %387 = vst.msk [vmem:[#allocation2 + $0x80] sm:$0xff] %vm212_vm3, %v356_v8  ;;  %474 = vst.msk [vmem:[#allocation2 + $0xc0] sm:$0xff] %vm212_vm3, %v443_v9  ;;  %v359_v16 = vadd.f32 %v3243_v0, %v358_v14  ;;  %v446_v17 = vadd.f32 %v3249_v1, %v445_v15 }
 0x14a   :  { %390 = vst.msk [vmem:[#allocation2 + $0x98] sm:$0xff] %vm212_vm3, %v367_v12  ;;  %477 = vst.msk [vmem:[#allocation2 + $0xd8] sm:$0xff] %vm212_vm3, %v454_v13 }
 0x14b   :  { %388 = vst.msk [vmem:[#allocation2 + $0x88] sm:$0xff] %vm212_vm3, %v359_v16  ;;  %475 = vst.msk [vmem:[#allocation2 + $0xc8] sm:$0xff] %vm212_vm3, %v446_v17 }
 0x14d   :  { %v3531_v18 = vpop.f32.mrb[12].mxu0  ;;  %v3541_v19 = vpop.f32.mrb[12].mxu1 }
 0x14e   :  { %v380_v21 = vadd.f32 %v3531_v18, %v3243_v0  ;;  %v467_v30 = vadd.f32 %v3541_v19, %v3249_v1  ;;  %v371_v31 = vpop.f32.mrb[13].mxu0  ;;  %v458_v32 = vpop.f32.mrb[13].mxu1 }
 0x14f   :  { %v372_v33 = vadd.f32 %v3243_v0, %v371_v31  ;;  %v459_v34 = vadd.f32 %v3249_v1, %v458_v32  ;;  %v3532_v35 = vpop.f32.mrb[14].mxu0  ;;  %v3542_v36 = vpop.f32.mrb[14].mxu1  ;;  %v746_v31 = vld [vmem:[#allocation2 + $0x8] sm:$0xff] }
 0x150   :  { %393 = vst.msk [vmem:[#allocation2 + $0xb0] sm:$0xff] %vm212_vm3, %v380_v21  ;;  %480 = vst.msk [vmem:[#allocation2 + $0xf0] sm:$0xff] %vm212_vm3, %v467_v30  ;;  %v383_v37 = vadd.f32 %v3532_v35, %v3243_v0  ;;  %v470_v38 = vadd.f32 %v3542_v36, %v3249_v1  ;;  %v374_v39 = vpop.f32.mrb[15].mxu0  ;;  %v461_v40 = vpop.f32.mrb[15].mxu1  ;;  %v679_v58 = vld [vmem:[#allocation2 + $0xc0] sm:$0xff] }
 0x151   :  { %391 = vst.msk [vmem:[#allocation2 + $0xa0] sm:$0xff] %vm212_vm3, %v372_v33  ;;  %478 = vst.msk [vmem:[#allocation2 + $0xe0] sm:$0xff] %vm212_vm3, %v459_v34  ;;  %v375_v41 = vadd.f32 %v3243_v0, %v374_v39  ;;  %v462_v42 = vadd.f32 %v3249_v1, %v461_v40  ;;  %v624_v3 = vld [vmem:[#allocation2 + $0x80] sm:$0xff]  ;;  %v797_v33 = vld [vmem:[#allocation2 + $0x48] sm:$0xff] }
 0x152   :  { %394 = vst.msk [vmem:[#allocation2 + $0xb8] sm:$0xff] %vm212_vm3, %v383_v37  ;;  %481 = vst.msk [vmem:[#allocation2 + $0xf8] sm:$0xff] %vm212_vm3, %v470_v38 }
 0x153   :  { %392 = vst.msk [vmem:[#allocation2 + $0xa8] sm:$0xff] %vm212_vm3, %v375_v41  ;;  %479 = vst.msk [vmem:[#allocation2 + $0xe8] sm:$0xff] %vm212_vm3, %v462_v42 }
 0x155   :  { %v551_v44 = vpop.f32.mrb[16].mxu0  ;;  %v611_v46 = vpop.f32.mrb[16].mxu1 }
 0x156   :  { %v557_v47 = vadd.f32 %v551_v44, %v501_v43  ;;  %v617_v48 = vadd.f32 %v611_v46, %v564_v45  ;;  %v3549_v49 = vpop.f32.mrb[17].mxu0  ;;  %v3557_v50 = vpop.f32.mrb[17].mxu1  ;;  %v888_v46 = vld [vmem:[#allocation2 + $0xc8] sm:$0xff] }
 0x157   :  { %v554_v51 = vpop.f32.mrb[18].mxu0  ;;  %v614_v52 = vpop.f32.mrb[18].mxu1 }
 0x158   :  { %v3256_v53 = vmul.f32 -1.442695, %v557_v47  ;;  %v3259_v54 = vmul.f32 -1.442695, %v617_v48  ;;  %v3550_v55 = vpop.f32.mrb[19].mxu0  ;;  %v3558_v56 = vpop.f32.mrb[19].mxu1 }
 0x159   :  { %v845_v55 = vld [vmem:[#allocation2 + $0x88] sm:$0xff] }
 0x15a   :  { %3925 = vpow2.f32 %v3256_v53 }
 0x15b   :  { %3927 = vpow2.f32 %v3259_v54 }
 0x15d   :  { %v671_v57 = vpop.f32.mrb[20].mxu0  ;;  %v726_v59 = vpop.f32.mrb[20].mxu1 }
 0x15e   :  { %v732_v60 = vadd.f32 %v726_v59, %v679_v58  ;;  %v3565_v61 = vpop.f32.mrb[21].mxu0  ;;  %v3573_v62 = vpop.f32.mrb[21].mxu1  ;;  %v677_v5 = vadd.f32 %v671_v57, %v624_v3 }
 0x15f   :  { %v674_v63 = vpop.f32.mrb[22].mxu0  ;;  %v729_v0 = vpop.f32.mrb[22].mxu1 }
 0x160   :  { %v3566_v1 = vpop.f32.mrb[23].mxu0  ;;  %v3574_v2 = vpop.f32.mrb[23].mxu1  ;;  %v3264_v4 = vmul.f32 -1.442695, %v732_v60 }
 0x162   :  { %3929 = vpow2.f32 %v3264_v4 }
 0x163   :  { %3931 = vtanh.f32 %v677_v5 }
 0x164   :  { %v3926_v6 = vpop.eup %3925 }
 0x165   :  { %v3928_v7 = vpop.eup %3927  ;;  %v561_v8 = vadd.f32 1.0, %v3926_v6 }
 0x166   :  { %v621_v9 = vadd.f32 1.0, %v3928_v7 }
 0x167   :  { %3933 = vrcp.f32 %v561_v8 }
 0x168   :  { %3935 = vrcp.f32 %v621_v9 }
 0x16c   :  { %v3930_v10 = vpop.eup %3929 }
 0x16d   :  { %v3932_v11 = vpop.eup %3931  ;;  %v736_v15 = vadd.f32 1.0, %v3930_v10  ;;  %v943_v10 = vld [vmem:[#allocation2 + $0x10] sm:$0xff] }
 0x16f   :  { %3937 = vrcp.f32 %v736_v15 }
 0x171   :  { %v3934_v12 = vpop.eup %3933 }
 0x172   :  { %v3936_v13 = vpop.eup %3935  ;;  %v740_v14 = vmul.f32 %v3934_v12, %v3932_v11  ;;  %v994_v12 = vld [vmem:[#allocation2 + $0x50] sm:$0xff] }
 0x173   :  { %v739_v16 = vmul.f32 0.0, %v3936_v13 }
 0x175   :  { %v4551_v17 = vadd.f32 %v740_v14, %v739_v16 }
 0x177   :  { %3939 = vtanh.f32 %v4551_v17 }
 0x179   :  { %v3938_v18 = vpop.eup %3937 }
 0x181   :  { %v3940_v19 = vpop.eup %3939 }
 0x182   :  { %v743_v21 = vmul.f32 %v3940_v19, %v3938_v18 }
 0x184   :  { %744 = vst.msk [vmem:[#allocation3] sm:$0xff] %vm212_vm3, %v743_v21  ;;  %v745_v30 = vpack.c.bf16 %v743_v21, %v743_v21 }
 0x186   :  { %3580 = vmatmul.mubr.msk.bf16.vlgmr.msra.gmra.mrb[24].mxu0 %vm212_vm3, %v745_v30  ;;  %3588 = vmatmul.mubr.msk.bf16.vlgmr.msra.gmra.mrb[24].mxu1 %vm212_vm3, %v745_v30 }
 0x187   :  { %3592 = vmatpush3.bf16.msra.mxu0 %v4483_v26  ;;  %3600 = vmatpush3.bf16.msra.mxu1 %v4485_v27 }
 0x188   :  { %3593 = vmatprep.subr.bf16.mxu0 %v4291_v20  ;;  %3601 = vmatprep.subr.bf16.mxu1 %v4291_v20 }
 0x189   :  { %3595 = vmatprep.mubr.msk.bf16.mxu0 %vm4292_vm2, %v4291_v20  ;;  %3603 = vmatprep.mubr.msk.bf16.mxu1 %vm4292_vm2, %v4291_v20 }
 0x18b   :  { %3594 = vmatpush3.bf16.msra.mxu0 %v4491_v28  ;;  %3602 = vmatpush3.bf16.msra.mxu1 %v4493_v29 }
 0x18c   :  { %3607 = vmatprep.subr.bf16.mxu0 %v4291_v20  ;;  %3615 = vmatprep.subr.bf16.mxu1 %v4291_v20 }
 0x18e   :  { %3596 = vmatmul.mubr.msk.bf16.vlgmr.msra.gmra.mrb[28].mxu0 %vm212_vm3, %v745_v30  ;;  %3604 = vmatmul.mubr.msk.bf16.vlgmr.msra.gmra.mrb[28].mxu1 %vm212_vm3, %v745_v30 }
 0x18f   :  { %3608 = vmatpush3.bf16.msra.mxu0 %v4457_v22  ;;  %3616 = vmatpush3.bf16.msra.mxu1 %v4459_v23 }
 0x190   :  { %3609 = vmatprep.subr.bf16.mxu0 %v4291_v20  ;;  %3617 = vmatprep.subr.bf16.mxu1 %v4291_v20 }
 0x191   :  { %3611 = vmatprep.mubr.msk.bf16.mxu0 %vm4292_vm2, %v4291_v20  ;;  %3619 = vmatprep.mubr.msk.bf16.mxu1 %vm4292_vm2, %v4291_v20 }
 0x193   :  { %3610 = vmatpush3.bf16.msra.mxu0 %v4465_v24  ;;  %3618 = vmatpush3.bf16.msra.mxu1 %v4467_v25 }
 0x194   :  { %3623 = vmatprep.subr.bf16.mxu0 %v4291_v20  ;;  %3631 = vmatprep.subr.bf16.mxu1 %v4291_v20 }
 0x259   :  { %v784_v32 = vpop.f32.mrb[24].mxu0  ;;  %v832_v34 = vpop.f32.mrb[24].mxu1 }
 0x25a   :  { %v790_v35 = vadd.f32 %v784_v32, %v746_v31  ;;  %v838_v36 = vadd.f32 %v832_v34, %v797_v33  ;;  %v3581_v37 = vpop.f32.mrb[25].mxu0  ;;  %v3589_v38 = vpop.f32.mrb[25].mxu1  ;;  %v1085_v34 = vld [vmem:[#allocation2 + $0xd0] sm:$0xff] }
 0x25b   :  { %v787_v39 = vpop.f32.mrb[26].mxu0  ;;  %v835_v40 = vpop.f32.mrb[26].mxu1 }
 0x25c   :  { %v3266_v41 = vmul.f32 -1.442695, %v790_v35  ;;  %v3268_v42 = vmul.f32 -1.442695, %v838_v36  ;;  %v3582_v43 = vpop.f32.mrb[27].mxu0  ;;  %v3590_v44 = vpop.f32.mrb[27].mxu1 }
 0x25d   :  { %v1042_v43 = vld [vmem:[#allocation2 + $0x90] sm:$0xff] }
 0x25e   :  { %3941 = vpow2.f32 %v3266_v41 }
 0x25f   :  { %3943 = vpow2.f32 %v3268_v42 }
 0x261   :  { %v880_v45 = vpop.f32.mrb[28].mxu0  ;;  %v923_v47 = vpop.f32.mrb[28].mxu1 }
 0x262   :  { %v929_v48 = vadd.f32 %v923_v47, %v888_v46  ;;  %v3597_v49 = vpop.f32.mrb[29].mxu0  ;;  %v3605_v50 = vpop.f32.mrb[29].mxu1  ;;  %v886_v57 = vadd.f32 %v880_v45, %v845_v55 }
 0x263   :  { %v883_v51 = vpop.f32.mrb[30].mxu0  ;;  %v926_v52 = vpop.f32.mrb[30].mxu1 }
 0x264   :  { %v3598_v53 = vpop.f32.mrb[31].mxu0  ;;  %v3606_v54 = vpop.f32.mrb[31].mxu1  ;;  %v3271_v56 = vmul.f32 -1.442695, %v929_v48 }
 0x266   :  { %3945 = vpow2.f32 %v3271_v56 }
 0x267   :  { %3947 = vtanh.f32 %v886_v57 }
 0x268   :  { %v3942_v58 = vpop.eup %3941 }
 0x269   :  { %v3944_v59 = vpop.eup %3943  ;;  %v794_v60 = vadd.f32 1.0, %v3942_v58 }
 0x26a   :  { %v842_v61 = vadd.f32 1.0, %v3944_v59 }
 0x26b   :  { %3949 = vrcp.f32 %v794_v60 }
 0x26c   :  { %3951 = vrcp.f32 %v842_v61 }
 0x270   :  { %v3946_v62 = vpop.eup %3945 }
 0x271   :  { %v3948_v63 = vpop.eup %3947  ;;  %v933_v3 = vadd.f32 1.0, %v3946_v62  ;;  %v1140_v62 = vld [vmem:[#allocation2 + $0x18] sm:$0xff] }
 0x273   :  { %3953 = vrcp.f32 %v933_v3 }
 0x275   :  { %v3950_v0 = vpop.eup %3949 }
 0x276   :  { %v3952_v1 = vpop.eup %3951  ;;  %v937_v2 = vmul.f32 %v3950_v0, %v3948_v63  ;;  %v1191_v0 = vld [vmem:[#allocation2 + $0x58] sm:$0xff] }
 0x277   :  { %v936_v4 = vmul.f32 %v3952_v1, %v4551_v17 }
 0x279   :  { %v4584_v5 = vadd.f32 %v937_v2, %v936_v4 }
 0x27b   :  { %3955 = vtanh.f32 %v4584_v5 }
 0x27d   :  { %v3954_v6 = vpop.eup %3953 }
 0x285   :  { %v3956_v7 = vpop.eup %3955 }
 0x286   :  { %v940_v8 = vmul.f32 %v3956_v7, %v3954_v6 }
 0x288   :  { %941 = vst.msk [vmem:[#allocation3 + $0x8] sm:$0xff] %vm212_vm3, %v940_v8  ;;  %v942_v9 = vpack.c.bf16 %v940_v8, %v940_v8 }
 0x28a   :  { %3612 = vmatmul.mubr.msk.bf16.vlgmr.msra.gmra.mrb[32].mxu0 %vm212_vm3, %v942_v9  ;;  %3620 = vmatmul.mubr.msk.bf16.vlgmr.msra.gmra.mrb[32].mxu1 %vm212_vm3, %v942_v9 }
 0x28b   :  { %3624 = vmatpush3.bf16.msra.mxu0 %v4483_v26  ;;  %3632 = vmatpush3.bf16.msra.mxu1 %v4485_v27 }
 0x28c   :  { %3625 = vmatprep.subr.bf16.mxu0 %v4291_v20  ;;  %3633 = vmatprep.subr.bf16.mxu1 %v4291_v20 }
 0x28d   :  { %3627 = vmatprep.mubr.msk.bf16.mxu0 %vm4292_vm2, %v4291_v20  ;;  %3635 = vmatprep.mubr.msk.bf16.mxu1 %vm4292_vm2, %v4291_v20 }
 0x28f   :  { %3626 = vmatpush3.bf16.msra.mxu0 %v4491_v28  ;;  %3634 = vmatpush3.bf16.msra.mxu1 %v4493_v29 }
 0x290   :  { %3639 = vmatprep.subr.bf16.mxu0 %v4291_v20  ;;  %3647 = vmatprep.subr.bf16.mxu1 %v4291_v20 }
 0x292   :  { %3628 = vmatmul.mubr.msk.bf16.vlgmr.msra.gmra.mrb[36].mxu0 %vm212_vm3, %v942_v9  ;;  %3636 = vmatmul.mubr.msk.bf16.vlgmr.msra.gmra.mrb[36].mxu1 %vm212_vm3, %v942_v9 }
 0x293   :  { %3640 = vmatpush3.bf16.msra.mxu0 %v4457_v22  ;;  %3648 = vmatpush3.bf16.msra.mxu1 %v4459_v23 }
 0x294   :  { %3641 = vmatprep.subr.bf16.mxu0 %v4291_v20  ;;  %3649 = vmatprep.subr.bf16.mxu1 %v4291_v20 }
 0x295   :  { %3643 = vmatprep.mubr.msk.bf16.mxu0 %vm4292_vm2, %v4291_v20  ;;  %3651 = vmatprep.mubr.msk.bf16.mxu1 %vm4292_vm2, %v4291_v20 }
 0x297   :  { %3642 = vmatpush3.bf16.msra.mxu0 %v4465_v24  ;;  %3650 = vmatpush3.bf16.msra.mxu1 %v4467_v25 }
 0x298   :  { %3655 = vmatprep.subr.bf16.mxu0 %v4291_v20  ;;  %3663 = vmatprep.subr.bf16.mxu1 %v4291_v20 }
 0x35d   :  { %v981_v11 = vpop.f32.mrb[32].mxu0  ;;  %v1029_v13 = vpop.f32.mrb[32].mxu1 }
 0x35e   :  { %v987_v14 = vadd.f32 %v981_v11, %v943_v10  ;;  %v1035_v15 = vadd.f32 %v1029_v13, %v994_v12  ;;  %v3613_v16 = vpop.f32.mrb[33].mxu0  ;;  %v3621_v17 = vpop.f32.mrb[33].mxu1  ;;  %v1282_v13 = vld [vmem:[#allocation2 + $0xd8] sm:$0xff] }
 0x35f   :  { %v984_v18 = vpop.f32.mrb[34].mxu0  ;;  %v1032_v19 = vpop.f32.mrb[34].mxu1 }
 0x360   :  { %v3273_v21 = vmul.f32 -1.442695, %v987_v14  ;;  %v3275_v30 = vmul.f32 -1.442695, %v1035_v15  ;;  %v3614_v31 = vpop.f32.mrb[35].mxu0  ;;  %v3622_v32 = vpop.f32.mrb[35].mxu1 }
 0x361   :  { %v1239_v31 = vld [vmem:[#allocation2 + $0x98] sm:$0xff] }
 0x362   :  { %3957 = vpow2.f32 %v3273_v21 }
 0x363   :  { %3959 = vpow2.f32 %v3275_v30 }
 0x365   :  { %v1077_v33 = vpop.f32.mrb[36].mxu0  ;;  %v1120_v35 = vpop.f32.mrb[36].mxu1 }
 0x366   :  { %v1126_v36 = vadd.f32 %v1120_v35, %v1085_v34  ;;  %v3629_v37 = vpop.f32.mrb[37].mxu0  ;;  %v3637_v38 = vpop.f32.mrb[37].mxu1  ;;  %v1083_v45 = vadd.f32 %v1077_v33, %v1042_v43 }
 0x367   :  { %v1080_v39 = vpop.f32.mrb[38].mxu0  ;;  %v1123_v40 = vpop.f32.mrb[38].mxu1 }
 0x368   :  { %v3630_v41 = vpop.f32.mrb[39].mxu0  ;;  %v3638_v42 = vpop.f32.mrb[39].mxu1  ;;  %v3278_v44 = vmul.f32 -1.442695, %v1126_v36 }
 0x36a   :  { %3961 = vpow2.f32 %v3278_v44 }
 0x36b   :  { %3963 = vtanh.f32 %v1083_v45 }
 0x36c   :  { %v3958_v46 = vpop.eup %3957 }
 0x36d   :  { %v3960_v47 = vpop.eup %3959  ;;  %v991_v48 = vadd.f32 1.0, %v3958_v46 }
 0x36e   :  { %v1039_v49 = vadd.f32 1.0, %v3960_v47 }
 0x36f   :  { %3965 = vrcp.f32 %v991_v48 }
 0x370   :  { %3967 = vrcp.f32 %v1039_v49 }
 0x374   :  { %v3962_v50 = vpop.eup %3961 }
 0x375   :  { %v3964_v51 = vpop.eup %3963  ;;  %v1130_v55 = vadd.f32 1.0, %v3962_v50  ;;  %v1388_v50 = vld [vmem:[#allocation2 + $0x60] sm:$0xff] }
 0x377   :  { %3969 = vrcp.f32 %v1130_v55 }
 0x379   :  { %v3966_v52 = vpop.eup %3965 }
 0x37a   :  { %v3968_v53 = vpop.eup %3967  ;;  %v1134_v54 = vmul.f32 %v3966_v52, %v3964_v51 }
 0x37b   :  { %v1133_v56 = vmul.f32 %v3968_v53, %v4584_v5 }
 0x37d   :  { %v4617_v57 = vadd.f32 %v1134_v54, %v1133_v56 }
 0x37f   :  { %3971 = vtanh.f32 %v4617_v57 }
 0x381   :  { %v3970_v58 = vpop.eup %3969 }
 0x389   :  { %v3972_v59 = vpop.eup %3971 }
 0x38a   :  { %v1137_v60 = vmul.f32 %v3972_v59, %v3970_v58 }
 0x38c   :  { %1138 = vst.msk [vmem:[#allocation3 + $0x10] sm:$0xff] %vm212_vm3, %v1137_v60  ;;  %v1139_v61 = vpack.c.bf16 %v1137_v60, %v1137_v60 }
 0x38e   :  { %3644 = vmatmul.mubr.msk.bf16.vlgmr.msra.gmra.mrb[40].mxu0 %vm212_vm3, %v1139_v61  ;;  %3652 = vmatmul.mubr.msk.bf16.vlgmr.msra.gmra.mrb[40].mxu1 %vm212_vm3, %v1139_v61 }
 0x38f   :  { %3656 = vmatpush3.bf16.msra.mxu0 %v4483_v26  ;;  %3664 = vmatpush3.bf16.msra.mxu1 %v4485_v27 }
 0x390   :  { %3657 = vmatprep.subr.bf16.mxu0 %v4291_v20  ;;  %3665 = vmatprep.subr.bf16.mxu1 %v4291_v20 }
 0x391   :  { %3659 = vmatprep.mubr.msk.bf16.mxu0 %vm4292_vm2, %v4291_v20  ;;  %3667 = vmatprep.mubr.msk.bf16.mxu1 %vm4292_vm2, %v4291_v20 }
 0x393   :  { %3658 = vmatpush3.bf16.msra.mxu0 %v4491_v28  ;;  %3666 = vmatpush3.bf16.msra.mxu1 %v4493_v29 }
 0x394   :  { %3671 = vmatprep.subr.bf16.mxu0 %v4291_v20  ;;  %3679 = vmatprep.subr.bf16.mxu1 %v4291_v20 }
 0x396   :  { %3660 = vmatmul.mubr.msk.bf16.vlgmr.msra.gmra.mrb[44].mxu0 %vm212_vm3, %v1139_v61  ;;  %3668 = vmatmul.mubr.msk.bf16.vlgmr.msra.gmra.mrb[44].mxu1 %vm212_vm3, %v1139_v61  ;;  %v1479_v61 = vld [vmem:[#allocation2 + $0xe0] sm:$0xff] }
 0x397   :  { %3672 = vmatpush3.bf16.msra.mxu0 %v4457_v22  ;;  %3680 = vmatpush3.bf16.msra.mxu1 %v4459_v23 }
 0x398   :  { %3673 = vmatprep.subr.bf16.mxu0 %v4291_v20  ;;  %3681 = vmatprep.subr.bf16.mxu1 %v4291_v20 }
 0x399   :  { %3675 = vmatprep.mubr.msk.bf16.mxu0 %vm4292_vm2, %v4291_v20  ;;  %3683 = vmatprep.mubr.msk.bf16.mxu1 %vm4292_vm2, %v4291_v20 }
 0x39b   :  { %3674 = vmatpush3.bf16.msra.mxu0 %v4465_v24  ;;  %3682 = vmatpush3.bf16.msra.mxu1 %v4467_v25 }
 0x39c   :  { %3687 = vmatprep.subr.bf16.mxu0 %v4291_v20  ;;  %3695 = vmatprep.subr.bf16.mxu1 %v4291_v20 }
 0x461   :  { %v1178_v63 = vpop.f32.mrb[40].mxu0  ;;  %v1226_v1 = vpop.f32.mrb[40].mxu1 }
 0x462   :  { %v1184_v2 = vadd.f32 %v1178_v63, %v1140_v62  ;;  %v1232_v3 = vadd.f32 %v1226_v1, %v1191_v0  ;;  %v3645_v4 = vpop.f32.mrb[41].mxu0  ;;  %v3653_v5 = vpop.f32.mrb[41].mxu1 }
 0x463   :  { %v1181_v6 = vpop.f32.mrb[42].mxu0  ;;  %v1229_v7 = vpop.f32.mrb[42].mxu1 }
 0x464   :  { %v3280_v8 = vmul.f32 -1.442695, %v1184_v2  ;;  %v3282_v9 = vmul.f32 -1.442695, %v1232_v3  ;;  %v3646_v10 = vpop.f32.mrb[43].mxu0  ;;  %v3654_v11 = vpop.f32.mrb[43].mxu1 }
 0x465   :  { %v1436_v6 = vld [vmem:[#allocation2 + $0xa0] sm:$0xff] }
 0x466   :  { %3973 = vpow2.f32 %v3280_v8 }
 0x467   :  { %3975 = vpow2.f32 %v3282_v9 }
 0x469   :  { %v1274_v12 = vpop.f32.mrb[44].mxu0  ;;  %v1317_v14 = vpop.f32.mrb[44].mxu1 }
 0x46a   :  { %v1323_v15 = vadd.f32 %v1317_v14, %v1282_v13  ;;  %v3661_v16 = vpop.f32.mrb[45].mxu0  ;;  %v3669_v17 = vpop.f32.mrb[45].mxu1  ;;  %v1280_v33 = vadd.f32 %v1274_v12, %v1239_v31 }
 0x46b   :  { %v1277_v18 = vpop.f32.mrb[46].mxu0  ;;  %v1320_v19 = vpop.f32.mrb[46].mxu1 }
 0x46c   :  { %v3662_v21 = vpop.f32.mrb[47].mxu0  ;;  %v3670_v30 = vpop.f32.mrb[47].mxu1  ;;  %v3285_v32 = vmul.f32 -1.442695, %v1323_v15 }
 0x46e   :  { %3977 = vpow2.f32 %v3285_v32 }
 0x46f   :  { %3979 = vtanh.f32 %v1280_v33 }
 0x470   :  { %v3974_v34 = vpop.eup %3973 }
 0x471   :  { %v3976_v35 = vpop.eup %3975  ;;  %v1188_v36 = vadd.f32 1.0, %v3974_v34  ;;  %v1534_v34 = vld [vmem:[#allocation2 + $0x28] sm:$0xff] }
 0x472   :  { %v1236_v37 = vadd.f32 1.0, %v3976_v35 }
 0x473   :  { %3981 = vrcp.f32 %v1188_v36  ;;  %v1585_v36 = vld [vmem:[#allocation2 + $0x68] sm:$0xff] }
 0x474   :  { %3983 = vrcp.f32 %v1236_v37 }
 0x478   :  { %v3978_v38 = vpop.eup %3977 }
 0x479   :  { %v3980_v39 = vpop.eup %3979  ;;  %v1327_v43 = vadd.f32 1.0, %v3978_v38 }
 0x47b   :  { %3985 = vrcp.f32 %v1327_v43 }
 0x47d   :  { %v3982_v40 = vpop.eup %3981 }
 0x47e   :  { %v3984_v41 = vpop.eup %3983  ;;  %v1331_v42 = vmul.f32 %v3982_v40, %v3980_v39 }
 0x47f   :  { %v1330_v44 = vmul.f32 %v3984_v41, %v4617_v57 }
 0x481   :  { %v4650_v45 = vadd.f32 %v1331_v42, %v1330_v44 }
 0x483   :  { %3987 = vtanh.f32 %v4650_v45 }
 0x485   :  { %v3986_v46 = vpop.eup %3985 }
 0x48d   :  { %v3988_v47 = vpop.eup %3987 }
 0x48e   :  { %v1334_v48 = vmul.f32 %v3988_v47, %v3986_v46 }
 0x490   :  { %1335 = vst.msk [vmem:[#allocation3 + $0x18] sm:$0xff] %vm212_vm3, %v1334_v48  ;;  %v1336_v49 = vpack.c.bf16 %v1334_v48, %v1334_v48 }
 0x492   :  { %3676 = vmatmul.mubr.msk.bf16.vlgmr.msra.gmra.mrb[48].mxu0 %vm212_vm3, %v1336_v49  ;;  %3684 = vmatmul.mubr.msk.bf16.vlgmr.msra.gmra.mrb[48].mxu1 %vm212_vm3, %v1336_v49 }
 0x493   :  { %3688 = vmatpush3.bf16.msra.mxu0 %v4483_v26  ;;  %3696 = vmatpush3.bf16.msra.mxu1 %v4485_v27 }
 0x494   :  { %3689 = vmatprep.subr.bf16.mxu0 %v4291_v20  ;;  %3697 = vmatprep.subr.bf16.mxu1 %v4291_v20 }
 0x495   :  { %3691 = vmatprep.mubr.msk.bf16.mxu0 %vm4292_vm2, %v4291_v20  ;;  %3699 = vmatprep.mubr.msk.bf16.mxu1 %vm4292_vm2, %v4291_v20 }
 0x497   :  { %3690 = vmatpush3.bf16.msra.mxu0 %v4491_v28  ;;  %3698 = vmatpush3.bf16.msra.mxu1 %v4493_v29 }
 0x498   :  { %3703 = vmatprep.subr.bf16.mxu0 %v4291_v20  ;;  %3711 = vmatprep.subr.bf16.mxu1 %v4291_v20 }
 0x49a   :  { %3692 = vmatmul.mubr.msk.bf16.vlgmr.msra.gmra.mrb[52].mxu0 %vm212_vm3, %v1336_v49  ;;  %3700 = vmatmul.mubr.msk.bf16.vlgmr.msra.gmra.mrb[52].mxu1 %vm212_vm3, %v1336_v49  ;;  %v1676_v49 = vld [vmem:[#allocation2 + $0xe8] sm:$0xff] }
 0x49b   :  { %3704 = vmatpush3.bf16.msra.mxu0 %v4457_v22  ;;  %3712 = vmatpush3.bf16.msra.mxu1 %v4459_v23  ;;  %v1337_v22 = vld [vmem:[#allocation2 + $0x20] sm:$0xff] }
 0x49c   :  { %3705 = vmatprep.subr.bf16.mxu0 %v4291_v20  ;;  %3713 = vmatprep.subr.bf16.mxu1 %v4291_v20 }
 0x49d   :  { %3707 = vmatprep.mubr.msk.bf16.mxu0 %vm4292_vm2, %v4291_v20  ;;  %3715 = vmatprep.mubr.msk.bf16.mxu1 %vm4292_vm2, %v4291_v20 }
 0x49f   :  { %3706 = vmatpush3.bf16.msra.mxu0 %v4465_v24  ;;  %3714 = vmatpush3.bf16.msra.mxu1 %v4467_v25 }
 0x4a0   :  { %3719 = vmatprep.subr.bf16.mxu0 %v4291_v20  ;;  %3727 = vmatprep.subr.bf16.mxu1 %v4291_v20 }
 0x565   :  { %v1375_v23 = vpop.f32.mrb[48].mxu0  ;;  %v1423_v51 = vpop.f32.mrb[48].mxu1 }
 0x566   :  { %v1381_v52 = vadd.f32 %v1375_v23, %v1337_v22  ;;  %v1429_v53 = vadd.f32 %v1423_v51, %v1388_v50  ;;  %v3677_v54 = vpop.f32.mrb[49].mxu0  ;;  %v3685_v55 = vpop.f32.mrb[49].mxu1 }
 0x567   :  { %v1378_v56 = vpop.f32.mrb[50].mxu0  ;;  %v1426_v57 = vpop.f32.mrb[50].mxu1 }
 0x568   :  { %v3287_v58 = vmul.f32 -1.442695, %v1381_v52  ;;  %v3289_v59 = vmul.f32 -1.442695, %v1429_v53  ;;  %v3678_v60 = vpop.f32.mrb[51].mxu0  ;;  %v3686_v24 = vpop.f32.mrb[51].mxu1 }
 0x569   :  { %v1633_v56 = vld [vmem:[#allocation2 + $0xa8] sm:$0xff] }
 0x56a   :  { %3989 = vpow2.f32 %v3287_v58 }
 0x56b   :  { %3991 = vpow2.f32 %v3289_v59 }
 0x56d   :  { %v1471_v25 = vpop.f32.mrb[52].mxu0  ;;  %v1514_v62 = vpop.f32.mrb[52].mxu1 }
 0x56e   :  { %v1520_v63 = vadd.f32 %v1514_v62, %v1479_v61  ;;  %v3693_v0 = vpop.f32.mrb[53].mxu0  ;;  %v3701_v1 = vpop.f32.mrb[53].mxu1  ;;  %v1477_v8 = vadd.f32 %v1471_v25, %v1436_v6 }
 0x56f   :  { %v1474_v2 = vpop.f32.mrb[54].mxu0  ;;  %v1517_v3 = vpop.f32.mrb[54].mxu1 }
 0x570   :  { %v3694_v4 = vpop.f32.mrb[55].mxu0  ;;  %v3702_v5 = vpop.f32.mrb[55].mxu1  ;;  %v3292_v7 = vmul.f32 -1.442695, %v1520_v63 }
 0x572   :  { %3993 = vpow2.f32 %v3292_v7 }
 0x573   :  { %3995 = vtanh.f32 %v1477_v8 }
 0x574   :  { %v3990_v9 = vpop.eup %3989 }
 0x575   :  { %v3992_v10 = vpop.eup %3991  ;;  %v1385_v11 = vadd.f32 1.0, %v3990_v9  ;;  %v4730_v9 = vld [vmem:[#allocation7 + $0x20] sm:$0xff]  }
 0x576   :  { %v1433_v12 = vadd.f32 1.0, %v3992_v10  ;;  %v4733_v10 = vld [vmem:[#allocation7 + $0x30] sm:$0xff]  }
 0x577   :  { %3997 = vrcp.f32 %v1385_v11  ;;  %v4742_v11 = vld [vmem:[#allocation7 + $0x28] sm:$0xff]  }
 0x578   :  { %3999 = vrcp.f32 %v1433_v12  ;;  %v4745_v12 = vld [vmem:[#allocation7 + $0x38] sm:$0xff]  }
 0x57c   :  { %v3994_v13 = vpop.eup %3993 }
 0x57d   :  { %v3996_v14 = vpop.eup %3995  ;;  %v1524_v18 = vadd.f32 1.0, %v3994_v13  ;;  %v1731_v13 = vld [vmem:[#allocation2 + $0x30] sm:$0xff] }
 0x57f   :  { %4001 = vrcp.f32 %v1524_v18 }
 0x581   :  { %v3998_v15 = vpop.eup %3997 }
 0x582   :  { %v4000_v16 = vpop.eup %3999  ;;  %v1528_v17 = vmul.f32 %v3998_v15, %v3996_v14  ;;  %v1782_v15 = vld [vmem:[#allocation2 + $0x70] sm:$0xff] }
 0x583   :  { %v1527_v19 = vmul.f32 %v4000_v16, %v4650_v45 }
 0x585   :  { %v4683_v21 = vadd.f32 %v1528_v17, %v1527_v19 }
 0x587   :  { %4003 = vtanh.f32 %v4683_v21 }
 0x589   :  { %v4002_v30 = vpop.eup %4001 }
 0x591   :  { %v4004_v31 = vpop.eup %4003 }
 0x592   :  { %v1531_v32 = vmul.f32 %v4004_v31, %v4002_v30 }
 0x594   :  { %1532 = vst.msk [vmem:[#allocation3 + $0x20] sm:$0xff] %vm212_vm3, %v1531_v32  ;;  %v1533_v33 = vpack.c.bf16 %v1531_v32, %v1531_v32 }
 0x596   :  { %3708 = vmatmul.mubr.msk.bf16.vlgmr.msra.gmra.mrb[56].mxu0 %vm212_vm3, %v1533_v33  ;;  %3716 = vmatmul.mubr.msk.bf16.vlgmr.msra.gmra.mrb[56].mxu1 %vm212_vm3, %v1533_v33 }
 0x597   :  { %3720 = vmatpush3.bf16.msra.mxu0 %v4483_v26  ;;  %3728 = vmatpush3.bf16.msra.mxu1 %v4485_v27  ;;  %v4703_v26 = vld [vmem:[#allocation7] sm:$0xff]   ;;  %v4706_v27 = vld [vmem:[#allocation7 + $0x10] sm:$0xff]  }
 0x598   :  { %3721 = vmatprep.subr.bf16.mxu0 %v4291_v20  ;;  %3729 = vmatprep.subr.bf16.mxu1 %v4291_v20 }
 0x599   :  { %3723 = vmatprep.mubr.msk.bf16.mxu0 %vm4292_vm2, %v4291_v20  ;;  %3731 = vmatprep.mubr.msk.bf16.mxu1 %vm4292_vm2, %v4291_v20 }
 0x59b   :  { %3722 = vmatpush3.bf16.msra.mxu0 %v4491_v28  ;;  %3730 = vmatpush3.bf16.msra.mxu1 %v4493_v29  ;;  %v4715_v28 = vld [vmem:[#allocation7 + $0x8] sm:$0xff]   ;;  %v4718_v29 = vld [vmem:[#allocation7 + $0x18] sm:$0xff]  }
 0x59c   :  { %3735 = vmatprep.subr.bf16.mxu0 %v4291_v20  ;;  %3743 = vmatprep.subr.bf16.mxu1 %v4291_v20 }
 0x59e   :  { %3724 = vmatmul.mubr.msk.bf16.vlgmr.msra.gmra.mrb[60].mxu0 %vm212_vm3, %v1533_v33  ;;  %3732 = vmatmul.mubr.msk.bf16.vlgmr.msra.gmra.mrb[60].mxu1 %vm212_vm3, %v1533_v33 }
 0x59f   :  { %3736 = vmatpush3.bf16.msra.mxu0 %v4703_v26  ;;  %3744 = vmatpush3.bf16.msra.mxu1 %v4706_v27 }
 0x5a0   :  { %3737 = vmatprep.subr.bf16.mxu0 %v4291_v20  ;;  %3745 = vmatprep.subr.bf16.mxu1 %v4291_v20 }
 0x5a1   :  { %3739 = vmatprep.mubr.msk.bf16.mxu0 %vm4292_vm2, %v4291_v20  ;;  %3747 = vmatprep.mubr.msk.bf16.mxu1 %vm4292_vm2, %v4291_v20 }
 0x5a3   :  { %3738 = vmatpush3.bf16.msra.mxu0 %v4715_v28  ;;  %3746 = vmatpush3.bf16.msra.mxu1 %v4718_v29 }
 0x5a4   :  { %3751 = vmatprep.subr.bf16.mxu0 %v4291_v20  ;;  %3759 = vmatprep.subr.bf16.mxu1 %v4291_v20 }
 0x669   :  { %v1572_v35 = vpop.f32.mrb[56].mxu0  ;;  %v1620_v37 = vpop.f32.mrb[56].mxu1 }
 0x66a   :  { %v1578_v38 = vadd.f32 %v1572_v35, %v1534_v34  ;;  %v1626_v39 = vadd.f32 %v1620_v37, %v1585_v36  ;;  %v3709_v40 = vpop.f32.mrb[57].mxu0  ;;  %v3717_v41 = vpop.f32.mrb[57].mxu1 }
 0x66b   :  { %v1575_v42 = vpop.f32.mrb[58].mxu0  ;;  %v1623_v43 = vpop.f32.mrb[58].mxu1 }
 0x66c   :  { %v3294_v44 = vmul.f32 -1.442695, %v1578_v38  ;;  %v3296_v45 = vmul.f32 -1.442695, %v1626_v39  ;;  %v3710_v46 = vpop.f32.mrb[59].mxu0  ;;  %v3718_v47 = vpop.f32.mrb[59].mxu1 }
 0x66d   :  { %v1830_v42 = vld [vmem:[#allocation2 + $0xb0] sm:$0xff] }
 0x66e   :  { %4005 = vpow2.f32 %v3294_v44 }
 0x66f   :  { %4007 = vpow2.f32 %v3296_v45 }
 0x671   :  { %v1668_v48 = vpop.f32.mrb[60].mxu0  ;;  %v1711_v22 = vpop.f32.mrb[60].mxu1 }
 0x672   :  { %v1717_v23 = vadd.f32 %v1711_v22, %v1676_v49  ;;  %v3725_v50 = vpop.f32.mrb[61].mxu0  ;;  %v3733_v51 = vpop.f32.mrb[61].mxu1  ;;  %v1674_v58 = vadd.f32 %v1668_v48, %v1633_v56 }
 0x673   :  { %v1671_v52 = vpop.f32.mrb[62].mxu0  ;;  %v1714_v53 = vpop.f32.mrb[62].mxu1 }
 0x674   :  { %v3726_v54 = vpop.f32.mrb[63].mxu0  ;;  %v3734_v55 = vpop.f32.mrb[63].mxu1  ;;  %v3299_v57 = vmul.f32 -1.442695, %v1717_v23 }
 0x676   :  { %4009 = vpow2.f32 %v3299_v57 }
 0x677   :  { %4011 = vtanh.f32 %v1674_v58 }
 0x678   :  { %v4006_v59 = vpop.eup %4005 }
 0x679   :  { %v4008_v60 = vpop.eup %4007  ;;  %v1582_v24 = vadd.f32 1.0, %v4006_v59  ;;  %v3915_v59 = vld [vmem:[%s5057_s6] sm:$0xff]  }
 0x67a   :  { %v1630_v25 = vadd.f32 1.0, %v4008_v60  ;;  %v2125_v60 = vld [vmem:[#allocation3 + $0x8] sm:$0xff] }
 0x67b   :  { %4013 = vrcp.f32 %v1582_v24  ;;  %v2124_v24 = vld [vmem:[#allocation3] sm:$0xff] }
 0x67c   :  { %4015 = vrcp.f32 %v1630_v25  ;;  %v3916_v25 = vld [vmem:[%s5057_s6 + $0x8] sm:$0xff]  }
 0x680   :  { %v4010_v61 = vpop.eup %4009 }
 0x681   :  { %v4012_v62 = vpop.eup %4011  ;;  %v1721_v2 = vadd.f32 1.0, %v4010_v61  ;;  %v2132_v61 = vpack.c.bf16 %v2125_v60, %v2124_v24 }
 0x683   :  { %4017 = vrcp.f32 %v1721_v2  ;;  %v2128_v2 = vld [vmem:[#allocation3 + $0x20] sm:$0xff] }
 0x685   :  { %v4014_v63 = vpop.eup %4013 }
 0x686   :  { %v4016_v0 = vpop.eup %4015  ;;  %v1725_v1 = vmul.f32 %v4014_v63, %v4012_v62  ;;  %v2127_v62 = vld [vmem:[#allocation3 + $0x18] sm:$0xff] }
 0x687   :  { %v1724_v3 = vmul.f32 %v4016_v0, %v4683_v21  ;;  %v2126_v0 = vld [vmem:[#allocation3 + $0x10] sm:$0xff] }
 0x689   :  { %v4724_v4 = vadd.f32 %v1725_v1, %v1724_v3  ;;  %v2133_v1 = vpack.c.bf16 %v2127_v62, %v2126_v0  ;;  %v4844_v0 = vld [vmem:[#allocation10] ss:$0 sm:$0xff] }
 0x68b   :  { %4019 = vtanh.f32 %v4724_v4 }
 0x68d   :  { %v4018_v5 = vpop.eup %4017 }
 0x695   :  { %v4020_v6 = vpop.eup %4019 }
 0x696   :  { %v1728_v7 = vmul.f32 %v4020_v6, %v4018_v5  ;;  %v4805_v5 = vld [vmem:[%s5055_s4 + $0x8] sm:$0xff]   ;;  %v1928_v6 = vld [vmem:[#allocation2 + $0x38] sm:$0xff] }
 0x698   :  { %1729 = vst.msk [vmem:[#allocation3 + $0x28] sm:$0xff] %vm212_vm3, %v1728_v7  ;;  %v1730_v8 = vpack.c.bf16 %v1728_v7, %v1728_v7 }
 0x69a   :  { %3740 = vmatmul.mubr.msk.bf16.vlgmr.msra.gmra.mrb[64].mxu0 %vm212_vm3, %v1730_v8  ;;  %3748 = vmatmul.mubr.msk.bf16.vlgmr.msra.gmra.mrb[64].mxu1 %vm212_vm3, %v1730_v8 }
 0x69b   :  { %3752 = vmatpush3.bf16.msra.mxu0 %v4730_v9  ;;  %3760 = vmatpush3.bf16.msra.mxu1 %v4733_v10 }
 0x69c   :  { %3753 = vmatprep.subr.bf16.mxu0 %v4291_v20  ;;  %3761 = vmatprep.subr.bf16.mxu1 %v4291_v20 }
 0x69d   :  { %3755 = vmatprep.mubr.msk.bf16.mxu0 %vm4292_vm2, %v4291_v20  ;;  %3763 = vmatprep.mubr.msk.bf16.mxu1 %vm4292_vm2, %v4291_v20 }
 0x69f   :  { %3754 = vmatpush3.bf16.msra.mxu0 %v4742_v11  ;;  %3762 = vmatpush3.bf16.msra.mxu1 %v4745_v12  ;;  %v2129_v63 = vld [vmem:[#allocation3 + $0x28] sm:$0xff] }
 0x6a0   :  { %3767 = vmatprep.subr.bf16.mxu0 %v4291_v20  ;;  %3775 = vmatprep.subr.bf16.mxu1 %v4291_v20  ;;  %v2134_v3 = vpack.c.bf16 %v2129_v63, %v2128_v2  ;;  %v4839_v63 = vld [vmem:[%s5059_s8 + $0x8] sm:$0xff]  }
 0x6a2   :  { %3756 = vmatmul.mubr.msk.bf16.vlgmr.msra.gmra.mrb[68].mxu0 %vm212_vm3, %v1730_v8  ;;  %3764 = vmatmul.mubr.msk.bf16.vlgmr.msra.gmra.mrb[68].mxu1 %vm212_vm3, %v1730_v8  ;;  %v1979_v8 = vld [vmem:[#allocation2 + $0x78] sm:$0xff] }
 0x6a3   :  { %3768 = vmatpush3.bf16.msra.mxu0 %v4703_v26  ;;  %3776 = vmatpush3.bf16.msra.mxu1 %v4706_v27 }
 0x6a4   :  { %3769 = vmatprep.subr.bf16.mxu0 %v4291_v20  ;;  %3777 = vmatprep.subr.bf16.mxu1 %v4291_v20 }
 0x6a5   :  { %3771 = vmatprep.mubr.msk.bf16.mxu0 %vm4292_vm2, %v4291_v20  ;;  %3779 = vmatprep.mubr.msk.bf16.mxu1 %vm4292_vm2, %v4291_v20 }
 0x6a7   :  { %3770 = vmatpush3.bf16.msra.mxu0 %v4715_v28  ;;  %3778 = vmatpush3.bf16.msra.mxu1 %v4718_v29  ;;  %v1873_v29 = vld [vmem:[#allocation2 + $0xf0] sm:$0xff] }
 0x6a8   :  { %3783 = vmatprep.subr.bf16.mxu0 %v4291_v20  ;;  %3791 = vmatprep.subr.bf16.mxu1 %v4291_v20 }
 0x76d   :  { %v1769_v14 = vpop.f32.mrb[64].mxu0  ;;  %v1817_v16 = vpop.f32.mrb[64].mxu1 }
 0x76e   :  { %v1775_v17 = vadd.f32 %v1769_v14, %v1731_v13  ;;  %v1823_v18 = vadd.f32 %v1817_v16, %v1782_v15  ;;  %v3741_v19 = vpop.f32.mrb[65].mxu0  ;;  %v3749_v21 = vpop.f32.mrb[65].mxu1 }
 0x76f   :  { %v1772_v30 = vpop.f32.mrb[66].mxu0  ;;  %v1820_v31 = vpop.f32.mrb[66].mxu1 }
 0x770   :  { %v3301_v32 = vmul.f32 -1.442695, %v1775_v17  ;;  %v3303_v33 = vmul.f32 -1.442695, %v1823_v18  ;;  %v3742_v26 = vpop.f32.mrb[67].mxu0  ;;  %v3750_v27 = vpop.f32.mrb[67].mxu1 }
 0x771   :  { %v2070_v30 = vld [vmem:[#allocation2 + $0xf8] sm:$0xff] }
 0x772   :  { %4021 = vpow2.f32 %v3301_v32 }
 0x773   :  { %4023 = vpow2.f32 %v3303_v33 }
 0x775   :  { %v1865_v28 = vpop.f32.mrb[68].mxu0  ;;  %v1908_v34 = vpop.f32.mrb[68].mxu1 }
 0x776   :  { %v1914_v35 = vadd.f32 %v1908_v34, %v1873_v29  ;;  %v3757_v36 = vpop.f32.mrb[69].mxu0  ;;  %v3765_v37 = vpop.f32.mrb[69].mxu1  ;;  %v1871_v44 = vadd.f32 %v1865_v28, %v1830_v42 }
 0x777   :  { %v1868_v38 = vpop.f32.mrb[70].mxu0  ;;  %v1911_v39 = vpop.f32.mrb[70].mxu1 }
 0x778   :  { %v3758_v40 = vpop.f32.mrb[71].mxu0  ;;  %v3766_v41 = vpop.f32.mrb[71].mxu1  ;;  %v3306_v43 = vmul.f32 -1.442695, %v1914_v35  ;;  %v2027_v35 = vld [vmem:[#allocation2 + $0xb8] sm:$0xff] }
 0x779   :  { %v4812_v38 = vld [vmem:[#allocation12] ss:$0 sm:$0xff] }
 0x77a   :  { %4025 = vpow2.f32 %v3306_v43 }
 0x77b   :  { %4027 = vtanh.f32 %v1871_v44 }
 0x77c   :  { %v4022_v45 = vpop.eup %4021 }
 0x77d   :  { %v4024_v46 = vpop.eup %4023  ;;  %v1779_v47 = vadd.f32 1.0, %v4022_v45 }
 0x77e   :  { %v1827_v48 = vadd.f32 1.0, %v4024_v46 }
 0x77f   :  { %4029 = vrcp.f32 %v1779_v47 }
 0x780   :  { %4031 = vrcp.f32 %v1827_v48 }
 0x784   :  { %v4026_v49 = vpop.eup %4025 }
 0x785   :  { %v4028_v22 = vpop.eup %4027  ;;  %v1918_v52 = vadd.f32 1.0, %v4026_v49 }
 0x787   :  { %4033 = vrcp.f32 %v1918_v52 }
 0x789   :  { %v4030_v23 = vpop.eup %4029 }
 0x78a   :  { %v4032_v50 = vpop.eup %4031  ;;  %v1922_v51 = vmul.f32 %v4030_v23, %v4028_v22 }
 0x78b   :  { %v1921_v53 = vmul.f32 %v4032_v50, %v4724_v4  ;;  %v4799_v4 = vld [vmem:[%s5055_s4] sm:$0xff]  }
 0x78d   :  { %v4765_v54 = vadd.f32 %v1922_v51, %v1921_v53 }
 0x78f   :  { %4035 = vtanh.f32 %v4765_v54 }
 0x791   :  { %v4034_v55 = vpop.eup %4033 }
 0x799   :  { %v4036_v56 = vpop.eup %4035 }
 0x79a   :  { %v1925_v57 = vmul.f32 %v4036_v56, %v4034_v55 }
 0x79c   :  { %1926 = vst.msk [vmem:[#allocation3 + $0x30] sm:$0xff] %vm212_vm3, %v1925_v57  ;;  %v1927_v58 = vpack.c.bf16 %v1925_v57, %v1925_v57 }
 0x79e   :  { %3772 = vmatmul.mubr.msk.bf16.vlgmr.msra.gmra.mrb[72].mxu0 %vm212_vm3, %v1927_v58  ;;  %3780 = vmatmul.mubr.msk.bf16.vlgmr.msra.gmra.mrb[72].mxu1 %vm212_vm3, %v1927_v58 }
 0x79f   :  { %3784 = vmatpush3.bf16.msra.mxu0 %v4730_v9  ;;  %3792 = vmatpush3.bf16.msra.mxu1 %v4733_v10 }
 0x7a0   :  { %3785 = vmatprep.subr.bf16.mxu0 %v4291_v20  ;;  %3793 = vmatprep.subr.bf16.mxu1 %v4291_v20 }
 0x7a1   :  { %3787 = vmatprep.mubr.msk.bf16.mxu0 %vm4292_vm2, %v4291_v20  ;;  %3795 = vmatprep.mubr.msk.bf16.mxu1 %vm4292_vm2, %v4291_v20 }
 0x7a3   :  { %3786 = vmatpush3.bf16.msra.mxu0 %v4742_v11  ;;  %3794 = vmatpush3.bf16.msra.mxu1 %v4745_v12 }
 0x7a4   :  { %3799 = vmatprep.subr.bf16.mxu0 %v3915_v59  ;;  %3811 = vmatprep.subr.bf16.mxu1 %v4291_v20 }
 0x7a6   :  { %3788 = vmatmul.mubr.msk.bf16.vlgmr.msra.gmra.mrb[76].mxu0 %vm212_vm3, %v1927_v58  ;;  %3796 = vmatmul.mubr.msk.bf16.vlgmr.msra.gmra.mrb[76].mxu1 %vm212_vm3, %v1927_v58 }
 0x7a7   :  { %3800 = vmatpush3.bf16.msra.mxu0 %v3915_v59  ;;  %3803 = vmatprep.mubr.msk.bf16.mxu0 %vm212_vm3, %v2132_v61 }
 0x7a8   :  { %3801 = vmatprep.subr.bf16.mxu0 %v3916_v25  ;;  %3815 = vmatprep.mubr.msk.bf16.mxu1 %vm4292_vm2, %v4291_v20 }
 0x7a9   :  { %3812 = vmatpush3.bf16.msra.mxu1 %v4799_v4 }
 0x7aa   :  { %3813 = vmatprep.subr.bf16.mxu1 %v4291_v20 }
 0x7ab   :  { %3802 = vmatpush3.bf16.msra.mxu0 %v3916_v25  ;;  %v2130_v25 = vld [vmem:[#allocation3 + $0x30] sm:$0xff] }
 0x7ac   :  { %3831 = vmatprep.subr.bf16.mxu0 %v4291_v20 }
 0x7ad   :  { %3814 = vmatpush3.bf16.msra.mxu1 %v4805_v5 }
 0x7ae   :  { %3804 = vmatmul.mubr.msk.bf16.vlgmr.msra.gmra.mrb[80].mxu0 %vm212_vm3, %v2133_v1 }
 0x7af   :  { %3807 = vmatprep.mubr.msk.bf16.mxu0 %vm212_vm3, %v2134_v3  ;;  %3832 = vmatpush3.bf16.msra.mxu0 %v4799_v4 }
 0x7b0   :  { %3833 = vmatprep.subr.bf16.mxu0 %v4291_v20 }
 0x7b3   :  { %3834 = vmatpush3.bf16.msra.mxu0 %v4805_v5 }
 0x871   :  { %v1966_v7 = vpop.f32.mrb[72].mxu0  ;;  %v2014_v9 = vpop.f32.mrb[72].mxu1 }
 0x872   :  { %v1972_v10 = vadd.f32 %v1966_v7, %v1928_v6  ;;  %v2020_v11 = vadd.f32 %v2014_v9, %v1979_v8  ;;  %v3773_v12 = vpop.f32.mrb[73].mxu0  ;;  %v3781_v13 = vpop.f32.mrb[73].mxu1 }
 0x873   :  { %v1969_v14 = vpop.f32.mrb[74].mxu0  ;;  %v2017_v15 = vpop.f32.mrb[74].mxu1 }
 0x874   :  { %v3308_v16 = vmul.f32 -1.442695, %v1972_v10  ;;  %v3310_v17 = vmul.f32 -1.442695, %v2020_v11  ;;  %v3774_v18 = vpop.f32.mrb[75].mxu0  ;;  %v3782_v19 = vpop.f32.mrb[75].mxu1 }
 0x876   :  { %4037 = vpow2.f32 %v3308_v16 }
 0x877   :  { %4039 = vpow2.f32 %v3310_v17 }
 0x879   :  { %v2062_v21 = vpop.f32.mrb[76].mxu0  ;;  %v2105_v31 = vpop.f32.mrb[76].mxu1 }
 0x87a   :  { %v2111_v32 = vadd.f32 %v2105_v31, %v2070_v30  ;;  %v3789_v33 = vpop.f32.mrb[77].mxu0  ;;  %v3797_v26 = vpop.f32.mrb[77].mxu1  ;;  %v2068_v37 = vadd.f32 %v2062_v21, %v2027_v35 }
 0x87b   :  { %v2065_v27 = vpop.f32.mrb[78].mxu0  ;;  %v2108_v28 = vpop.f32.mrb[78].mxu1 }
 0x87c   :  { %v3790_v29 = vpop.f32.mrb[79].mxu0  ;;  %v3798_v34 = vpop.f32.mrb[79].mxu1  ;;  %v3313_v36 = vmul.f32 -1.442695, %v2111_v32 }
 0x87e   :  { %4041 = vpow2.f32 %v3313_v36 }
 0x87f   :  { %4043 = vtanh.f32 %v2068_v37 }
 0x880   :  { %v4038_v39 = vpop.eup %4037 }
 0x881   :  { %v4040_v40 = vpop.eup %4039  ;;  %v1976_v41 = vadd.f32 1.0, %v4038_v39  ;;  %v3805_v42 = vpop.f32.mrb[80].mxu0 }
 0x882   :  { %v2024_v43 = vadd.f32 1.0, %v4040_v40  ;;  %v2214_v44 = vadd.f32 %v3805_v42, %v4812_v38  ;;  %v2205_v45 = vpop.f32.mrb[81].mxu0 }
 0x883   :  { %4045 = vrcp.f32 %v1976_v41  ;;  %v2206_v46 = vadd.f32 %v4812_v38, %v2205_v45  ;;  %v3806_v47 = vpop.f32.mrb[82].mxu0 }
 0x884   :  { %4047 = vrcp.f32 %v2024_v43  ;;  %2238 = vst.msk [vmem:[#allocation3 + $0x10] sm:$0xff] %vm212_vm3, %v2214_v44  ;;  %v2217_v48 = vadd.f32 %v3806_v47, %v4812_v38  ;;  %v2208_v49 = vpop.f32.mrb[83].mxu0 }
 0x885   :  { %2236 = vst.msk [vmem:[#allocation3] sm:$0xff] %vm212_vm3, %v2206_v46  ;;  %v2209_v22 = vadd.f32 %v4812_v38, %v2208_v49 }
 0x886   :  { %2239 = vst.msk [vmem:[#allocation3 + $0x18] sm:$0xff] %vm212_vm3, %v2217_v48 }
 0x887   :  { %2237 = vst.msk [vmem:[#allocation3 + $0x8] sm:$0xff] %vm212_vm3, %v2209_v22 }
 0x888   :  { %v4042_v23 = vpop.eup %4041 }
 0x889   :  { %v4044_v50 = vpop.eup %4043  ;;  %v2115_v55 = vadd.f32 1.0, %v4042_v23 }
 0x88b   :  { %4049 = vrcp.f32 %v2115_v55  ;;  %v4851_v9 = vld [vmem:[#allocation3 + $0x10] sm:$0xff] }
 0x88c   :  { %v4847_v7 = vld [vmem:[#allocation3] sm:$0xff] }
 0x88d   :  { %v4046_v51 = vpop.eup %4045  ;;  %v4855_v13 = vld [vmem:[#allocation3 + $0x18] sm:$0xff] }
 0x88e   :  { %v4048_v52 = vpop.eup %4047  ;;  %v2119_v53 = vmul.f32 %v4046_v51, %v4044_v50  ;;  %v4849_v8 = vld [vmem:[#allocation3 + $0x8] sm:$0xff] }
 0x88f   :  { %v2118_v56 = vmul.f32 %v4048_v52, %v4765_v54  ;;  %v4831_v54 = vld [vmem:[%s5059_s8] sm:$0xff]  }
 0x890   :  { %3819 = vmatprep.subr.bf16.mxu1 %v4831_v54  ;;  %3839 = vmatprep.subr.bf16.mxu0 %v4831_v54 }
 0x891   :  { %v2120_v57 = vadd.f32 %v2119_v53, %v2118_v56 }
 0x893   :  { %4051 = vtanh.f32 %v2120_v57 }
 0x895   :  { %v4050_v58 = vpop.eup %4049 }
 0x89d   :  { %v4052_v59 = vpop.eup %4051 }
 0x89e   :  { %v2122_v60 = vmul.f32 %v4052_v59, %v4050_v58 }
 0x8a0   :  { %2123 = vst.msk [vmem:[#allocation3 + $0x38] sm:$0xff] %vm212_vm3, %v2122_v60  ;;  %v2261_v24 = vpack.c.bf16 %v2122_v60, %v2122_v60 }
 0x8a2   :  { %3816 = vmatmul.mubr.msk.bf16.vlgmr.msra.gmra.mrb[80].mxu1 %vm212_vm3, %v2261_v24 }
 0x8a3   :  { %3820 = vmatpush3.bf16.msra.mxu1 %v4831_v54 }
 0x8a4   :  { %3821 = vmatprep.subr.bf16.mxu1 %v4839_v63 }
 0x8a7   :  { %v2131_v61 = vld [vmem:[#allocation3 + $0x38] sm:$0xff]  ;;  %3822 = vmatpush3.bf16.msra.mxu1 %v4839_v63 }
 0x8a8   :  { %v2135_v62 = vpack.c.bf16 %v2131_v61, %v2130_v25  ;;  %3851 = vmatprep.subr.bf16.mxu1 %v4291_v20 }
 0x8aa   :  { %3808 = vmatmul.mubr.msk.bf16.gmra.mrb[84].mxu0 %vm212_vm3, %v2135_v62 }
 0x8ab   :  { %3835 = vmatprep.mubr.msk.bf16.mxu0 %vm4292_vm2, %v4291_v20 }
 0x975   :  { %v2317_v1 = vpop.f32.mrb[80].mxu1 }
 0x976   :  { %v2318_v2 = vadd.f32 %v4844_v0, %v2317_v1  ;;  %v3817_v3 = vpop.f32.mrb[81].mxu1 }
 0x977   :  { %v2320_v6 = vpop.f32.mrb[82].mxu1 }
 0x978   :  { %v3818_v10 = vpop.f32.mrb[83].mxu1  ;;  %v2323_v11 = vadd.f32 %v2318_v2, %v4847_v7  ;;  %v2324_v12 = vadd.f32 %v2318_v2, %v4849_v8  ;;  %v2325_v14 = vadd.f32 %v2318_v2, %v4851_v9  ;;  %v2326_v15 = vadd.f32 %v2318_v2, %v4855_v13 }
 0x97a   :  { %4053 = vtanh.f32 %v2323_v11 }
 0x97b   :  { %4055 = vtanh.f32 %v2324_v12 }
 0x97c   :  { %4057 = vtanh.f32 %v2325_v14 }
 0x97d   :  { %v3809_v16 = vpop.f32.mrb[84].mxu0  ;;  %4059 = vtanh.f32 %v2326_v15 }
 0x97e   :  { %v2230_v17 = vadd.f32 %v3809_v16, %v4812_v38  ;;  %v2221_v18 = vpop.f32.mrb[85].mxu0 }
 0x97f   :  { %v2222_v19 = vadd.f32 %v4812_v38, %v2221_v18  ;;  %v3810_v21 = vpop.f32.mrb[86].mxu0 }
 0x980   :  { %2242 = vst.msk [vmem:[#allocation3 + $0x30] sm:$0xff] %vm212_vm3, %v2230_v17  ;;  %v2233_v30 = vadd.f32 %v3810_v21, %v4812_v38  ;;  %v2224_v31 = vpop.f32.mrb[87].mxu0 }
 0x981   :  { %2240 = vst.msk [vmem:[#allocation3 + $0x20] sm:$0xff] %vm212_vm3, %v2222_v19  ;;  %v2225_v32 = vadd.f32 %v4812_v38, %v2224_v31 }
 0x982   :  { %2243 = vst.msk [vmem:[#allocation3 + $0x38] sm:$0xff] %vm212_vm3, %v2233_v30 }
 0x983   :  { %2241 = vst.msk [vmem:[#allocation3 + $0x28] sm:$0xff] %vm212_vm3, %v2225_v32 }
 0x984   :  { %v4054_v33 = vpop.eup %4053 }
 0x985   :  { %v4056_v26 = vpop.eup %4055 }
 0x986   :  { %v4058_v27 = vpop.eup %4057  ;;  %v2339_v28 = vpack.c.bf16 %v4056_v26, %v4054_v33 }
 0x987   :  { %v4060_v29 = vpop.eup %4059  ;;  %v4867_v34 = vld [vmem:[#allocation3 + $0x30] sm:$0xff] }
 0x988   :  { %3823 = vmatprep.mubr.msk.bf16.mxu1 %vm212_vm3, %v2339_v28  ;;  %v2340_v35 = vpack.c.bf16 %v4060_v29, %v4058_v27  ;;  %v4870_v36 = vld [vmem:[#allocation3 + $0x20] sm:$0xff]  ;;  %v2329_v40 = vadd.f32 %v2318_v2, %v4867_v34 }
 0x989   :  { %v2327_v37 = vadd.f32 %v2318_v2, %v4870_v36  ;;  %v4873_v39 = vld [vmem:[#allocation3 + $0x38] sm:$0xff] }
 0x98a   :  { %3824 = vmatmul.mubr.msk.bf16.vlgmr.msra.gmra.mrb[84].mxu1 %vm212_vm3, %v2340_v35  ;;  %v4876_v38 = vld [vmem:[#allocation3 + $0x28] sm:$0xff]  ;;  %v2330_v41 = vadd.f32 %v2318_v2, %v4873_v39 }
 0x98b   :  { %v2328_v42 = vadd.f32 %v2318_v2, %v4876_v38  ;;  %4061 = vtanh.f32 %v2327_v37  ;;  %3852 = vmatpush3.bf16.msra.mxu1 %v4799_v4 }
 0x98c   :  { %4063 = vtanh.f32 %v2330_v41  ;;  %3853 = vmatprep.subr.bf16.mxu1 %v4291_v20 }
 0x98d   :  { %4065 = vtanh.f32 %v2328_v42 }
 0x98e   :  { %4067 = vtanh.f32 %v2329_v40 }
 0x98f   :  { %3854 = vmatpush3.bf16.msra.mxu1 %v4805_v5 }
 0x990   :  { %3859 = vmatprep.subr.bf16.mxu1 %v4831_v54 }
 0x995   :  { %v4062_v43 = vpop.eup %4061 }
 0x996   :  { %v4064_v44 = vpop.eup %4063 }
 0x997   :  { %v4066_v45 = vpop.eup %4065 }
 0x998   :  { %v4068_v46 = vpop.eup %4067  ;;  %v2341_v47 = vpack.c.bf16 %v4066_v45, %v4062_v43 }
 0x999   :  { %v2342_v48 = vpack.c.bf16 %v4064_v44, %v4068_v46 }
 0x99a   :  { %3827 = vmatprep.mubr.msk.bf16.mxu1 %vm212_vm3, %v2341_v47 }
 0x99b   :  { %3828 = vmatmul.mubr.msk.bf16.gmra.mrb[88].mxu1 %vm212_vm3, %v2342_v48 }
 0x99c   :  { %3855 = vmatprep.mubr.msk.bf16.mxu1 %vm4292_vm2, %v4291_v20 }
 0xa5d   :  { %v3825_v4 = vpop.f32.mrb[84].mxu1 }
 0xa5e   :  { %v2401_v49 = vpop.f32.mrb[85].mxu1  ;;  %v2435_v50 = vsel %vm2432_vm4, %v3825_v4, -inf }
 0xa5f   :  { %v3826_v22 = vpop.f32.mrb[86].mxu1  ;;  %v2433_v53 = vsel %vm2432_vm4, %v2401_v49, -inf }
 0xa60   :  { %v2404_v23 = vpop.f32.mrb[87].mxu1  ;;  %v2436_v58 = vsel %vm2432_vm4, %v3826_v22, -inf }
 0xa61   :  { %v2434_v25 = vsel %vm2432_vm4, %v2404_v23, -inf }
 0xa6e   :  { %v3829_v5 = vpop.f32.mrb[88].mxu1 }
 0xa6f   :  { %v2441_v51 = vsel %vm2432_vm4, %v3829_v5, -inf  ;;  %v2417_v52 = vpop.f32.mrb[89].mxu1 }
 0xa70   :  { %v2442_v55 = vmax.f32 %v2435_v50, %v2441_v51  ;;  %v2437_v56 = vsel %vm2432_vm4, %v2417_v52, -inf  ;;  %v3830_v57 = vpop.f32.mrb[90].mxu1 }
 0xa71   :  { %v2438_v59 = vmax.f32 %v2433_v53, %v2437_v56  ;;  %v2443_v60 = vsel %vm2432_vm4, %v3830_v57, -inf  ;;  %v2420_v24 = vpop.f32.mrb[91].mxu1 }
 0xa72   :  { %v2444_v61 = vmax.f32 %v2436_v58, %v2443_v60  ;;  %v2439_v62 = vsel %vm2432_vm4, %v2420_v24, -inf }
 0xa73   :  { %v2440_v1 = vmax.f32 %v2434_v25, %v2439_v62 }
 0xa74   :  { %v2446_v2 = vmax.f32 %v2442_v55, %v2444_v61 }
 0xa75   :  { %v2445_v3 = vmax.f32 %v2438_v59, %v2440_v1 }
 0xa77   :  { %v2447_v6 = vmax.f32 %v2445_v3, %v2446_v2 }
 0xa79   :  { %v2448_v10 = vsub.f32 %v2401_v49, %v2447_v6  ;;  %v2449_v11 = vsub.f32 %v2404_v23, %v2447_v6  ;;  %v2451_v12 = vsub.f32 %v3826_v22, %v2447_v6  ;;  %v2452_v14 = vsub.f32 %v2417_v52, %v2447_v6 }
 0xa7a   :  { %v2453_v15 = vsub.f32 %v2420_v24, %v2447_v6  ;;  %v2454_v16 = vsub.f32 %v3829_v5, %v2447_v6  ;;  %v2455_v17 = vsub.f32 %v3830_v57, %v2447_v6  ;;  %v2450_v18 = vsub.f32 %v3825_v4, %v2447_v6 }
 0xa7b   :  { %v2456_v19 = vmul.f32 1.442695, %v2448_v10  ;;  %v2458_v21 = vmul.f32 1.442695, %v2449_v11  ;;  %v2462_v31 = vmul.f32 1.442695, %v2451_v12 }
 0xa7c   :  { %v2460_v30 = vmul.f32 1.442695, %v2450_v18  ;;  %v2464_v32 = vmul.f32 1.442695, %v2452_v14  ;;  %v2466_v33 = vmul.f32 1.442695, %v2453_v15 }
 0xa7d   :  { %4069 = vpow2.f32 %v2456_v19  ;;  %v2468_v26 = vmul.f32 1.442695, %v2454_v16  ;;  %v2470_v27 = vmul.f32 1.442695, %v2455_v17 }
 0xa7e   :  { %4071 = vpow2.f32 %v2458_v21 }
 0xa7f   :  { %4073 = vpow2.f32 %v2460_v30 }
 0xa80   :  { %4075 = vpow2.f32 %v2462_v31 }
 0xa81   :  { %4077 = vpow2.f32 %v2464_v32 }
 0xa82   :  { %4079 = vpow2.f32 %v2466_v33 }
 0xa83   :  { %4081 = vpow2.f32 %v2468_v26 }
 0xa84   :  { %4083 = vpow2.f32 %v2470_v27 }
 0xa87   :  { %v4070_v28 = vpop.eup %4069 }
 0xa88   :  { %v4072_v29 = vpop.eup %4071  ;;  %v2472_v35 = vsel %vm2432_vm4, %v4070_v28, 0.0 }
 0xa89   :  { %v4074_v37 = vpop.eup %4073  ;;  %v2473_v40 = vsel %vm2432_vm4, %v4072_v29, 0.0 }
 0xa8a   :  { %v4076_v41 = vpop.eup %4075  ;;  %v2474_v42 = vadd.f32 %v2473_v40, %v2472_v35  ;;  %v2475_v43 = vsel %vm2432_vm4, %v4074_v37, 0.0 }
 0xa8b   :  { %v4078_v44 = vpop.eup %4077  ;;  %v2477_v46 = vsel %vm2432_vm4, %v4076_v41, 0.0 }
 0xa8c   :  { %v2476_v45 = vadd.f32 %v2475_v43, %v2474_v42  ;;  %v4080_v47 = vpop.eup %4079  ;;  %v2479_v4 = vsel %vm2432_vm4, %v4078_v44, 0.0 }
 0xa8d   :  { %v4082_v49 = vpop.eup %4081  ;;  %v2481_v23 = vsel %vm2432_vm4, %v4080_v47, 0.0 }
 0xa8e   :  { %v2478_v48 = vadd.f32 %v2477_v46, %v2476_v45  ;;  %v4084_v5 = vpop.eup %4083  ;;  %v2483_v51 = vsel %vm2432_vm4, %v4082_v49, 0.0 }
 0xa8f   :  { %v2485_v53 = vsel %vm2432_vm4, %v4084_v5, 0.0 }
 0xa90   :  { %v2480_v22 = vadd.f32 %v2479_v4, %v2478_v48 }
 0xa92   :  { %v2482_v50 = vadd.f32 %v2481_v23, %v2480_v22 }
 0xa94   :  { %v2484_v52 = vadd.f32 %v2483_v51, %v2482_v50 }
 0xa96   :  { %v2486_v55 = vadd.f32 %v2485_v53, %v2484_v52 }
 0xa98   :  { %4085 = vrcp.f32 %v2486_v55 }
 0xaa2   :  { %v4086_v56 = vpop.eup %4085 }
 0xaa3   :  { %v2490_v57 = vmul.f32 %v4086_v56, %v4074_v37  ;;  %v2488_v58 = vmul.f32 %v4086_v56, %v4070_v28  ;;  %v2491_v59 = vmul.f32 %v4086_v56, %v4076_v41  ;;  %v2489_v60 = vmul.f32 %v4086_v56, %v4072_v29 }
 0xaa4   :  { %v2493_v24 = vmul.f32 %v4086_v56, %v4080_v47  ;;  %v2492_v25 = vmul.f32 %v4086_v56, %v4078_v44  ;;  %v2495_v61 = vmul.f32 %v4086_v56, %v4084_v5  ;;  %v2494_v62 = vmul.f32 %v4086_v56, %v4082_v49 }
 0xaa5   :  { %2508 = vperm.xlu1 %3906, %v2490_v57   ;;  %2498 = vperm.xlu0 %3905, %v2488_v58  }
 0xaa9   :  { %2513 = vperm.xlu1 %3906, %v2491_v59   ;;  %2503 = vperm.xlu0 %3905, %v2489_v60  }
 0xaad   :  { %2523 = vperm.xlu1 %3906, %v2493_v24   ;;  %2518 = vperm.xlu0 %3905, %v2492_v25  }
 0xab1   :  { %2533 = vperm.xlu1 %3906, %v2495_v61   ;;  %2528 = vperm.xlu0 %3905, %v2494_v62  }
 0xb24   :  { %v2509_v1 = vpop.permute.xlu1 %2508  ;;  %v2499_v2 = vpop.permute.xlu0 %2498 }
 0xb25   :  { %v2536_v3 = vmul.f32 %v2499_v2, %v4847_v7  ;;  %v2538_v11 = vmul.f32 %v2509_v1, %v4851_v9 }
 0xb27   :  { %v2544_v14 = vsel %vm212_vm3, %v2536_v3, 0.0  ;;  %v2547_v21 = vsel %vm212_vm3, %v2538_v11, 0.0 }
 0xb28   :  { %v2514_v6 = vpop.permute.xlu1 %2513  ;;  %v2504_v10 = vpop.permute.xlu0 %2503 }
 0xb29   :  { %v2537_v12 = vmul.f32 %v2504_v10, %v4849_v8  ;;  %v2539_v15 = vmul.f32 %v2514_v6, %v4855_v13 }
 0xb2b   :  { %v2545_v16 = vsel %vm212_vm3, %v2537_v12, 0.0  ;;  %v2549_v32 = vsel %vm212_vm3, %v2539_v15, 0.0 }
 0xb2c   :  { %v2546_v17 = vadd.f32 %v2545_v16, %v2544_v14  ;;  %v2524_v18 = vpop.permute.xlu1 %2523  ;;  %v2519_v19 = vpop.permute.xlu0 %2518 }
 0xb2d   :  { %v2540_v30 = vmul.f32 %v2519_v19, %v4870_v36  ;;  %v2541_v33 = vmul.f32 %v2524_v18, %v4876_v38 }
 0xb2e   :  { %v2548_v31 = vadd.f32 %v2547_v21, %v2546_v17 }
 0xb2f   :  { %v2551_v29 = vsel %vm212_vm3, %v2540_v30, 0.0  ;;  %v2553_v40 = vsel %vm212_vm3, %v2541_v33, 0.0 }
 0xb30   :  { %v2550_v26 = vadd.f32 %v2549_v32, %v2548_v31  ;;  %v2534_v27 = vpop.permute.xlu1 %2533  ;;  %v2529_v28 = vpop.permute.xlu0 %2528 }
 0xb31   :  { %v2542_v35 = vmul.f32 %v2529_v28, %v4867_v34  ;;  %v2543_v41 = vmul.f32 %v2534_v27, %v4873_v39 }
 0xb32   :  { %v2552_v37 = vadd.f32 %v2551_v29, %v2550_v26 }
 0xb33   :  { %v2555_v43 = vsel %vm212_vm3, %v2542_v35, 0.0  ;;  %v2557_v45 = vsel %vm212_vm3, %v2543_v41, 0.0 }
 0xb34   :  { %v2554_v42 = vadd.f32 %v2553_v40, %v2552_v37 }
 0xb36   :  { %v2556_v44 = vadd.f32 %v2555_v43, %v2554_v42 }
 0xb38   :  { %v2558_v46 = vadd.f32 %v2557_v45, %v2556_v44 }
 0xb3a   :  { %v2559_v47 = vpack.c.bf16 %v2558_v46, %v2558_v46 }
 0xb3c   :  { %3836 = vmatmul.mubr.msk.bf16.vlgmr.msra.gmra.mrb[88].mxu0 %vm212_vm3, %v2559_v47 }
 0xb3d   :  { %3840 = vmatpush3.bf16.msra.mxu0 %v4831_v54 }
 0xb3e   :  { %3841 = vmatprep.subr.bf16.mxu0 %v4839_v63 }
 0xb41   :  { %3842 = vmatpush3.bf16.msra.mxu0 %v4839_v63 }
 0xb42   :  { %3871 = vmatprep.subr.bf16.mxu0 %v4291_v20 }
 0xc0f   :  { %v2597_v48 = vpop.f32.mrb[88].mxu0 }
 0xc10   :  { %v2598_v4 = vadd.f32 %v4844_v0, %v2597_v48  ;;  %v3837_v49 = vpop.f32.mrb[89].mxu0 }
 0xc11   :  { %v2600_v22 = vpop.f32.mrb[90].mxu0 }
 0xc12   :  { %v3838_v23 = vpop.f32.mrb[91].mxu0  ;;  %v2603_v5 = vadd.f32 %v2598_v4, %v4847_v7  ;;  %v2604_v50 = vadd.f32 %v2598_v4, %v4849_v8  ;;  %v2605_v51 = vadd.f32 %v2598_v4, %v4851_v9  ;;  %v2606_v52 = vadd.f32 %v2598_v4, %v4855_v13 }
 0xc13   :  { %v2607_v53 = vadd.f32 %v2598_v4, %v4870_v36  ;;  %v2608_v55 = vadd.f32 %v2598_v4, %v4876_v38  ;;  %v2609_v56 = vadd.f32 %v2598_v4, %v4867_v34  ;;  %v2610_v57 = vadd.f32 %v2598_v4, %v4873_v39 }
 0xc14   :  { %4087 = vtanh.f32 %v2603_v5 }
 0xc15   :  { %4089 = vtanh.f32 %v2604_v50 }
 0xc16   :  { %4091 = vtanh.f32 %v2605_v51 }
 0xc17   :  { %4093 = vtanh.f32 %v2606_v52 }
 0xc18   :  { %4095 = vtanh.f32 %v2607_v53 }
 0xc19   :  { %4097 = vtanh.f32 %v2608_v55 }
 0xc1a   :  { %4099 = vtanh.f32 %v2609_v56 }
 0xc1b   :  { %4101 = vtanh.f32 %v2610_v57 }
 0xc1e   :  { %v4088_v58 = vpop.eup %4087 }
 0xc1f   :  { %v4090_v59 = vpop.eup %4089 }
 0xc20   :  { %v4092_v60 = vpop.eup %4091  ;;  %v2619_v24 = vpack.c.bf16 %v4090_v59, %v4088_v58 }
 0xc21   :  { %v4094_v25 = vpop.eup %4093 }
 0xc22   :  { %v4096_v61 = vpop.eup %4095  ;;  %3843 = vmatprep.mubr.msk.bf16.mxu0 %vm212_vm3, %v2619_v24  ;;  %v2620_v62 = vpack.c.bf16 %v4094_v25, %v4092_v60 }
 0xc23   :  { %v4098_v1 = vpop.eup %4097 }
 0xc24   :  { %3844 = vmatmul.mubr.msk.bf16.vlgmr.msra.gmra.mrb[92].mxu0 %vm212_vm3, %v2620_v62  ;;  %v2621_v2 = vpack.c.bf16 %v4098_v1, %v4096_v61  ;;  %v4100_v3 = vpop.eup %4099 }
 0xc25   :  { %v4102_v6 = vpop.eup %4101 }
 0xc26   :  { %3847 = vmatprep.mubr.msk.bf16.mxu0 %vm212_vm3, %v2621_v2  ;;  %v2622_v10 = vpack.c.bf16 %v4102_v6, %v4100_v3 }
 0xc2c   :  { %3848 = vmatmul.mubr.msk.bf16.gmra.mrb[96].mxu0 %vm212_vm3, %v2622_v10 }
 0xc2d   :  { %3875 = vmatprep.mubr.msk.bf16.mxu0 %vm4292_vm2, %v4291_v20 }
 0xcf7   :  { %v3845_v11 = vpop.f32.mrb[92].mxu0 }
 0xcf8   :  { %v2669_v12 = vpop.f32.mrb[93].mxu0  ;;  %v2702_v17 = vsel %vm2432_vm4, %v3845_v11, -inf }
 0xcf9   :  { %v3846_v14 = vpop.f32.mrb[94].mxu0  ;;  %v2700_v21 = vsel %vm2432_vm4, %v2669_v12, -inf }
 0xcfa   :  { %v2672_v15 = vpop.f32.mrb[95].mxu0  ;;  %v2703_v33 = vsel %vm2432_vm4, %v3846_v14, -inf }
 0xcfb   :  { %v2701_v29 = vsel %vm2432_vm4, %v2672_v15, -inf }
 0xcff   :  { %v3849_v16 = vpop.f32.mrb[96].mxu0 }
 0xd00   :  { %v2708_v18 = vsel %vm2432_vm4, %v3849_v16, -inf  ;;  %v2685_v19 = vpop.f32.mrb[97].mxu0 }
 0xd01   :  { %v2709_v30 = vmax.f32 %v2702_v17, %v2708_v18  ;;  %v2704_v31 = vsel %vm2432_vm4, %v2685_v19, -inf  ;;  %v3850_v32 = vpop.f32.mrb[98].mxu0 }
 0xd02   :  { %v2705_v26 = vmax.f32 %v2700_v21, %v2704_v31  ;;  %v2710_v27 = vsel %vm2432_vm4, %v3850_v32, -inf  ;;  %v2688_v28 = vpop.f32.mrb[99].mxu0 }
 0xd03   :  { %v2711_v35 = vmax.f32 %v2703_v33, %v2710_v27  ;;  %v2706_v37 = vsel %vm2432_vm4, %v2688_v28, -inf }
 0xd04   :  { %v2707_v40 = vmax.f32 %v2701_v29, %v2706_v37 }
 0xd05   :  { %v2713_v41 = vmax.f32 %v2709_v30, %v2711_v35 }
 0xd06   :  { %v2712_v42 = vmax.f32 %v2705_v26, %v2707_v40 }
 0xd08   :  { %v2714_v43 = vmax.f32 %v2712_v42, %v2713_v41 }
 0xd0a   :  { %v2715_v44 = vsub.f32 %v2669_v12, %v2714_v43  ;;  %v2716_v45 = vsub.f32 %v2672_v15, %v2714_v43  ;;  %v2717_v46 = vsub.f32 %v3845_v11, %v2714_v43  ;;  %v2718_v47 = vsub.f32 %v3846_v14, %v2714_v43 }
 0xd0b   :  { %v2719_v48 = vsub.f32 %v2685_v19, %v2714_v43  ;;  %v2720_v4 = vsub.f32 %v2688_v28, %v2714_v43  ;;  %v2721_v49 = vsub.f32 %v3849_v16, %v2714_v43  ;;  %v2722_v22 = vsub.f32 %v3850_v32, %v2714_v43 }
 0xd0c   :  { %v2723_v23 = vmul.f32 1.442695, %v2715_v44  ;;  %v2725_v5 = vmul.f32 1.442695, %v2716_v45  ;;  %v2727_v50 = vmul.f32 1.442695, %v2717_v46 }
 0xd0d   :  { %v2729_v51 = vmul.f32 1.442695, %v2718_v47  ;;  %v2731_v52 = vmul.f32 1.442695, %v2719_v48  ;;  %v2733_v53 = vmul.f32 1.442695, %v2720_v4 }
 0xd0e   :  { %4103 = vpow2.f32 %v2723_v23  ;;  %v2735_v55 = vmul.f32 1.442695, %v2721_v49  ;;  %v2737_v56 = vmul.f32 1.442695, %v2722_v22 }
 0xd0f   :  { %4105 = vpow2.f32 %v2725_v5 }
 0xd10   :  { %4107 = vpow2.f32 %v2727_v50 }
 0xd11   :  { %4109 = vpow2.f32 %v2729_v51 }
 0xd12   :  { %4111 = vpow2.f32 %v2731_v52 }
 0xd13   :  { %4113 = vpow2.f32 %v2733_v53 }
 0xd14   :  { %4115 = vpow2.f32 %v2735_v55 }
 0xd15   :  { %4117 = vpow2.f32 %v2737_v56 }
 0xd18   :  { %v4104_v57 = vpop.eup %4103 }
 0xd19   :  { %v4106_v58 = vpop.eup %4105  ;;  %v2739_v59 = vsel %vm2432_vm4, %v4104_v57, 0.0 }
 0xd1a   :  { %v4108_v60 = vpop.eup %4107  ;;  %v2740_v24 = vsel %vm2432_vm4, %v4106_v58, 0.0 }
 0xd1b   :  { %v4110_v25 = vpop.eup %4109  ;;  %v2741_v61 = vadd.f32 %v2740_v24, %v2739_v59  ;;  %v2742_v62 = vsel %vm2432_vm4, %v4108_v60, 0.0 }
 0xd1c   :  { %v4112_v1 = vpop.eup %4111  ;;  %v2744_v3 = vsel %vm2432_vm4, %v4110_v25, 0.0 }
 0xd1d   :  { %v2743_v2 = vadd.f32 %v2742_v62, %v2741_v61  ;;  %v4114_v6 = vpop.eup %4113  ;;  %v2746_v11 = vsel %vm2432_vm4, %v4112_v1, 0.0 }
 0xd1e   :  { %v4116_v12 = vpop.eup %4115  ;;  %v2748_v15 = vsel %vm2432_vm4, %v4114_v6, 0.0 }
 0xd1f   :  { %v2745_v10 = vadd.f32 %v2744_v3, %v2743_v2  ;;  %v4118_v16 = vpop.eup %4117  ;;  %v2750_v18 = vsel %vm2432_vm4, %v4116_v12, 0.0 }
 0xd20   :  { %v2752_v21 = vsel %vm2432_vm4, %v4118_v16, 0.0 }
 0xd21   :  { %v2747_v14 = vadd.f32 %v2746_v11, %v2745_v10 }
 0xd23   :  { %v2749_v17 = vadd.f32 %v2748_v15, %v2747_v14 }
 0xd25   :  { %v2751_v19 = vadd.f32 %v2750_v18, %v2749_v17 }
 0xd27   :  { %v2753_v30 = vadd.f32 %v2752_v21, %v2751_v19 }
 0xd29   :  { %4119 = vrcp.f32 %v2753_v30 }
 0xd33   :  { %v4120_v31 = vpop.eup %4119 }
 0xd34   :  { %v2756_v32 = vmul.f32 %v4120_v31, %v4106_v58  ;;  %v2755_v33 = vmul.f32 %v4120_v31, %v4104_v57  ;;  %v2758_v26 = vmul.f32 %v4120_v31, %v4110_v25  ;;  %v2757_v27 = vmul.f32 %v4120_v31, %v4108_v60 }
 0xd35   :  { %v2760_v28 = vmul.f32 %v4120_v31, %v4114_v6  ;;  %v2759_v29 = vmul.f32 %v4120_v31, %v4112_v1  ;;  %v2762_v35 = vmul.f32 %v4120_v31, %v4118_v16  ;;  %v2761_v37 = vmul.f32 %v4120_v31, %v4116_v12 }
 0xd36   :  { %2770 = vperm.xlu1 %3906, %v2756_v32   ;;  %2765 = vperm.xlu0 %3905, %v2755_v33  }
 0xd3a   :  { %2780 = vperm.xlu1 %3906, %v2758_v26   ;;  %2775 = vperm.xlu0 %3905, %v2757_v27  }
 0xd3e   :  { %2790 = vperm.xlu1 %3906, %v2760_v28   ;;  %2785 = vperm.xlu0 %3905, %v2759_v29  }
 0xd42   :  { %2800 = vperm.xlu1 %3906, %v2762_v35   ;;  %2795 = vperm.xlu0 %3905, %v2761_v37  }
 0xdb5   :  { %v2771_v40 = vpop.permute.xlu1 %2770  ;;  %v2766_v41 = vpop.permute.xlu0 %2765 }
 0xdb6   :  { %v2804_v42 = vmul.f32 %v2771_v40, %v4849_v8  ;;  %v2803_v43 = vmul.f32 %v2766_v41, %v4847_v7 }
 0xdb8   :  { %v2812_v44 = vsel %vm212_vm3, %v2804_v42, 0.0  ;;  %v2811_v45 = vsel %vm212_vm3, %v2803_v43, 0.0 }
 0xdb9   :  { %v2781_v46 = vpop.permute.xlu1 %2780  ;;  %v2776_v47 = vpop.permute.xlu0 %2775  ;;  %v2813_v49 = vadd.f32 %v2812_v44, %v2811_v45 }
 0xdba   :  { %v2806_v48 = vmul.f32 %v2781_v46, %v4855_v13  ;;  %v2805_v4 = vmul.f32 %v2776_v47, %v4851_v9 }
 0xdbc   :  { %v2814_v22 = vsel %vm212_vm3, %v2805_v4, 0.0  ;;  %v2816_v51 = vsel %vm212_vm3, %v2806_v48, 0.0 }
 0xdbd   :  { %v2815_v23 = vadd.f32 %v2814_v22, %v2813_v49  ;;  %v2791_v5 = vpop.permute.xlu1 %2790  ;;  %v2786_v50 = vpop.permute.xlu0 %2785 }
 0xdbe   :  { %v2808_v52 = vmul.f32 %v2791_v5, %v4876_v38  ;;  %v2807_v53 = vmul.f32 %v2786_v50, %v4870_v36 }
 0xdbf   :  { %v2817_v55 = vadd.f32 %v2816_v51, %v2815_v23 }
 0xdc0   :  { %v2818_v56 = vsel %vm212_vm3, %v2807_v53, 0.0  ;;  %v2820_v60 = vsel %vm212_vm3, %v2808_v52, 0.0 }
 0xdc1   :  { %v2819_v57 = vadd.f32 %v2818_v56, %v2817_v55  ;;  %v2801_v58 = vpop.permute.xlu1 %2800  ;;  %v2796_v59 = vpop.permute.xlu0 %2795 }
 0xdc2   :  { %v2810_v24 = vmul.f32 %v2801_v58, %v4873_v39  ;;  %v2809_v25 = vmul.f32 %v2796_v59, %v4867_v34 }
 0xdc3   :  { %v2821_v61 = vadd.f32 %v2820_v60, %v2819_v57 }
 0xdc4   :  { %v2822_v62 = vsel %vm212_vm3, %v2809_v25, 0.0  ;;  %v2824_v2 = vsel %vm212_vm3, %v2810_v24, 0.0 }
 0xdc5   :  { %v2823_v1 = vadd.f32 %v2822_v62, %v2821_v61 }
 0xdc7   :  { %v2825_v3 = vadd.f32 %v2824_v2, %v2823_v1 }
 0xdc9   :  { %v2826_v6 = vpack.c.bf16 %v2825_v3, %v2825_v3 }
 0xdcb   :  { %3856 = vmatmul.mubr.msk.bf16.vlgmr.msra.gmra.mrb[92].mxu1 %vm212_vm3, %v2826_v6 }
 0xdcc   :  { %3860 = vmatpush3.bf16.msra.mxu1 %v4831_v54 }
 0xdcd   :  { %3861 = vmatprep.subr.bf16.mxu1 %v4839_v63 }
 0xdd0   :  { %3862 = vmatpush3.bf16.msra.mxu1 %v4839_v63 }
 0xe9e   :  { %v2864_v10 = vpop.f32.mrb[92].mxu1 }
 0xe9f   :  { %v2865_v11 = vadd.f32 %v4844_v0, %v2864_v10  ;;  %v3857_v12 = vpop.f32.mrb[93].mxu1 }
 0xea0   :  { %v2867_v14 = vpop.f32.mrb[94].mxu1 }
 0xea1   :  { %v3858_v15 = vpop.f32.mrb[95].mxu1  ;;  %v2870_v16 = vadd.f32 %v2865_v11, %v4847_v7  ;;  %v2871_v17 = vadd.f32 %v2865_v11, %v4849_v8  ;;  %v2872_v18 = vadd.f32 %v2865_v11, %v4851_v9  ;;  %v2873_v19 = vadd.f32 %v2865_v11, %v4855_v13 }
 0xea2   :  { %v2874_v54 = vadd.f32 %v2865_v11, %v4870_v36  ;;  %v2875_v63 = vadd.f32 %v2865_v11, %v4876_v38  ;;  %v2876_v0 = vadd.f32 %v2865_v11, %v4867_v34  ;;  %v2877_v21 = vadd.f32 %v2865_v11, %v4873_v39 }
 0xea3   :  { %4121 = vtanh.f32 %v2870_v16 }
 0xea4   :  { %4123 = vtanh.f32 %v2871_v17 }
 0xea5   :  { %4125 = vtanh.f32 %v2872_v18 }
 0xea6   :  { %4127 = vtanh.f32 %v2873_v19 }
 0xea7   :  { %4129 = vtanh.f32 %v2874_v54 }
 0xea8   :  { %4131 = vtanh.f32 %v2875_v63 }
 0xea9   :  { %4133 = vtanh.f32 %v2876_v0 }
 0xeaa   :  { %4135 = vtanh.f32 %v2877_v21 }
 0xead   :  { %v4122_v30 = vpop.eup %4121 }
 0xeae   :  { %v4124_v31 = vpop.eup %4123 }
 0xeaf   :  { %v4126_v32 = vpop.eup %4125  ;;  %v2886_v33 = vpack.c.bf16 %v4124_v31, %v4122_v30 }
 0xeb0   :  { %v4128_v26 = vpop.eup %4127 }
 0xeb1   :  { %v4130_v27 = vpop.eup %4129  ;;  %3863 = vmatprep.mubr.msk.bf16.mxu1 %vm212_vm3, %v2886_v33  ;;  %v2887_v28 = vpack.c.bf16 %v4128_v26, %v4126_v32 }
 0xeb2   :  { %v4132_v29 = vpop.eup %4131 }
 0xeb3   :  { %3864 = vmatmul.mubr.msk.bf16.vlgmr.msra.gmra.mrb[96].mxu1 %vm212_vm3, %v2887_v28  ;;  %v2888_v35 = vpack.c.bf16 %v4132_v29, %v4130_v27  ;;  %v4134_v37 = vpop.eup %4133 }
 0xeb4   :  { %v4136_v40 = vpop.eup %4135 }
 0xeb5   :  { %3867 = vmatprep.mubr.msk.bf16.mxu1 %vm212_vm3, %v2888_v35  ;;  %v2889_v41 = vpack.c.bf16 %v4136_v40, %v4134_v37 }
 0xebb   :  { %3868 = vmatmul.mubr.msk.bf16.gmra.mrb[100].mxu1 %vm212_vm3, %v2889_v41 }
 0xf86   :  { %v3865_v42 = vpop.f32.mrb[96].mxu1 }
 0xf87   :  { %v2936_v43 = vpop.f32.mrb[97].mxu1  ;;  %v2969_v47 = vsel %vm2432_vm4, %v3865_v42, -inf }
 0xf88   :  { %v3866_v44 = vpop.f32.mrb[98].mxu1  ;;  %v2967_v49 = vsel %vm2432_vm4, %v2936_v43, -inf }
 0xf89   :  { %v2939_v45 = vpop.f32.mrb[99].mxu1  ;;  %v2970_v50 = vsel %vm2432_vm4, %v3866_v44, -inf }
 0xf8a   :  { %v2968_v55 = vsel %vm2432_vm4, %v2939_v45, -inf }
 0xf8e   :  { %v3869_v46 = vpop.f32.mrb[100].mxu1 }
 0xf8f   :  { %v2975_v48 = vsel %vm2432_vm4, %v3869_v46, -inf  ;;  %v2952_v4 = vpop.f32.mrb[101].mxu1 }
 0xf90   :  { %v2976_v22 = vmax.f32 %v2969_v47, %v2975_v48  ;;  %v2971_v23 = vsel %vm2432_vm4, %v2952_v4, -inf  ;;  %v3870_v5 = vpop.f32.mrb[102].mxu1 }
 0xf91   :  { %v2972_v51 = vmax.f32 %v2967_v49, %v2971_v23  ;;  %v2977_v52 = vsel %vm2432_vm4, %v3870_v5, -inf  ;;  %v2955_v53 = vpop.f32.mrb[103].mxu1 }
 0xf92   :  { %v2978_v56 = vmax.f32 %v2970_v50, %v2977_v52  ;;  %v2973_v57 = vsel %vm2432_vm4, %v2955_v53, -inf }
 0xf93   :  { %v2974_v58 = vmax.f32 %v2968_v55, %v2973_v57  ;;  %v3921_v55 = vld [vmem:[%s5060_s9] sm:$0xff]  }
 0xf94   :  { %v2980_v59 = vmax.f32 %v2976_v22, %v2978_v56  ;;  %3872 = vmatpush3.bf16.msra.mxu0 %v3921_v55  ;;  %v3922_v56 = vld [vmem:[%s5060_s9 + $0x8] sm:$0xff]  }
 0xf95   :  { %v2979_v60 = vmax.f32 %v2972_v51, %v2974_v58  ;;  %3873 = vmatprep.subr.bf16.mxu0 %v4291_v20 }
 0xf97   :  { %v2981_v24 = vmax.f32 %v2979_v60, %v2980_v59 }
 0xf98   :  { %3874 = vmatpush3.bf16.msra.mxu0 %v3922_v56 }
 0xf99   :  { %v2982_v25 = vsub.f32 %v2936_v43, %v2981_v24  ;;  %v2983_v61 = vsub.f32 %v2939_v45, %v2981_v24  ;;  %v2984_v62 = vsub.f32 %v3865_v42, %v2981_v24  ;;  %v2985_v1 = vsub.f32 %v3866_v44, %v2981_v24  ;;  %3879 = vmatprep.subr.bf16.mxu0 %v4291_v20 }
 0xf9a   :  { %v2986_v2 = vsub.f32 %v2952_v4, %v2981_v24  ;;  %v2987_v3 = vsub.f32 %v2955_v53, %v2981_v24  ;;  %v2988_v6 = vsub.f32 %v3869_v46, %v2981_v24  ;;  %v2989_v10 = vsub.f32 %v3870_v5, %v2981_v24 }
 0xf9b   :  { %v2990_v11 = vmul.f32 1.442695, %v2982_v25  ;;  %v2992_v12 = vmul.f32 1.442695, %v2983_v61  ;;  %v2994_v14 = vmul.f32 1.442695, %v2984_v62 }
 0xf9c   :  { %v2996_v15 = vmul.f32 1.442695, %v2985_v1  ;;  %v2998_v16 = vmul.f32 1.442695, %v2986_v2  ;;  %v3000_v17 = vmul.f32 1.442695, %v2987_v3 }
 0xf9d   :  { %4137 = vpow2.f32 %v2990_v11  ;;  %v3002_v18 = vmul.f32 1.442695, %v2988_v6  ;;  %v3004_v19 = vmul.f32 1.442695, %v2989_v10 }
 0xf9e   :  { %4139 = vpow2.f32 %v2992_v12 }
 0xf9f   :  { %4141 = vpow2.f32 %v2994_v14 }
 0xfa0   :  { %4143 = vpow2.f32 %v2996_v15 }
 0xfa1   :  { %4145 = vpow2.f32 %v2998_v16 }
 0xfa2   :  { %4147 = vpow2.f32 %v3000_v17 }
 0xfa3   :  { %4149 = vpow2.f32 %v3002_v18 }
 0xfa4   :  { %4151 = vpow2.f32 %v3004_v19 }
 0xfa7   :  { %v4138_v54 = vpop.eup %4137 }
 0xfa8   :  { %v4140_v63 = vpop.eup %4139  ;;  %v3006_v0 = vsel %vm2432_vm4, %v4138_v54, 0.0 }
 0xfa9   :  { %v4142_v21 = vpop.eup %4141  ;;  %v3007_v30 = vsel %vm2432_vm4, %v4140_v63, 0.0 }
 0xfaa   :  { %v4144_v31 = vpop.eup %4143  ;;  %v3008_v32 = vadd.f32 %v3007_v30, %v3006_v0  ;;  %v3009_v33 = vsel %vm2432_vm4, %v4142_v21, 0.0 }
 0xfab   :  { %v4146_v26 = vpop.eup %4145  ;;  %v3011_v28 = vsel %vm2432_vm4, %v4144_v31, 0.0 }
 0xfac   :  { %v3010_v27 = vadd.f32 %v3009_v33, %v3008_v32  ;;  %v4148_v29 = vpop.eup %4147  ;;  %v3013_v37 = vsel %vm2432_vm4, %v4146_v26, 0.0 }
 0xfad   :  { %v4150_v40 = vpop.eup %4149  ;;  %v3015_v42 = vsel %vm2432_vm4, %v4148_v29, 0.0 }
 0xfae   :  { %v3012_v35 = vadd.f32 %v3011_v28, %v3010_v27  ;;  %v4152_v43 = vpop.eup %4151  ;;  %v3017_v45 = vsel %vm2432_vm4, %v4150_v40, 0.0 }
 0xfaf   :  { %v3019_v47 = vsel %vm2432_vm4, %v4152_v43, 0.0 }
 0xfb0   :  { %v3014_v41 = vadd.f32 %v3013_v37, %v3012_v35  ;;  %v3167_v37 = vstv %s5063_s12 }
 0xfb2   :  { %v3016_v44 = vadd.f32 %v3015_v42, %v3014_v41 }
 0xfb4   :  { %v3018_v46 = vadd.f32 %v3017_v45, %v3016_v44 }
 0xfb6   :  { %v3020_v48 = vadd.f32 %v3019_v47, %v3018_v46 }
 0xfb8   :  { %4153 = vrcp.f32 %v3020_v48 }
 0xfc2   :  { %v4154_v4 = vpop.eup %4153 }
 0xfc3   :  { %v3023_v49 = vmul.f32 %v4154_v4, %v4140_v63  ;;  %v3022_v22 = vmul.f32 %v4154_v4, %v4138_v54  ;;  %v3025_v23 = vmul.f32 %v4154_v4, %v4144_v31  ;;  %v3024_v5 = vmul.f32 %v4154_v4, %v4142_v21  ;;  %v3923_v31 = vld [vmem:[%s5062_s11] sm:$0xff]  }
 0xfc4   :  { %v3027_v50 = vmul.f32 %v4154_v4, %v4148_v29  ;;  %v3026_v51 = vmul.f32 %v4154_v4, %v4146_v26  ;;  %v3029_v52 = vmul.f32 %v4154_v4, %v4152_v43  ;;  %v3028_v53 = vmul.f32 %v4154_v4, %v4150_v40 }
 0xfc5   :  { %3037 = vperm.xlu1 %3906, %v3023_v49   ;;  %3032 = vperm.xlu0 %3905, %v3022_v22  }
 0xfc9   :  { %3047 = vperm.xlu1 %3906, %v3025_v23   ;;  %3042 = vperm.xlu0 %3905, %v3024_v5  }
 0xfcd   :  { %3057 = vperm.xlu1 %3906, %v3027_v50   ;;  %3052 = vperm.xlu0 %3905, %v3026_v51  }
 0xfd1   :  { %3067 = vperm.xlu1 %3906, %v3029_v52   ;;  %3062 = vperm.xlu0 %3905, %v3028_v53  }
0x1044   :  { %v3038_v57 = vpop.permute.xlu1 %3037  ;;  %v3033_v58 = vpop.permute.xlu0 %3032 }
0x1045   :  { %v3071_v59 = vmul.f32 %v3038_v57, %v4849_v8  ;;  %v3070_v60 = vmul.f32 %v3033_v58, %v4847_v7 }
0x1047   :  { %v3079_v24 = vsel %vm212_vm3, %v3071_v59, 0.0  ;;  %v3078_v25 = vsel %vm212_vm3, %v3070_v60, 0.0 }
0x1048   :  { %v3048_v61 = vpop.permute.xlu1 %3047  ;;  %v3043_v62 = vpop.permute.xlu0 %3042  ;;  %v3080_v3 = vadd.f32 %v3079_v24, %v3078_v25 }
0x1049   :  { %v3073_v1 = vmul.f32 %v3048_v61, %v4855_v13  ;;  %v3072_v2 = vmul.f32 %v3043_v62, %v4851_v9 }
0x104b   :  { %v3081_v6 = vsel %vm212_vm3, %v3072_v2, 0.0  ;;  %v3083_v8 = vsel %vm212_vm3, %v3073_v1, 0.0 }
0x104c   :  { %v3082_v10 = vadd.f32 %v3081_v6, %v3080_v3  ;;  %v3058_v11 = vpop.permute.xlu1 %3057  ;;  %v3053_v12 = vpop.permute.xlu0 %3052 }
0x104d   :  { %v3075_v7 = vmul.f32 %v3058_v11, %v4876_v38  ;;  %v3074_v14 = vmul.f32 %v3053_v12, %v4870_v36 }
0x104e   :  { %v3084_v15 = vadd.f32 %v3083_v8, %v3082_v10 }
0x104f   :  { %v3085_v16 = vsel %vm212_vm3, %v3074_v14, 0.0  ;;  %v3087_v9 = vsel %vm212_vm3, %v3075_v7, 0.0 }
0x1050   :  { %v3086_v17 = vadd.f32 %v3085_v16, %v3084_v15  ;;  %v3068_v18 = vpop.permute.xlu1 %3067  ;;  %v3063_v13 = vpop.permute.xlu0 %3062 }
0x1051   :  { %v3077_v19 = vmul.f32 %v3068_v18, %v4873_v39  ;;  %v3076_v54 = vmul.f32 %v3063_v13, %v4867_v34  ;;  %v3924_v34 = vld [vmem:[%s5062_s11 + $0x8] sm:$0xff]   ;;  %v3341_v39 = vld [vmem:[%s5061_s10] ss:$0 sm:$0xff] }
0x1052   :  { %v3088_v63 = vadd.f32 %v3087_v9, %v3086_v17 }
0x1053   :  { %v3089_v0 = vsel %vm212_vm3, %v3076_v54, 0.0  ;;  %v3091_v38 = vsel %vm212_vm3, %v3077_v19, 0.0 }
0x1054   :  { %v3090_v21 = vadd.f32 %v3089_v0, %v3088_v63 }
0x1056   :  { %v3092_v30 = vadd.f32 %v3091_v38, %v3090_v21 }
0x1058   :  { %v3093_v36 = vpack.c.bf16 %v3092_v30, %v3092_v30 }
0x105a   :  { %3876 = vmatmul.mubr.msk.bf16.vlgmr.msra.gmra.mrb[100].mxu0 %vm212_vm3, %v3093_v36 }
0x105b   :  { %3883 = vmatprep.mubr.msk.bf16.mxu0 %vm4292_vm2, %v4291_v20  ;;  %3880 = vmatpush3.bf16.msra.mxu0 %v3923_v31 }
0x105c   :  { %3881 = vmatprep.subr.bf16.mxu0 %v4291_v20 }
0x105f   :  { %3882 = vmatpush3.bf16.msra.mxu0 %v3924_v34 }
0x112d   :  { %v3154_v32 = vpop.f32.mrb[100].mxu0 }
0x112e   :  { %v3155_v33 = vadd.f32 %v3341_v39, %v3154_v32  ;;  %v3877_v26 = vpop.f32.mrb[101].mxu0 }
0x112f   :  { %v3157_v27 = vpop.f32.mrb[102].mxu0 }
0x1130   :  { %v3160_v28 = vmax.f32 %v3155_v33, 0.0  ;;  %v3878_v29 = vpop.f32.mrb[103].mxu0 }
0x1132   :  { %v3161_v35 = vpack.c.bf16 %v3160_v28, %v3160_v28 }
0x1134   :  { %3884 = vmatmul.mubr.msk.bf16.vlgmr.msra.gmra.mrb[104].mxu0 %vm212_vm3, %v3161_v35 }
0x1207   :  { %v3217_v40 = vpop.f32.mrb[104].mxu0 }
0x1208   :  { %v3218_v20 = vadd.f32 %v3217_v40, %v3167_v37  ;;  %v3885_v41 = vpop.f32.mrb[105].mxu0 }
0x1209   :  { %v3220_v42 = vpop.f32.mrb[106].mxu0 }
0x120a   :  { %3223 = vst.msk [vmem:[%s5064_s13] sm:$0xff] %vm2432_vm4, %v3218_v20  ;;  %v3886_v43 = vpop.f32.mrb[107].mxu0 }
0x120b   :  { %3228 = vsyncpa [#allocation6], 1 }
0x120c   :  { %3229 = vsyncpa [#allocation8], 1 }
0x120d   :  { %3230 = vsyncpa [#allocation11], 1 }

</bundles_post_ra>
